<compile_context>
chip_gen: v7x
topology: tpu7x:2x2x1
jax: 0.10.0
libtpu: 0.0.40
codegen_flags: <defaults>
</compile_context>

<pallas_src>
import jax
import jax.numpy as jnp
from jax.experimental import pallas as pl
from jax.experimental.pallas import tpu as pltpu

_LANES = 128


# ----------------------------------------------------------------------------
# helpers
# ----------------------------------------------------------------------------
def _round_up(x, m):
    return (x + m - 1) // m * m


def _pad_last(a, n):
    d = n - a.shape[-1]
    if d <= 0:
        return a
    return jnp.pad(a, [(0, 0)] * (a.ndim - 1) + [(0, d)])


def _pad2(a, rows, cols):
    return jnp.pad(a, ((0, rows - a.shape[0]), (0, cols - a.shape[1])))


def _tpu_vmem_budgets():
    """Generation-aware (vmem_limit_bytes, per-step working-set budget)."""
    cap = None
    try:
        info = pltpu.get_tpu_info()
        cap = getattr(info, "vmem_capacity_bytes", None)
    except Exception:
        cap = None
    if not cap:
        cap = 64 << 20                      # conservative default (v7x per-core VMEM)
    cap = int(cap)
    limit = min(cap * 3 // 4, 96 << 20)     # ~48 MiB on v7x, ~96 MiB on v5e/v6e
    step = min(cap // 6, 20 << 20)          # ~10 MiB on v7x, ~20 MiB on v5e/v6e
    return limit, step


def _pick_row_tile(H, W, cin_p, cexp_p, K, in_isz, y_isz, budget):
    """Largest divisor of H whose honest per-step working set fits the budget
    (the input footprint is now the double-buffered halo slab, not the full image)."""
    p = K // 2
    wp = _round_up(W + 2 * p, 16 if in_isz < 4 else 8)
    best = 1
    for th in range(1, H + 1):
        if H % th:
            continue
        th2p = th + 2 * p
        fp = (2 * th2p * wp * cin_p * in_isz          # double-buffered input slab
              + th2p * wp * cexp_p * 4                # expansion activation (f32)
              + th * wp * cexp_p * 4                  # depthwise accumulator (f32)
              + 2 * th * W * cexp_p * y_isz           # double-buffered y output block
              + cin_p * cexp_p * in_isz + 2 * K * K * cexp_p * 4)
        if fp <= budget:
            best = th
    return best


def _pick_proj_rows(hw, cexp_p, cout_p, in_isz, budget, cap=4096):
    """Largest row tile (multiple of 16, or the whole image) fitting the budget."""
    w_bytes = cexp_p * cout_p * in_isz

    def footprint(tm):
        return 2 * tm * (cexp_p * in_isz + 8 * cout_p) + w_bytes

    if footprint(hw) <= budget:
        return hw
    tm = min(cap, hw) // 16 * 16
    while tm > 16 and footprint(tm) > budget:
        tm -= 16
    return max(tm, 16)


# ----------------------------------------------------------------------------
# Kernel A: fused expansion (1x1 conv + BN + Swish) + depthwise KxK (+ BN + Swish)
#           + per-(image, row-tile) partial channel sums for squeeze-excitation.
#           Input stays in HBM; only the halo'd row slab is DMA'd (double-buffered).
# ----------------------------------------------------------------------------
def _make_expand_dw_kernel(*, K, p, th, H, W, Wp, R, use_expand):
    th2p = th + 2 * p

    def fetch_slab(xp_hbm, buf, sem):
        """Double-buffered halo-slab fetch.  The prefetch chain resets at r == 0 so it
        never crosses an image boundary (the n axis stays megacore-splittable)."""
        n = pl.program_id(0)
        r = pl.program_id(1)

        def issue(rr, slot):
            row0 = pl.multiple_of(rr * th, th)
            pltpu.make_async_copy(xp_hbm.at[n, pl.ds(row0, th2p)],
                                  buf.at[slot], sem.at[slot]).start()

        @pl.when(r == 0)
        def _():
            issue(r, 0)

        @pl.when(r + 1 < R)
        def _():
            issue(r + 1, (r + 1) % 2)

        slot = r % 2
        row0 = pl.multiple_of(r * th, th)
        pltpu.make_async_copy(xp_hbm.at[n, pl.ds(row0, th2p)],
                              buf.at[slot], sem.at[slot]).wait()
        return buf[slot], row0

    def depthwise_bn_swish(act, wdw, s2, b2, y_ref, ps_ref):
        # act: (th+2p, Wp, C) f32, exactly zero outside the valid image region.
        acc = None
        for kw in range(K):
            cols = act[:, kw:kw + W, :]   # one sublane-shifted slice per kw (K, not K*K)
            # TODO(synk): pltpu.roll(act, Wp - kw, axis=1) would move this shift to the XLU.
            for kh in range(K):
                term = cols[kh:kh + th] * wdw[kh, kw]
                acc = term if acc is None else acc + term
        y = acc * s2 + b2
        y = y * jax.nn.sigmoid(y)                                  # Swish (f32)
        y_ref[...] = y.astype(y_ref.dtype)
        # partial spatial channel sums so SE never re-reads the big activation
        ps_ref[...] = jnp.sum(jnp.sum(y, axis=0), axis=0, keepdims=True)

    if use_expand:
        def kernel(xp_hbm, wexp_ref, s1_ref, b1_ref, wdw_ref, s2_ref, b2_ref,
                   y_ref, ps_ref, buf, sem):
            slab, row0 = fetch_slab(xp_hbm, buf, sem)              # (th+2p, Wp, Cin_p)
            cin = slab.shape[-1]
            cexp = wexp_ref.shape[-1]
            # expansion 1x1 conv on the MXU (+ folded BN + Swish), halo rows included
            ye = jnp.dot(slab.reshape(th2p * Wp, cin), wexp_ref[...],
                         preferred_element_type=jnp.float32)
            ye = ye * s1_ref[...] + b1_ref[...]
            ye = ye * jax.nn.sigmoid(ye)
            ye = ye.reshape(th2p, Wp, cexp)
            # zero the conv halo of the *activation* (swish(bn(0)) != 0) with an
            # in-kernel iota mask (replaces the old HBM-resident mask tensor).
            gi = jax.lax.broadcasted_iota(jnp.int32, (th2p, Wp, 1), 0) + row0
            gj = jax.lax.broadcasted_iota(jnp.int32, (th2p, Wp, 1), 1)
            valid = (gi >= p) & (gi < p + H) & (gj >= p) & (gj < p + W)
            ye = jnp.where(valid, ye, 0.0)
            depthwise_bn_swish(ye, wdw_ref[...], s2_ref[...], b2_ref[...], y_ref, ps_ref)
    else:
        def kernel(xp_hbm, wdw_ref, s2_ref, b2_ref, y_ref, ps_ref, buf, sem):
            slab, _ = fetch_slab(xp_hbm, buf, sem)   # already zero in the halo
            depthwise_bn_swish(slab.astype(jnp.float32), wdw_ref[...],
                               s2_ref[...], b2_ref[...], y_ref, ps_ref)

    return kernel


def fused_expand_depthwise(xp, w_exp, s1, b1, w_dw, s2, b2, *, H, W, th,
                           use_expand, y_dtype, vmem_limit):
    """xp: (N, H+2p, Wp, Cin_p) zero-padded input (HBM resident).  Returns
       y: (N, H, W, Cexp_p) in y_dtype and psums: (N, R, 1, Cexp_p) f32."""
    N, Hp, Wp, Cin_p = xp.shape
    K = w_dw.shape[0]
    p = K // 2
    Cexp_p = w_dw.shape[-1]
    R = H // th
    th2p = th + 2 * p

    kernel = _make_expand_dw_kernel(K=K, p=p, th=th, H=H, W=W, Wp=Wp, R=R,
                                    use_expand=use_expand)

    c2 = lambda n, r: (0, 0)
    c3 = lambda n, r: (0, 0, 0)
    hbm = pl.BlockSpec(memory_space=pl.ANY)   # kernel DMAs its own halo'd row slab
    if use_expand:
        in_specs = [hbm,
                    pl.BlockSpec((Cin_p, Cexp_p), c2),     # w_exp
                    pl.BlockSpec((1, Cexp_p), c2),         # bn1 scale
                    pl.BlockSpec((1, Cexp_p), c2),         # bn1 shift
                    pl.BlockSpec((K, K, Cexp_p), c3),      # depthwise weight
                    pl.BlockSpec((1, Cexp_p), c2),         # bn2 scale
                    pl.BlockSpec((1, Cexp_p), c2)]         # bn2 shift
        args = (xp, w_exp, s1, b1, w_dw, s2, b2)
    else:
        in_specs = [hbm,
                    pl.BlockSpec((K, K, Cexp_p), c3),
                    pl.BlockSpec((1, Cexp_p), c2),
                    pl.BlockSpec((1, Cexp_p), c2)]
        args = (xp, w_dw, s2, b2)

    return pl.pallas_call(
        kernel,
        out_shape=(jax.ShapeDtypeStruct((N, H, W, Cexp_p), y_dtype),
                   jax.ShapeDtypeStruct((N, R, 1, Cexp_p), jnp.float32)),
        grid=(N, R),
        in_specs=in_specs,
        out_specs=(pl.BlockSpec((None, th, W, Cexp_p), lambda n, r: (n, r, 0, 0)),
                   pl.BlockSpec((None, None, 1, Cexp_p), lambda n, r: (n, r, 0, 0))),
        scratch_shapes=[pltpu.VMEM((2, th2p, Wp, Cin_p), xp.dtype),
                        pltpu.SemaphoreType.DMA((2,))],
        compiler_params=pltpu.CompilerParams(
            # r must run sequentially (prefetch chain resets at r == 0); n is splittable.
            dimension_semantics=("parallel", "arbitrary"),
            vmem_limit_bytes=vmem_limit),
    )(*args)


# ----------------------------------------------------------------------------
# Kernel C: SE-gate * activation -> projection 1x1 conv + BN (+ residual)
# ----------------------------------------------------------------------------
def _make_proj_kernel(with_residual, dot_dtype):
    def kernel(*refs):
        if with_residual:
            y_ref, g_ref, w_ref, s_ref, b_ref, z_ref, o_ref = refs
        else:
            y_ref, g_ref, w_ref, s_ref, b_ref, o_ref = refs
        # apply the SE gate on the fly (f32), then one lane-dense MXU matmul + folded BN
        yg = (y_ref[...].astype(jnp.float32) * g_ref[...]).astype(dot_dtype)
        o = jnp.dot(yg, w_ref[...], preferred_element_type=jnp.float32)
        o = o * s_ref[...] + b_ref[...]
        if with_residual:
            o = o + z_ref[...]                     # skip connection
        o_ref[...] = o
    return kernel


def project_gate_bn(y3, gate, w, scale, shift, *, tm, residual, dot_dtype, vmem_limit):
    """y3: (N, H*W, Cexp_p); gate: (N, 1, Cexp_p); w: (Cexp_p, Cout_p) -> (N, H*W, Cout_p) f32."""
    N, HW, Cexp_p = y3.shape
    Cout_p = w.shape[1]
    T = pl.cdiv(HW, tm)        # tail tiles are clipped by Pallas: no divisor requirement

    in_specs = [pl.BlockSpec((None, tm, Cexp_p), lambda n, t: (n, t, 0)),
                pl.BlockSpec((None, 1, Cexp_p), lambda n, t: (n, 0, 0)),
                pl.BlockSpec((Cexp_p, Cout_p), lambda n, t: (0, 0)),
                pl.BlockSpec((1, Cout_p), lambda n, t: (0, 0)),
                pl.BlockSpec((1, Cout_p), lambda n, t: (0, 0))]
    args = [y3, gate, w, scale, shift]
    if residual is not None:
        in_specs.append(pl.BlockSpec((None, tm, Cout_p), lambda n, t: (n, t, 0)))
        args.append(residual)

    return pl.pallas_call(
        _make_proj_kernel(residual is not None, dot_dtype),
        out_shape=jax.ShapeDtypeStruct((N, HW, Cout_p), jnp.float32),
        grid=(N, T),
        in_specs=in_specs,
        out_specs=pl.BlockSpec((None, tm, Cout_p), lambda n, t: (n, t, 0)),
        compiler_params=pltpu.CompilerParams(
            dimension_semantics=("parallel", "parallel"),
            vmem_limit_bytes=vmem_limit),
    )(*args)


# ----------------------------------------------------------------------------
# Full MBConv forward (NCHW in / NCHW out, like the PyTorch module)
# ----------------------------------------------------------------------------
def mbconv_forward(x_nchw, P, *, kernel_size, stride, expand_rate,
                   row_tile=None, proj_rows=None, dot_dtype=jnp.bfloat16):
    if stride != 1:
        # TODO(synk): stride > 1 depthwise conv not implemented.
        raise NotImplementedError("only stride=1 MBConv is implemented")

    vmem_limit, step_budget = _tpu_vmem_budgets()

    # TODO(synk): fold the NCHW<->NHWC boundary transposes into kernels A/C.
    x = jnp.transpose(x_nchw, (0, 2, 3, 1)).astype(jnp.float32)     # -> NHWC
    N, H, W, Cin = x.shape
    K = kernel_size
    p = K // 2
    use_expand = expand_rate > 1.0
    Cexp = P["w_dw"].shape[-1]
    planes = P["w_proj"].shape[1]

    # lane-dense channel padding (multiples of 128)
    Cin_p = _round_up(Cin, _LANES)
    Cexp_p = _round_up(Cexp, _LANES)
    Cout_p = _round_up(planes, _LANES)

    in_dtype = dot_dtype if use_expand else jnp.float32   # depthwise-only path stays f32
    in_isz = jnp.dtype(in_dtype).itemsize
    y_dtype = dot_dtype
    Wp = _round_up(W + 2 * p, 16 if in_isz < 4 else 8)    # layout-aligned padded width

    xc = _pad_last(x, Cin_p if use_expand else Cexp_p)
    # zero-pad only the SMALL pre-expansion input; the big expanded tensor makes exactly
    # one HBM round trip (written by A in bf16, read by C).
    xp = jnp.pad(xc, ((0, 0), (p, p), (p, Wp - W - p), (0, 0))).astype(in_dtype)

    if row_tile is None:
        row_tile = _pick_row_tile(H, W, xp.shape[-1], Cexp_p, K, in_isz,
                                  jnp.dtype(y_dtype).itemsize, step_budget)
    # TODO(synk): masked tail row-tiles for non-divisor H.
    assert H % row_tile == 0, "row_tile must divide H"

    if use_expand:
        w_exp = _pad2(P["w_exp"], Cin_p, Cexp_p).astype(dot_dtype)
        s1 = _pad_last(P["bn1_scale"], Cexp_p)
        b1 = _pad_last(P["bn1_shift"], Cexp_p)
    else:
        w_exp = s1 = b1 = None
    w_dw = _pad_last(P["w_dw"], Cexp_p)
    s2 = _pad_last(P["bn2_scale"], Cexp_p)
    b2 = _pad_last(P["bn2_shift"], Cexp_p)

    y, psums = fused_expand_depthwise(
        xp, w_exp, s1, b1, w_dw, s2, b2,
        H=H, W=W, th=row_tile, use_expand=use_expand,
        y_dtype=y_dtype, vmem_limit=vmem_limit)

    # Squeeze-excitation gate: a few hundred FLOPs per image on the partial sums ->
    # plain JAX (a grid=(N,) Pallas kernel would be launch/step-overhead dominated).
    HI = jax.lax.Precision.HIGHEST
    mean = jnp.sum(psums, axis=(1, 2))[:, :Cexp] * (1.0 / float(H * W))       # (N, Cexp)
    h = jnp.dot(mean, P["w_se1"], precision=HI) + P["b_se1"]
    h = h * jax.nn.sigmoid(h)                                                 # Swish
    g = jax.nn.sigmoid(jnp.dot(h, P["w_se2"], precision=HI) + P["b_se2"])     # (N, Cexp)
    gate = _pad_last(g, Cexp_p).reshape(N, 1, Cexp_p).astype(jnp.float32)

    w_proj = _pad2(P["w_proj"], Cexp_p, Cout_p).astype(dot_dtype)
    s3 = _pad_last(P["bn3_scale"], Cout_p)
    b3 = _pad_last(P["bn3_shift"], Cout_p)

    with_skip = (stride == 1) and (planes == Cin)
    if with_skip:
        assert xc.shape[-1] == Cout_p
    if proj_rows is None:
        proj_rows = _pick_proj_rows(H * W, Cexp_p, Cout_p,
                                    jnp.dtype(dot_dtype).itemsize, step_budget)

    y3 = y.reshape(N, H * W, Cexp_p)                                  # free, row-major
    residual = xc.reshape(N, H * W, xc.shape[-1]) if with_skip else None
    # NOTE: _drop_connect in the source discards its result (a no-op), so it is not applied.
    o3 = project_gate_bn(y3, gate, w_proj, s3, b3, tm=proj_rows,
                         residual=residual, dot_dtype=dot_dtype, vmem_limit=vmem_limit)
    out = o3[:, :, :planes].reshape(N, H, W, planes)
    return jnp.transpose(out, (0, 3, 1, 2))                           # -> NCHW


# ----------------------------------------------------------------------------
# Pure-JAX reference.  dot_dtype mirrors where the Pallas path rounds to bf16
# (MXU operands and the single HBM round trip of the expanded activation).
# ----------------------------------------------------------------------------
def mbconv_ref(x_nchw, P, *, kernel_size, stride, dot_dtype=jnp.float32):
    HI = jax.lax.Precision.HIGHEST
    q = lambda a: a.astype(dot_dtype).astype(jnp.float32)
    x = jnp.transpose(x_nchw, (0, 2, 3, 1)).astype(jnp.float32)
    z = x
    y = jnp.einsum("nhwc,ce->nhwe", q(x), q(P["w_exp"]), precision=HI)
    y = y * P["bn1_scale"] + P["bn1_shift"]
    y = y * jax.nn.sigmoid(y)
    K, p = kernel_size, kernel_size // 2
    N, H, W, C = y.shape
    yp = jnp.pad(y, ((0, 0), (p, p), (p, p), (0, 0)))
    acc = jnp.zeros_like(y)
    for kh in range(K):
        for kw in range(K):
            acc = acc + yp[:, kh:kh + H, kw:kw + W, :] * P["w_dw"][kh, kw]
    y = acc * P["bn2_scale"] + P["bn2_shift"]
    y = y * jax.nn.sigmoid(y)
    m = jnp.mean(y, axis=(1, 2), keepdims=True)
    s1 = jnp.einsum("nijc,cs->nijs", m, P["w_se1"], precision=HI) + P["b_se1"]
    s1 = s1 * jax.nn.sigmoid(s1)
    s2 = jnp.einsum("nijs,sc->nijc", s1, P["w_se2"], precision=HI) + P["b_se2"]
    gate = jax.nn.sigmoid(s2)
    yq = q(y)                          # bf16 HBM storage of the expanded activation
    yg = q(yq * gate)                  # gate applied in f32, operand cast for the MXU
    o = jnp.einsum("nhwc,cp->nhwp", yg, q(P["w_proj"]), precision=HI)
    o = o * P["bn3_scale"] + P["bn3_shift"]
    if stride == 1 and o.shape == z.shape:
        o = o + z
    return jnp.transpose(o, (0, 3, 1, 2))


# ----------------------------------------------------------------------------
# Deterministic synthetic parameters (matching the module's __init__ shapes)
# ----------------------------------------------------------------------------
def init_params(key, inplanes, planes, kernel_size, expand_rate, se_rate, eps=1e-3):
    expand_planes = int(inplanes * expand_rate)
    se_planes = max(1, int(inplanes * se_rate))
    ks = jax.random.split(key, 19)

    def bn_fold(kg, kb, km, kv, c):
        gamma = jax.random.uniform(kg, (1, c), minval=0.5, maxval=1.5)
        beta = jax.random.normal(kb, (1, c)) * 0.1
        rmean = jax.random.normal(km, (1, c)) * 0.1
        rvar = jax.random.uniform(kv, (1, c), minval=0.5, maxval=1.5)
        scale = gamma / jnp.sqrt(rvar + eps)
        shift = beta - rmean * scale
        return scale.astype(jnp.float32), shift.astype(jnp.float32)

    P = {}
    P["w_exp"] = (jax.random.normal(ks[0], (inplanes, expand_planes)) * 0.3).astype(jnp.float32)
    P["bn1_scale"], P["bn1_shift"] = bn_fold(ks[1], ks[2], ks[3], ks[4], expand_planes)
    P["w_dw"] = (jax.random.normal(ks[5], (kernel_size, kernel_size, expand_planes)) * 0.3).astype(jnp.float32)
    P["bn2_scale"], P["bn2_shift"] = bn_fold(ks[6], ks[7], ks[8], ks[9], expand_planes)
    P["w_se1"] = (jax.random.normal(ks[10], (expand_planes, se_planes)) * 0.3).astype(jnp.float32)
    P["b_se1"] = (jax.random.normal(ks[11], (1, se_planes)) * 0.1).astype(jnp.float32)
    P["w_se2"] = (jax.random.normal(ks[12], (se_planes, expand_planes)) * 0.3).astype(jnp.float32)
    P["b_se2"] = (jax.random.normal(ks[13], (1, expand_planes)) * 0.1).astype(jnp.float32)
    P["w_proj"] = (jax.random.normal(ks[14], (expand_planes, planes)) * 0.3).astype(jnp.float32)
    P["bn3_scale"], P["bn3_shift"] = bn_fold(ks[15], ks[16], ks[17], ks[18], planes)
    return P


if __name__ == "__main__":
    # MBConv(inplanes=4, planes=4, kernel_size=3, stride=1, expand_rate=2.0, se_rate=0.25)
    inplanes, planes, ksize, stride = 4, 4, 3, 1
    expand_rate, se_rate = 2.0, 0.25
    N, H, W = 2, 16, 16

    key = jax.random.PRNGKey(0)
    kx, kp = jax.random.split(key)
    x = jax.random.normal(kx, (N, inplanes, H, W), dtype=jnp.float32)   # NCHW, like PyTorch
    P = init_params(kp, inplanes, planes, ksize, expand_rate, se_rate)

    fwd = jax.jit(mbconv_forward,
                  static_argnames=("kernel_size", "stride", "expand_rate",
                                   "row_tile", "proj_rows", "dot_dtype"))

    # 1) perf-default path: bf16 MXU operands + bf16 HBM round trip of the expanded
    #    activation, auto (generation-aware) tile sizes.
    out_bf = fwd(x, P, kernel_size=ksize, stride=stride, expand_rate=expand_rate,
                 dot_dtype=jnp.bfloat16)
    out_bf = jax.block_until_ready(out_bf)
    assert out_bf.shape == (N, planes, H, W)
    ref_bf = mbconv_ref(x, P, kernel_size=ksize, stride=stride, dot_dtype=jnp.bfloat16)
    err_bf = float(jnp.max(jnp.abs(out_bf - ref_bf)))
    assert err_bf < 2e-3, f"bf16-mode max abs err {err_bf}"

    # 2) f32 path with forced small tiles: exercises the halo'd slab prefetch chain
    #    (R = 2 row tiles per image) and the multi-tile SE partial-sum path.
    out_f32 = fwd(x, P, kernel_size=ksize, stride=stride, expand_rate=expand_rate,
                  row_tile=8, proj_rows=64, dot_dtype=jnp.float32)
    out_f32 = jax.block_until_ready(out_f32)
    ref_f32 = mbconv_ref(x, P, kernel_size=ksize, stride=stride, dot_dtype=jnp.float32)
    err_f32 = float(jnp.max(jnp.abs(out_f32 - ref_f32)))
    assert err_f32 < 1e-3, f"f32-mode max abs err {err_f32}"

    print("KERNEL_OK")
</pallas_src>

<mosaic_0001>
module attributes {stable_mosaic.version = 11 : i64} {
  func.func @kernel(%arg0: i32, %arg1: i32, %arg2: memref<2x18x32x128xbf16, #tpu.memory_space<any>>, %arg3: memref<128x128xbf16, #tpu.memory_space<vmem>>, %arg4: memref<1x128xf32, #tpu.memory_space<vmem>>, %arg5: memref<1x128xf32, #tpu.memory_space<vmem>>, %arg6: memref<3x3x128xf32, #tpu.memory_space<vmem>>, %arg7: memref<1x128xf32, #tpu.memory_space<vmem>>, %arg8: memref<1x128xf32, #tpu.memory_space<vmem>>, %arg9: memref<1x16x16x128xbf16, #tpu.memory_space<vmem>>, %arg10: memref<1x1x1x128xf32, #tpu.memory_space<vmem>>, %arg11: memref<2x18x32x128xbf16, #tpu.memory_space<vmem>>, %arg12: memref<2x!tpu.dma_semaphore, #tpu.memory_space<semaphore_mem>>) attributes {dimension_semantics = [#tpu.dimension_semantics<parallel>, #tpu.dimension_semantics<arbitrary>], iteration_bounds = array<i64: 2, 1>, scalar_prefetch = 0 : i64, scratch_operands = 2 : i64, tpu.core_type = #tpu.core_type<tc>, window_params = [{}, {pipeline_mode = #tpu.pipeline_mode<synchronous>, transform_indices = @transform_1, window_bounds = array<i64: 128, 128>}, {pipeline_mode = #tpu.pipeline_mode<synchronous>, transform_indices = @transform_2, window_bounds = array<i64: 1, 128>}, {pipeline_mode = #tpu.pipeline_mode<synchronous>, transform_indices = @transform_3, window_bounds = array<i64: 1, 128>}, {pipeline_mode = #tpu.pipeline_mode<synchronous>, transform_indices = @transform_4, window_bounds = array<i64: 3, 3, 128>}, {pipeline_mode = #tpu.pipeline_mode<synchronous>, transform_indices = @transform_5, window_bounds = array<i64: 1, 128>}, {pipeline_mode = #tpu.pipeline_mode<synchronous>, transform_indices = @transform_6, window_bounds = array<i64: 1, 128>}, {transform_indices = @transform_7, window_bounds = array<i64: 1, 16, 16, 128>}, {transform_indices = @transform_8, window_bounds = array<i64: 1, 1, 1, 128>}]} {
    %c0_i32 = arith.constant 0 : i32
    %0 = arith.cmpi eq, %arg1, %c0_i32 : i32
    %1 = arith.extui %0 : i1 to i32
    %c0_i32_0 = arith.constant 0 : i32
    %2 = arith.cmpi ne, %1, %c0_i32_0 : i32
    scf.if %2 {
      %c16_i32_44 = arith.constant 16 : i32
      %153 = arith.muli %arg1, %c16_i32_44 : i32
      %154 = tpu.assume_multiple %153, 16 : i32
      %c0_i32_45 = arith.constant 0 : i32
      %c0_i32_46 = arith.constant 0 : i32
      %c0_i32_47 = arith.constant 0 : i32
      %c0_i32_48 = arith.constant 0 : i32
      %155 = tpu.memref_slice %arg2[%arg0, %154, %c0_i32_47, %c0_i32_48] : memref<2x18x32x128xbf16, #tpu.memory_space<any>> -> memref<1x18x32x128xbf16, #tpu.memory_space<any>>
      %156 = tpu.memref_squeeze %155 : memref<1x18x32x128xbf16, #tpu.memory_space<any>> -> memref<18x32x128xbf16, #tpu.memory_space<any>>
      %c0_i32_49 = arith.constant 0 : i32
      %c0_i32_50 = arith.constant 0 : i32
      %c0_i32_51 = arith.constant 0 : i32
      %157 = tpu.memref_slice %arg11[%c0_i32_45, %c0_i32_49, %c0_i32_50, %c0_i32_51] : memref<2x18x32x128xbf16, #tpu.memory_space<vmem>> -> memref<1x18x32x128xbf16, #tpu.memory_space<vmem>>
      %158 = tpu.memref_squeeze %157 : memref<1x18x32x128xbf16, #tpu.memory_space<vmem>> -> memref<18x32x128xbf16, #tpu.memory_space<vmem>>
      %159 = tpu.memref_slice %arg12[%c0_i32_46] : memref<2x!tpu.dma_semaphore, #tpu.memory_space<semaphore_mem>> -> memref<1x!tpu.dma_semaphore, #tpu.memory_space<semaphore_mem>>
      %160 = tpu.memref_squeeze %159 : memref<1x!tpu.dma_semaphore, #tpu.memory_space<semaphore_mem>> -> memref<!tpu.dma_semaphore, #tpu.memory_space<semaphore_mem>>
      tpu.enqueue_dma source(%156 : memref<18x32x128xbf16, #tpu.memory_space<any>>) target(%158 : memref<18x32x128xbf16, #tpu.memory_space<vmem>>) target_semaphore(%160 : memref<!tpu.dma_semaphore, #tpu.memory_space<semaphore_mem>>)
    } else {
    }
    %c1_i32 = arith.constant 1 : i32
    %3 = arith.addi %arg1, %c1_i32 : i32
    %c1_i32_1 = arith.constant 1 : i32
    %4 = arith.cmpi slt, %3, %c1_i32_1 : i32
    %5 = arith.extui %4 : i1 to i32
    %c0_i32_2 = arith.constant 0 : i32
    %6 = arith.cmpi ne, %5, %c0_i32_2 : i32
    scf.if %6 {
      %c1_i32_44 = arith.constant 1 : i32
      %153 = arith.addi %arg1, %c1_i32_44 : i32
      %c1_i32_45 = arith.constant 1 : i32
      %154 = arith.addi %arg1, %c1_i32_45 : i32
      %c2_i32_46 = arith.constant 2 : i32
      %c0_i32_47 = arith.constant 0 : i32
      %155 = arith.cmpi eq, %c2_i32_46, %c0_i32_47 : i32
      %c1_i32_48 = arith.constant 1 : i32
      %156 = arith.select %155, %c1_i32_48, %c2_i32_46 : i32
      %157 = arith.remsi %154, %156 : i32
      %c0_i32_49 = arith.constant 0 : i32
      %158 = arith.cmpi ne, %157, %c0_i32_49 : i32
      %c0_i32_50 = arith.constant 0 : i32
      %159 = arith.cmpi slt, %157, %c0_i32_50 : i32
      %c0_i32_51 = arith.constant 0 : i32
      %160 = arith.cmpi slt, %156, %c0_i32_51 : i32
      %161 = arith.xori %159, %160 : i1
      %162 = arith.andi %161, %158 : i1
      %163 = arith.addi %157, %156 : i32
      %164 = arith.select %162, %163, %157 : i32
      %c16_i32_52 = arith.constant 16 : i32
      %165 = arith.muli %153, %c16_i32_52 : i32
      %166 = tpu.assume_multiple %165, 16 : i32
      %c0_i32_53 = arith.constant 0 : i32
      %c0_i32_54 = arith.constant 0 : i32
      %167 = tpu.memref_slice %arg2[%arg0, %166, %c0_i32_53, %c0_i32_54] : memref<2x18x32x128xbf16, #tpu.memory_space<any>> -> memref<1x18x32x128xbf16, #tpu.memory_space<any>>
      %168 = tpu.memref_squeeze %167 : memref<1x18x32x128xbf16, #tpu.memory_space<any>> -> memref<18x32x128xbf16, #tpu.memory_space<any>>
      %c0_i32_55 = arith.constant 0 : i32
      %c0_i32_56 = arith.constant 0 : i32
      %c0_i32_57 = arith.constant 0 : i32
      %169 = tpu.memref_slice %arg11[%164, %c0_i32_55, %c0_i32_56, %c0_i32_57] : memref<2x18x32x128xbf16, #tpu.memory_space<vmem>> -> memref<1x18x32x128xbf16, #tpu.memory_space<vmem>>
      %170 = tpu.memref_squeeze %169 : memref<1x18x32x128xbf16, #tpu.memory_space<vmem>> -> memref<18x32x128xbf16, #tpu.memory_space<vmem>>
      %171 = tpu.memref_slice %arg12[%164] : memref<2x!tpu.dma_semaphore, #tpu.memory_space<semaphore_mem>> -> memref<1x!tpu.dma_semaphore, #tpu.memory_space<semaphore_mem>>
      %172 = tpu.memref_squeeze %171 : memref<1x!tpu.dma_semaphore, #tpu.memory_space<semaphore_mem>> -> memref<!tpu.dma_semaphore, #tpu.memory_space<semaphore_mem>>
      tpu.enqueue_dma source(%168 : memref<18x32x128xbf16, #tpu.memory_space<any>>) target(%170 : memref<18x32x128xbf16, #tpu.memory_space<vmem>>) target_semaphore(%172 : memref<!tpu.dma_semaphore, #tpu.memory_space<semaphore_mem>>)
    } else {
    }
    %c2_i32 = arith.constant 2 : i32
    %c0_i32_3 = arith.constant 0 : i32
    %7 = arith.cmpi eq, %c2_i32, %c0_i32_3 : i32
    %c1_i32_4 = arith.constant 1 : i32
    %8 = arith.select %7, %c1_i32_4, %c2_i32 : i32
    %9 = arith.remsi %arg1, %8 : i32
    %c0_i32_5 = arith.constant 0 : i32
    %10 = arith.cmpi ne, %9, %c0_i32_5 : i32
    %c0_i32_6 = arith.constant 0 : i32
    %11 = arith.cmpi slt, %9, %c0_i32_6 : i32
    %c0_i32_7 = arith.constant 0 : i32
    %12 = arith.cmpi slt, %8, %c0_i32_7 : i32
    %13 = arith.xori %11, %12 : i1
    %14 = arith.andi %13, %10 : i1
    %15 = arith.addi %9, %8 : i32
    %16 = arith.select %14, %15, %9 : i32
    %c16_i32 = arith.constant 16 : i32
    %17 = arith.muli %arg1, %c16_i32 : i32
    %18 = tpu.assume_multiple %17, 16 : i32
    %c0_i32_8 = arith.constant 0 : i32
    %c0_i32_9 = arith.constant 0 : i32
    %19 = tpu.memref_slice %arg2[%arg0, %18, %c0_i32_8, %c0_i32_9] : memref<2x18x32x128xbf16, #tpu.memory_space<any>> -> memref<1x18x32x128xbf16, #tpu.memory_space<any>>
    %20 = tpu.memref_squeeze %19 : memref<1x18x32x128xbf16, #tpu.memory_space<any>> -> memref<18x32x128xbf16, #tpu.memory_space<any>>
    %c0_i32_10 = arith.constant 0 : i32
    %c0_i32_11 = arith.constant 0 : i32
    %c0_i32_12 = arith.constant 0 : i32
    %21 = tpu.memref_slice %arg11[%16, %c0_i32_10, %c0_i32_11, %c0_i32_12] : memref<2x18x32x128xbf16, #tpu.memory_space<vmem>> -> memref<1x18x32x128xbf16, #tpu.memory_space<vmem>>
    %22 = tpu.memref_squeeze %21 : memref<1x18x32x128xbf16, #tpu.memory_space<vmem>> -> memref<18x32x128xbf16, #tpu.memory_space<vmem>>
    %23 = tpu.memref_slice %arg12[%16] : memref<2x!tpu.dma_semaphore, #tpu.memory_space<semaphore_mem>> -> memref<1x!tpu.dma_semaphore, #tpu.memory_space<semaphore_mem>>
    %24 = tpu.memref_squeeze %23 : memref<1x!tpu.dma_semaphore, #tpu.memory_space<semaphore_mem>> -> memref<!tpu.dma_semaphore, #tpu.memory_space<semaphore_mem>>
    tpu.wait_dma2 semaphore(%24 : memref<!tpu.dma_semaphore, #tpu.memory_space<semaphore_mem>>) src(%20 : memref<18x32x128xbf16, #tpu.memory_space<any>>) dst(%22 : memref<18x32x128xbf16, #tpu.memory_space<vmem>>)
    %25 = arith.index_cast %16 : i32 to index
    %c0 = arith.constant 0 : index
    %c0_13 = arith.constant 0 : index
    %c0_14 = arith.constant 0 : index
    %26 = vector.load %arg11[%25, %c0, %c0_13, %c0_14] : memref<2x18x32x128xbf16, #tpu.memory_space<vmem>>, vector<1x18x32x128xbf16>
    %27 = vector.shape_cast %26 : vector<1x18x32x128xbf16> to vector<18x32x128xbf16>
    %28 = vector.shape_cast %27 : vector<18x32x128xbf16> to vector<576x128xbf16>
    %c0_15 = arith.constant 0 : index
    %c0_16 = arith.constant 0 : index
    %29 = vector.load %arg3[%c0_15, %c0_16] : memref<128x128xbf16, #tpu.memory_space<vmem>>, vector<128x128xbf16>
    %cst = arith.constant dense<0.000000e+00> : vector<576x128xf32>
    %30 = tpu.matmul %28, %29, %cst {dimension_numbers = #tpu.dot_dimension_numbers<[1], [0], [0], [1], [0, 0, 1, 1], [], []>} : vector<576x128xbf16>, vector<128x128xbf16>, vector<576x128xf32> -> vector<576x128xf32>
    %c0_17 = arith.constant 0 : index
    %c0_18 = arith.constant 0 : index
    %31 = vector.load %arg4[%c0_17, %c0_18] : memref<1x128xf32, #tpu.memory_space<vmem>>, vector<1x128xf32>
    %32 = vector.broadcast %31 : vector<1x128xf32> to vector<576x128xf32>
    %33 = arith.mulf %30, %32 : vector<576x128xf32>
    %c0_19 = arith.constant 0 : index
    %c0_20 = arith.constant 0 : index
    %34 = vector.load %arg5[%c0_19, %c0_20] : memref<1x128xf32, #tpu.memory_space<vmem>>, vector<1x128xf32>
    %35 = vector.broadcast %34 : vector<1x128xf32> to vector<576x128xf32>
    %36 = arith.addf %33, %35 : vector<576x128xf32>
    %37 = arith.negf %36 : vector<576x128xf32>
    %38 = math.exp %37 : vector<576x128xf32>
    %cst_21 = arith.constant 1.000000e+00 : f32
    %39 = vector.broadcast %cst_21 : f32 to vector<576x128xf32>
    %40 = arith.addf %39, %38 : vector<576x128xf32>
    %41 = arith.divf %39, %40 : vector<576x128xf32>
    %42 = arith.mulf %36, %41 : vector<576x128xf32>
    %43 = vector.shape_cast %42 : vector<576x128xf32> to vector<18x32x128xf32>
    %44 = tpu.iota {dimensions = array<i32: 0>} : vector<18x32x1xi32>
    %45 = vector.broadcast %18 : i32 to vector<18x32x1xi32>
    %46 = arith.addi %44, %45 : vector<18x32x1xi32>
    %47 = tpu.iota {dimensions = array<i32: 1>} : vector<18x32x1xi32>
    %c1_i32_22 = arith.constant 1 : i32
    %48 = vector.broadcast %c1_i32_22 : i32 to vector<18x32x1xi32>
    %49 = arith.cmpi sge, %46, %48 : vector<18x32x1xi32>
    %c17_i32 = arith.constant 17 : i32
    %50 = vector.broadcast %c17_i32 : i32 to vector<18x32x1xi32>
    %51 = arith.cmpi slt, %46, %50 : vector<18x32x1xi32>
    %52 = arith.andi %49, %51 : vector<18x32x1xi1>
    %c1_i32_23 = arith.constant 1 : i32
    %53 = vector.broadcast %c1_i32_23 : i32 to vector<18x32x1xi32>
    %54 = arith.cmpi sge, %47, %53 : vector<18x32x1xi32>
    %55 = arith.andi %52, %54 : vector<18x32x1xi1>
    %c17_i32_24 = arith.constant 17 : i32
    %56 = vector.broadcast %c17_i32_24 : i32 to vector<18x32x1xi32>
    %57 = arith.cmpi slt, %47, %56 : vector<18x32x1xi32>
    %58 = arith.andi %55, %57 : vector<18x32x1xi1>
    %cst_25 = arith.constant 0.000000e+00 : f32
    %59 = vector.shape_cast %58 : vector<18x32x1xi1> to vector<18x32x1xi1>
    %60 = vector.broadcast %59 : vector<18x32x1xi1> to vector<18x32x128xi1>
    %61 = vector.broadcast %cst_25 : f32 to vector<18x32x128xf32>
    %62 = arith.select %60, %43, %61 : vector<18x32x128xi1>, vector<18x32x128xf32>
    %c0_26 = arith.constant 0 : index
    %c0_27 = arith.constant 0 : index
    %c0_28 = arith.constant 0 : index
    %63 = vector.load %arg6[%c0_26, %c0_27, %c0_28] : memref<3x3x128xf32, #tpu.memory_space<vmem>>, vector<3x3x128xf32>
    %c0_29 = arith.constant 0 : index
    %c0_30 = arith.constant 0 : index
    %64 = vector.load %arg7[%c0_29, %c0_30] : memref<1x128xf32, #tpu.memory_space<vmem>>, vector<1x128xf32>
    %c0_31 = arith.constant 0 : index
    %c0_32 = arith.constant 0 : index
    %65 = vector.load %arg8[%c0_31, %c0_32] : memref<1x128xf32, #tpu.memory_space<vmem>>, vector<1x128xf32>
    %66 = vector.extract_strided_slice %62 {offsets = [0, 0, 0], sizes = [18, 16, 128], strides = [1, 1, 1]} : vector<18x32x128xf32> to vector<18x16x128xf32>
    %67 = vector.extract_strided_slice %66 {offsets = [0, 0, 0], sizes = [16, 16, 128], strides = [1, 1, 1]} : vector<18x16x128xf32> to vector<16x16x128xf32>
    %68 = vector.extract_strided_slice %63 {offsets = [0, 0, 0], sizes = [1, 1, 128], strides = [1, 1, 1]} : vector<3x3x128xf32> to vector<1x1x128xf32>
    %69 = vector.shape_cast %68 : vector<1x1x128xf32> to vector<128xf32>
    %70 = vector.shape_cast %69 : vector<128xf32> to vector<1x1x128xf32>
    %71 = vector.broadcast %70 : vector<1x1x128xf32> to vector<16x16x128xf32>
    %72 = arith.mulf %67, %71 : vector<16x16x128xf32>
    %73 = vector.extract_strided_slice %66 {offsets = [1, 0, 0], sizes = [16, 16, 128], strides = [1, 1, 1]} : vector<18x16x128xf32> to vector<16x16x128xf32>
    %74 = vector.extract_strided_slice %63 {offsets = [1, 0, 0], sizes = [1, 1, 128], strides = [1, 1, 1]} : vector<3x3x128xf32> to vector<1x1x128xf32>
    %75 = vector.shape_cast %74 : vector<1x1x128xf32> to vector<128xf32>
    %76 = vector.shape_cast %75 : vector<128xf32> to vector<1x1x128xf32>
    %77 = vector.broadcast %76 : vector<1x1x128xf32> to vector<16x16x128xf32>
    %78 = arith.mulf %73, %77 : vector<16x16x128xf32>
    %79 = arith.addf %72, %78 : vector<16x16x128xf32>
    %80 = vector.extract_strided_slice %66 {offsets = [2, 0, 0], sizes = [16, 16, 128], strides = [1, 1, 1]} : vector<18x16x128xf32> to vector<16x16x128xf32>
    %81 = vector.extract_strided_slice %63 {offsets = [2, 0, 0], sizes = [1, 1, 128], strides = [1, 1, 1]} : vector<3x3x128xf32> to vector<1x1x128xf32>
    %82 = vector.shape_cast %81 : vector<1x1x128xf32> to vector<128xf32>
    %83 = vector.shape_cast %82 : vector<128xf32> to vector<1x1x128xf32>
    %84 = vector.broadcast %83 : vector<1x1x128xf32> to vector<16x16x128xf32>
    %85 = arith.mulf %80, %84 : vector<16x16x128xf32>
    %86 = arith.addf %79, %85 : vector<16x16x128xf32>
    %87 = vector.extract_strided_slice %62 {offsets = [0, 1, 0], sizes = [18, 16, 128], strides = [1, 1, 1]} : vector<18x32x128xf32> to vector<18x16x128xf32>
    %88 = vector.extract_strided_slice %87 {offsets = [0, 0, 0], sizes = [16, 16, 128], strides = [1, 1, 1]} : vector<18x16x128xf32> to vector<16x16x128xf32>
    %89 = vector.extract_strided_slice %63 {offsets = [0, 1, 0], sizes = [1, 1, 128], strides = [1, 1, 1]} : vector<3x3x128xf32> to vector<1x1x128xf32>
    %90 = vector.shape_cast %89 : vector<1x1x128xf32> to vector<128xf32>
    %91 = vector.shape_cast %90 : vector<128xf32> to vector<1x1x128xf32>
    %92 = vector.broadcast %91 : vector<1x1x128xf32> to vector<16x16x128xf32>
    %93 = arith.mulf %88, %92 : vector<16x16x128xf32>
    %94 = arith.addf %86, %93 : vector<16x16x128xf32>
    %95 = vector.extract_strided_slice %87 {offsets = [1, 0, 0], sizes = [16, 16, 128], strides = [1, 1, 1]} : vector<18x16x128xf32> to vector<16x16x128xf32>
    %96 = vector.extract_strided_slice %63 {offsets = [1, 1, 0], sizes = [1, 1, 128], strides = [1, 1, 1]} : vector<3x3x128xf32> to vector<1x1x128xf32>
    %97 = vector.shape_cast %96 : vector<1x1x128xf32> to vector<128xf32>
    %98 = vector.shape_cast %97 : vector<128xf32> to vector<1x1x128xf32>
    %99 = vector.broadcast %98 : vector<1x1x128xf32> to vector<16x16x128xf32>
    %100 = arith.mulf %95, %99 : vector<16x16x128xf32>
    %101 = arith.addf %94, %100 : vector<16x16x128xf32>
    %102 = vector.extract_strided_slice %87 {offsets = [2, 0, 0], sizes = [16, 16, 128], strides = [1, 1, 1]} : vector<18x16x128xf32> to vector<16x16x128xf32>
    %103 = vector.extract_strided_slice %63 {offsets = [2, 1, 0], sizes = [1, 1, 128], strides = [1, 1, 1]} : vector<3x3x128xf32> to vector<1x1x128xf32>
    %104 = vector.shape_cast %103 : vector<1x1x128xf32> to vector<128xf32>
    %105 = vector.shape_cast %104 : vector<128xf32> to vector<1x1x128xf32>
    %106 = vector.broadcast %105 : vector<1x1x128xf32> to vector<16x16x128xf32>
    %107 = arith.mulf %102, %106 : vector<16x16x128xf32>
    %108 = arith.addf %101, %107 : vector<16x16x128xf32>
    %109 = vector.extract_strided_slice %62 {offsets = [0, 2, 0], sizes = [18, 16, 128], strides = [1, 1, 1]} : vector<18x32x128xf32> to vector<18x16x128xf32>
    %110 = vector.extract_strided_slice %109 {offsets = [0, 0, 0], sizes = [16, 16, 128], strides = [1, 1, 1]} : vector<18x16x128xf32> to vector<16x16x128xf32>
    %111 = vector.extract_strided_slice %63 {offsets = [0, 2, 0], sizes = [1, 1, 128], strides = [1, 1, 1]} : vector<3x3x128xf32> to vector<1x1x128xf32>
    %112 = vector.shape_cast %111 : vector<1x1x128xf32> to vector<128xf32>
    %113 = vector.shape_cast %112 : vector<128xf32> to vector<1x1x128xf32>
    %114 = vector.broadcast %113 : vector<1x1x128xf32> to vector<16x16x128xf32>
    %115 = arith.mulf %110, %114 : vector<16x16x128xf32>
    %116 = arith.addf %108, %115 : vector<16x16x128xf32>
    %117 = vector.extract_strided_slice %109 {offsets = [1, 0, 0], sizes = [16, 16, 128], strides = [1, 1, 1]} : vector<18x16x128xf32> to vector<16x16x128xf32>
    %118 = vector.extract_strided_slice %63 {offsets = [1, 2, 0], sizes = [1, 1, 128], strides = [1, 1, 1]} : vector<3x3x128xf32> to vector<1x1x128xf32>
    %119 = vector.shape_cast %118 : vector<1x1x128xf32> to vector<128xf32>
    %120 = vector.shape_cast %119 : vector<128xf32> to vector<1x1x128xf32>
    %121 = vector.broadcast %120 : vector<1x1x128xf32> to vector<16x16x128xf32>
    %122 = arith.mulf %117, %121 : vector<16x16x128xf32>
    %123 = arith.addf %116, %122 : vector<16x16x128xf32>
    %124 = vector.extract_strided_slice %109 {offsets = [2, 0, 0], sizes = [16, 16, 128], strides = [1, 1, 1]} : vector<18x16x128xf32> to vector<16x16x128xf32>
    %125 = vector.extract_strided_slice %63 {offsets = [2, 2, 0], sizes = [1, 1, 128], strides = [1, 1, 1]} : vector<3x3x128xf32> to vector<1x1x128xf32>
    %126 = vector.shape_cast %125 : vector<1x1x128xf32> to vector<128xf32>
    %127 = vector.shape_cast %126 : vector<128xf32> to vector<1x1x128xf32>
    %128 = vector.broadcast %127 : vector<1x1x128xf32> to vector<16x16x128xf32>
    %129 = arith.mulf %124, %128 : vector<16x16x128xf32>
    %130 = arith.addf %123, %129 : vector<16x16x128xf32>
    %131 = vector.shape_cast %64 : vector<1x128xf32> to vector<1x1x128xf32>
    %132 = vector.broadcast %131 : vector<1x1x128xf32> to vector<16x16x128xf32>
    %133 = arith.mulf %130, %132 : vector<16x16x128xf32>
    %134 = vector.shape_cast %65 : vector<1x128xf32> to vector<1x1x128xf32>
    %135 = vector.broadcast %134 : vector<1x1x128xf32> to vector<16x16x128xf32>
    %136 = arith.addf %133, %135 : vector<16x16x128xf32>
    %137 = arith.negf %136 : vector<16x16x128xf32>
    %138 = math.exp %137 : vector<16x16x128xf32>
    %cst_33 = arith.constant 1.000000e+00 : f32
    %139 = vector.broadcast %cst_33 : f32 to vector<16x16x128xf32>
    %140 = arith.addf %139, %138 : vector<16x16x128xf32>
    %141 = arith.divf %139, %140 : vector<16x16x128xf32>
    %142 = arith.mulf %136, %141 : vector<16x16x128xf32>
    %143 = arith.truncf %142 : vector<16x16x128xf32> to vector<16x16x128xbf16>
    %c0_34 = arith.constant 0 : index
    %c0_35 = arith.constant 0 : index
    %c0_36 = arith.constant 0 : index
    %c0_37 = arith.constant 0 : index
    %144 = vector.load %arg9[%c0_34, %c0_35, %c0_36, %c0_37] : memref<1x16x16x128xbf16, #tpu.memory_space<vmem>>, vector<1x16x16x128xbf16>
    %145 = vector.shape_cast %144 : vector<1x16x16x128xbf16> to vector<16x16x128xbf16>
    %146 = vector.shape_cast %143 : vector<16x16x128xbf16> to vector<1x16x16x128xbf16>
    tpu.vector_store %arg9[%c0_34, %c0_35, %c0_36, %c0_37], %146 {strides = array<i32>} : memref<1x16x16x128xbf16, #tpu.memory_space<vmem>>, vector<1x16x16x128xbf16>,
    %cst_38 = arith.constant dense<0.000000e+00> : vector<16x128xf32>
    %147 = vector.multi_reduction <add>, %142, %cst_38 [0] : vector<16x16x128xf32> to vector<16x128xf32>
    %cst_39 = arith.constant dense<0.000000e+00> : vector<128xf32>
    %148 = vector.multi_reduction <add>, %147, %cst_39 [0] : vector<16x128xf32> to vector<128xf32>
    %149 = vector.shape_cast %148 : vector<128xf32> to vector<1x128xf32>
    %c0_40 = arith.constant 0 : index
    %c0_41 = arith.constant 0 : index
    %c0_42 = arith.constant 0 : index
    %c0_43 = arith.constant 0 : index
    %150 = vector.load %arg10[%c0_40, %c0_41, %c0_42, %c0_43] : memref<1x1x1x128xf32, #tpu.memory_space<vmem>>, vector<1x1x1x128xf32>
    %151 = vector.shape_cast %150 : vector<1x1x1x128xf32> to vector<1x128xf32>
    %152 = vector.shape_cast %149 : vector<1x128xf32> to vector<1x1x1x128xf32>
    tpu.vector_store %arg10[%c0_40, %c0_41, %c0_42, %c0_43], %152 {strides = array<i32>} : memref<1x1x1x128xf32, #tpu.memory_space<vmem>>, vector<1x1x1x128xf32>,
    return
  }
  func.func @transform_1(%arg0: i32, %arg1: i32) -> (i32, i32) {
    %c0_i32 = arith.constant 0 : i32
    %c0_i32_0 = arith.constant 0 : i32
    %c0_i32_1 = arith.constant 0 : i32
    return %c0_i32, %c0_i32_0 : i32, i32
  }
  func.func @transform_2(%arg0: i32, %arg1: i32) -> (i32, i32) {
    %c0_i32 = arith.constant 0 : i32
    %c0_i32_0 = arith.constant 0 : i32
    %c0_i32_1 = arith.constant 0 : i32
    return %c0_i32, %c0_i32_0 : i32, i32
  }
  func.func @transform_3(%arg0: i32, %arg1: i32) -> (i32, i32) {
    %c0_i32 = arith.constant 0 : i32
    %c0_i32_0 = arith.constant 0 : i32
    %c0_i32_1 = arith.constant 0 : i32
    return %c0_i32, %c0_i32_0 : i32, i32
  }
  func.func @transform_4(%arg0: i32, %arg1: i32) -> (i32, i32, i32) {
    %c0_i32 = arith.constant 0 : i32
    %c0_i32_0 = arith.constant 0 : i32
    %c0_i32_1 = arith.constant 0 : i32
    %c0_i32_2 = arith.constant 0 : i32
    return %c0_i32, %c0_i32_0, %c0_i32_1 : i32, i32, i32
  }
  func.func @transform_5(%arg0: i32, %arg1: i32) -> (i32, i32) {
    %c0_i32 = arith.constant 0 : i32
    %c0_i32_0 = arith.constant 0 : i32
    %c0_i32_1 = arith.constant 0 : i32
    return %c0_i32, %c0_i32_0 : i32, i32
  }
  func.func @transform_6(%arg0: i32, %arg1: i32) -> (i32, i32) {
    %c0_i32 = arith.constant 0 : i32
    %c0_i32_0 = arith.constant 0 : i32
    %c0_i32_1 = arith.constant 0 : i32
    return %c0_i32, %c0_i32_0 : i32, i32
  }
  func.func @transform_7(%arg0: i32, %arg1: i32) -> (i32, i32, i32, i32) {
    %c0_i32 = arith.constant 0 : i32
    %c0_i32_0 = arith.constant 0 : i32
    %c0_i32_1 = arith.constant 0 : i32
    return %arg0, %arg1, %c0_i32, %c0_i32_0 : i32, i32, i32, i32
  }
  func.func @transform_8(%arg0: i32, %arg1: i32) -> (i32, i32, i32, i32) {
    %c0_i32 = arith.constant 0 : i32
    %c0_i32_0 = arith.constant 0 : i32
    %c0_i32_1 = arith.constant 0 : i32
    return %arg0, %arg1, %c0_i32, %c0_i32_0 : i32, i32, i32, i32
  }
}

module attributes {stable_mosaic.version = 11 : i64} {
  func.func @kernel(%arg0: i32, %arg1: i32, %arg2: memref<1x256x128xbf16, #tpu.memory_space<vmem>>, %arg3: memref<1x1x128xf32, #tpu.memory_space<vmem>>, %arg4: memref<128x128xbf16, #tpu.memory_space<vmem>>, %arg5: memref<1x128xf32, #tpu.memory_space<vmem>>, %arg6: memref<1x128xf32, #tpu.memory_space<vmem>>, %arg7: memref<1x256x128xf32, #tpu.memory_space<vmem>>, %arg8: memref<1x256x128xf32, #tpu.memory_space<vmem>>) attributes {dimension_semantics = [#tpu.dimension_semantics<parallel>, #tpu.dimension_semantics<parallel>], iteration_bounds = array<i64: 2, 1>, scalar_prefetch = 0 : i64, scratch_operands = 0 : i64, tpu.core_type = #tpu.core_type<tc>, window_params = [{transform_indices = @transform_0, window_bounds = array<i64: 1, 256, 128>}, {transform_indices = @transform_1, window_bounds = array<i64: 1, 1, 128>}, {pipeline_mode = #tpu.pipeline_mode<synchronous>, transform_indices = @transform_2, window_bounds = array<i64: 128, 128>}, {pipeline_mode = #tpu.pipeline_mode<synchronous>, transform_indices = @transform_3, window_bounds = array<i64: 1, 128>}, {pipeline_mode = #tpu.pipeline_mode<synchronous>, transform_indices = @transform_4, window_bounds = array<i64: 1, 128>}, {transform_indices = @transform_5, window_bounds = array<i64: 1, 256, 128>}, {transform_indices = @transform_6, window_bounds = array<i64: 1, 256, 128>}]} {
    %c0 = arith.constant 0 : index
    %c0_0 = arith.constant 0 : index
    %c0_1 = arith.constant 0 : index
    %0 = vector.load %arg2[%c0, %c0_0, %c0_1] : memref<1x256x128xbf16, #tpu.memory_space<vmem>>, vector<1x256x128xbf16>
    %1 = vector.shape_cast %0 : vector<1x256x128xbf16> to vector<256x128xbf16>
    %2 = arith.extf %1 : vector<256x128xbf16> to vector<256x128xf32>
    %c0_2 = arith.constant 0 : index
    %c0_3 = arith.constant 0 : index
    %c0_4 = arith.constant 0 : index
    %3 = vector.load %arg3[%c0_2, %c0_3, %c0_4] : memref<1x1x128xf32, #tpu.memory_space<vmem>>, vector<1x1x128xf32>
    %4 = vector.shape_cast %3 : vector<1x1x128xf32> to vector<1x128xf32>
    %5 = vector.broadcast %4 : vector<1x128xf32> to vector<256x128xf32>
    %6 = arith.mulf %2, %5 : vector<256x128xf32>
    %7 = arith.truncf %6 : vector<256x128xf32> to vector<256x128xbf16>
    %c0_5 = arith.constant 0 : index
    %c0_6 = arith.constant 0 : index
    %8 = vector.load %arg4[%c0_5, %c0_6] : memref<128x128xbf16, #tpu.memory_space<vmem>>, vector<128x128xbf16>
    %cst = arith.constant dense<0.000000e+00> : vector<256x128xf32>
    %9 = tpu.matmul %7, %8, %cst {dimension_numbers = #tpu.dot_dimension_numbers<[1], [0], [0], [1], [0, 0, 1, 1], [], []>} : vector<256x128xbf16>, vector<128x128xbf16>, vector<256x128xf32> -> vector<256x128xf32>
    %c0_7 = arith.constant 0 : index
    %c0_8 = arith.constant 0 : index
    %10 = vector.load %arg5[%c0_7, %c0_8] : memref<1x128xf32, #tpu.memory_space<vmem>>, vector<1x128xf32>
    %11 = vector.broadcast %10 : vector<1x128xf32> to vector<256x128xf32>
    %12 = arith.mulf %9, %11 : vector<256x128xf32>
    %c0_9 = arith.constant 0 : index
    %c0_10 = arith.constant 0 : index
    %13 = vector.load %arg6[%c0_9, %c0_10] : memref<1x128xf32, #tpu.memory_space<vmem>>, vector<1x128xf32>
    %14 = vector.broadcast %13 : vector<1x128xf32> to vector<256x128xf32>
    %15 = arith.addf %12, %14 : vector<256x128xf32>
    %c0_11 = arith.constant 0 : index
    %c0_12 = arith.constant 0 : index
    %c0_13 = arith.constant 0 : index
    %16 = vector.load %arg7[%c0_11, %c0_12, %c0_13] : memref<1x256x128xf32, #tpu.memory_space<vmem>>, vector<1x256x128xf32>
    %17 = vector.shape_cast %16 : vector<1x256x128xf32> to vector<256x128xf32>
    %18 = arith.addf %15, %17 : vector<256x128xf32>
    %c0_14 = arith.constant 0 : index
    %c0_15 = arith.constant 0 : index
    %c0_16 = arith.constant 0 : index
    %19 = vector.load %arg8[%c0_14, %c0_15, %c0_16] : memref<1x256x128xf32, #tpu.memory_space<vmem>>, vector<1x256x128xf32>
    %20 = vector.shape_cast %19 : vector<1x256x128xf32> to vector<256x128xf32>
    %21 = vector.shape_cast %18 : vector<256x128xf32> to vector<1x256x128xf32>
    tpu.vector_store %arg8[%c0_14, %c0_15, %c0_16], %21 {strides = array<i32>} : memref<1x256x128xf32, #tpu.memory_space<vmem>>, vector<1x256x128xf32>,
    return
  }
  func.func @transform_0(%arg0: i32, %arg1: i32) -> (i32, i32, i32) {
    %c0_i32 = arith.constant 0 : i32
    %c0_i32_0 = arith.constant 0 : i32
    return %arg0, %arg1, %c0_i32 : i32, i32, i32
  }
  func.func @transform_1(%arg0: i32, %arg1: i32) -> (i32, i32, i32) {
    %c0_i32 = arith.constant 0 : i32
    %c0_i32_0 = arith.constant 0 : i32
    %c0_i32_1 = arith.constant 0 : i32
    return %arg0, %c0_i32, %c0_i32_0 : i32, i32, i32
  }
  func.func @transform_2(%arg0: i32, %arg1: i32) -> (i32, i32) {
    %c0_i32 = arith.constant 0 : i32
    %c0_i32_0 = arith.constant 0 : i32
    %c0_i32_1 = arith.constant 0 : i32
    return %c0_i32, %c0_i32_0 : i32, i32
  }
  func.func @transform_3(%arg0: i32, %arg1: i32) -> (i32, i32) {
    %c0_i32 = arith.constant 0 : i32
    %c0_i32_0 = arith.constant 0 : i32
    %c0_i32_1 = arith.constant 0 : i32
    return %c0_i32, %c0_i32_0 : i32, i32
  }
  func.func @transform_4(%arg0: i32, %arg1: i32) -> (i32, i32) {
    %c0_i32 = arith.constant 0 : i32
    %c0_i32_0 = arith.constant 0 : i32
    %c0_i32_1 = arith.constant 0 : i32
    return %c0_i32, %c0_i32_0 : i32, i32
  }
  func.func @transform_5(%arg0: i32, %arg1: i32) -> (i32, i32, i32) {
    %c0_i32 = arith.constant 0 : i32
    %c0_i32_0 = arith.constant 0 : i32
    return %arg0, %arg1, %c0_i32 : i32, i32, i32
  }
  func.func @transform_6(%arg0: i32, %arg1: i32) -> (i32, i32, i32) {
    %c0_i32 = arith.constant 0 : i32
    %c0_i32_0 = arith.constant 0 : i32
    return %arg0, %arg1, %c0_i32 : i32, i32, i32
  }
}

</mosaic_0001>

<bundles_post_ra>
// kernel: mbconv_forward.3
= control target key start
LH: loop header
LB: loop body
LE: loop exit
PB: predicated region body
PF: predicated region fallthrough
CT: control target
= control target key end

     0   :  { %s1259_s21 = smov 0   ;;  %s1261_s22 = smov 0   ;;  %s1521_s0 = inlined_call_operand.vmem [shape: bf16[2,256,128], index: 0, kind: input, shape index: {}]   ;;  %s1522_s1 = inlined_call_operand.vmem [shape: f32[2,1,128], index: 1, kind: input, shape index: {}]   ;;  %s1523_s2 = inlined_call_operand.vmem [shape: bf16[128,128], index: 2, kind: input, shape index: {}]   ;;  %s1524_s3 = inlined_call_operand.vmem [shape: f32[1,128], index: 3, kind: input, shape index: {}]   ;;  %s1525_s4 = inlined_call_operand.vmem [shape: f32[1,128], index: 4, kind: input, shape index: {}]   ;;  %s1526_s5 = inlined_call_operand.vmem [shape: f32[2,256,128], index: 5, kind: input, shape index: {}]   ;;  %s1527_s6 = inlined_call_operand.vmem [shape: f32[2,256,128], index: 6, kind: output, shape index: {}]  }
   0x1   :  { %s1263_s23 = smov 0  }
   0x2 LB: > { %s28_s24 = sadd.s32 1, %s1218_s22  ;;  %p978_p0 = scmp.ge.s32.totalorder %s1222_s23, 1  ;;  %s1222_s23 = sphi %s1263_s23, %s16_s23   ;;  %s1218_s22 = sphi %s1261_s22, %s1529_s22   ;;  %s1214_s21 = sphi %s1259_s21, %s1528_s21  }
   0x3   : > { %p30_p1 = scmp.ge.s32.totalorder %s28_s24, 2  ;;  %p258_p2 = scmp.lt.s32.totalorder %s1222_s23, 3 }
   0x5   : > { %s1531_s24 = smov (%p30_p1, %s28_s24), 0  ;;  %p259_p3 = pnand %p978_p0, %p258_p2 }
   0x6   : > { %v1192_v0 = vld [vmem:[%s1523_s2] sm:$0xff] (!%p259_p3)   ;;  %p309_p4 = scmp.lt.s32.totalorder (!%p259_p3), %s1214_s21, 1  ;;  %v1193_v1 = vld [vmem:[%s1523_s2 + $0x8] sm:$0xff] (!%p259_p3)   ;;  %v1194_v2 = vld [vmem:[%s1523_s2 + $0x10] sm:$0xff] (!%p259_p3)  }
   0x7   : > { %262 = sbr.rel (%p259_p3) target bundleno = 286 (0x11e), region = 44  ;;  %1104 = vmatprep.subr.bf16.mxu0 (!%p259_p3), %v1192_v0  ;;  %1152 = vmatprep.subr.bf16.mxu1 (!%p259_p3), %v1192_v0  ;;  %v1195_v3 = vld [vmem:[%s1523_s2 + $0x18] sm:$0xff] (!%p259_p3)   ;;  %v1196_v14 = vld [vmem:[%s1523_s2 + $0x20] sm:$0xff] (!%p259_p3)   ;;  %v1197_v18 = vld [vmem:[%s1523_s2 + $0x28] sm:$0xff] (!%p259_p3)  }
   0x8   : > { %1105 = vmatpush3.bf16.msra.mxu0 (!%p259_p3), %v1192_v0  ;;  %1160 = vmatpush3.bf16.msra.mxu1 (!%p259_p3), %v1192_v0  ;;  %v1198_v22 = vld [vmem:[%s1523_s2 + $0x30] sm:$0xff] (!%p259_p3)   ;;  %v1199_v32 = vld [vmem:[%s1523_s2 + $0x38] sm:$0xff] (!%p259_p3)  }
   0x9   : > { %1106 = vmatprep.subr.bf16.mxu0 (!%p259_p3), %v1193_v1  ;;  %1153 = vmatprep.subr.bf16.mxu1 (!%p259_p3), %v1193_v1 }
   0xc   : > { %1107 = vmatpush3.bf16.msra.mxu0 (!%p259_p3), %v1193_v1  ;;  %1161 = vmatpush3.bf16.msra.mxu1 (!%p259_p3), %v1193_v1 }
   0xd   : > { %1108 = vmatprep.subr.bf16.mxu0 (!%p259_p3), %v1194_v2  ;;  %1154 = vmatprep.subr.bf16.mxu1 (!%p259_p3), %v1194_v2 }
   0xe   : > { %s1533_s21 = smov (!%p309_p4, %s1214_s21), 1 }
   0xf   : > { %s998_s7 = sshll.u32 %s1533_s21, 7  ;;  %s320_s13 = scalar_lea.vmem %s1522_s1, %s1533_s21 }
  0x10   : > { %s1292_s10 = scalar_lea.vmem %s1521_s0, %s998_s7  ;;  %v1302_v5 = vld [vmem:[%s320_s13] ss:$0 sm:$0xff]  ;;  %1109 = vmatpush3.bf16.msra.mxu0 %v1194_v2  ;;  %1162 = vmatpush3.bf16.msra.mxu1 %v1194_v2  ;;  %s999_s28 = sshll.u32 %s1533_s21, 8 }
  0x11   : > { %v1002_v4 = vld [vmem:[%s1292_s10] sm:$0xff]   ;;  %1110 = vmatprep.subr.bf16.mxu0 %v1195_v3  ;;  %1155 = vmatprep.subr.bf16.mxu1 %v1195_v3  ;;  %v1065_v19 = vld [vmem:[%s1292_s10 + $0x8] sm:$0xff]   ;;  %v1066_v21 = vld [vmem:[%s1292_s10 + $0x10] sm:$0xff]   ;;  %s1372_s9 = scalar_lea.vmem %s1526_s5, %s999_s28  ;;  %s1394_s13 = scalar_lea.vmem %s1527_s6, %s999_s28 }
  0x12   : > { %v1072_v6 = vld [vmem:[%s1292_s10 + $0x40] sm:$0xff]   ;;  %v1003_v7 = vunpack.c.l.bf16 %v1002_v4  ;;  %v1004_v8 = vunpack.c.h.bf16 %v1002_v4  ;;  %v1073_v20 = vld [vmem:[%s1292_s10 + $0x48] sm:$0xff]   ;;  %v1074_v23 = vld [vmem:[%s1292_s10 + $0x50] sm:$0xff]   ;;  %v1007_v24 = vunpack.c.l.bf16 %v1065_v19  ;;  %v1008_v25 = vunpack.c.h.bf16 %v1065_v19 }
  0x13   : > { %v1035_v9 = vunpack.c.l.bf16 %v1072_v6  ;;  %v1036_v10 = vunpack.c.h.bf16 %v1072_v6  ;;  %v1039_v26 = vunpack.c.l.bf16 %v1073_v20  ;;  %v1040_v27 = vunpack.c.h.bf16 %v1073_v20  ;;  %v1067_v38 = vld [vmem:[%s1292_s10 + $0x18] sm:$0xff]   ;;  %v1068_v43 = vld [vmem:[%s1292_s10 + $0x20] sm:$0xff]   ;;  %v1069_v63 = vld [vmem:[%s1292_s10 + $0x28] sm:$0xff]  }
  0x14   : > { %v413_v11 = vmul.f32 %v1003_v7, %v1302_v5  ;;  %v414_v12 = vmul.f32 %v1004_v8, %v1302_v5  ;;  %1111 = vmatpush3.bf16.msra.mxu0 %v1195_v3  ;;  %1163 = vmatpush3.bf16.msra.mxu1 %v1195_v3  ;;  %v1011_v28 = vunpack.c.l.bf16 %v1066_v21  ;;  %v1012_v29 = vunpack.c.h.bf16 %v1066_v21  ;;  %v1075_v39 = vld [vmem:[%s1292_s10 + $0x58] sm:$0xff]   ;;  %v1076_v44 = vld [vmem:[%s1292_s10 + $0x60] sm:$0xff]   ;;  %v1077_v2 = vld [vmem:[%s1292_s10 + $0x68] sm:$0xff]  }
  0x15   : > { %v429_v13 = vmul.f32 %v1035_v9, %v1302_v5  ;;  %v430_v15 = vmul.f32 %v1036_v10, %v1302_v5  ;;  %1112 = vmatprep.subr.bf16.mxu0 %v1196_v14  ;;  %1156 = vmatprep.subr.bf16.mxu1 %v1196_v14  ;;  %v1043_v30 = vunpack.c.l.bf16 %v1074_v23  ;;  %v1044_v31 = vunpack.c.h.bf16 %v1074_v23  ;;  %v1070_v3 = vld [vmem:[%s1292_s10 + $0x30] sm:$0xff]   ;;  %v1071_v23 = vld [vmem:[%s1292_s10 + $0x38] sm:$0xff]  }
  0x16   : > { %v445_v16 = vpack.c.bf16 %v414_v12, %v413_v11  ;;  %v415_v33 = vmul.f32 %v1007_v24, %v1302_v5  ;;  %v416_v34 = vmul.f32 %v1008_v25, %v1302_v5  ;;  %v431_v35 = vmul.f32 %v1039_v26, %v1302_v5  ;;  %v1078_v4 = vld [vmem:[%s1292_s10 + $0x70] sm:$0xff]  }
  0x17   : > { %v453_v17 = vpack.c.bf16 %v430_v15, %v429_v13  ;;  %v432_v36 = vmul.f32 %v1040_v27, %v1302_v5  ;;  %v417_v37 = vmul.f32 %v1011_v28, %v1302_v5  ;;  %v418_v40 = vmul.f32 %v1012_v29, %v1302_v5  ;;  %v1079_v27 = vld [vmem:[%s1292_s10 + $0x78] sm:$0xff]  }
  0x18   : > { %1120 = vmatprep.mubr.bf16.mxu0 %v445_v16  ;;  %1113 = vmatpush3.bf16.msra.mxu0 %v1196_v14  ;;  %v433_v41 = vmul.f32 %v1043_v30, %v1302_v5  ;;  %v434_v42 = vmul.f32 %v1044_v31, %v1302_v5  ;;  %v1015_v45 = vunpack.c.l.bf16 %v1067_v38  ;;  %v1016_v46 = vunpack.c.h.bf16 %v1067_v38 }
  0x19   : > { %1136 = vmatprep.mubr.bf16.mxu1 %v453_v17  ;;  %1164 = vmatpush3.bf16.msra.mxu1 %v1196_v14  ;;  %v1047_v47 = vunpack.c.l.bf16 %v1075_v39  ;;  %v1048_v48 = vunpack.c.h.bf16 %v1075_v39  ;;  %v446_v49 = vpack.c.bf16 %v416_v34, %v415_v33  ;;  %v454_v50 = vpack.c.bf16 %v432_v36, %v431_v35 }
  0x1a   : > { %1114 = vmatprep.subr.bf16.mxu0 %v1197_v18  ;;  %1157 = vmatprep.subr.bf16.mxu1 %v1197_v18  ;;  %v1019_v51 = vunpack.c.l.bf16 %v1068_v43  ;;  %v1020_v52 = vunpack.c.h.bf16 %v1068_v43  ;;  %v447_v53 = vpack.c.bf16 %v418_v40, %v417_v37  ;;  %v455_v54 = vpack.c.bf16 %v434_v42, %v433_v41  ;;  %v1367_v42 = vld [vmem:[%s1524_s3] ss:$0 sm:$0xff] }
  0x1b   : > { %v1051_v55 = vunpack.c.l.bf16 %v1076_v44  ;;  %v1052_v56 = vunpack.c.h.bf16 %v1076_v44  ;;  %v419_v57 = vmul.f32 %v1015_v45, %v1302_v5  ;;  %v420_v58 = vmul.f32 %v1016_v46, %v1302_v5  ;;  %v1377_v43 = vld [vmem:[%s1525_s4] ss:$0 sm:$0xff] }
  0x1c   : > { %1115 = vmatpush3.bf16.msra.mxu0 %v1197_v18  ;;  %v435_v59 = vmul.f32 %v1047_v47, %v1302_v5  ;;  %v436_v60 = vmul.f32 %v1048_v48, %v1302_v5  ;;  %v421_v61 = vmul.f32 %v1019_v51, %v1302_v5  ;;  %v422_v62 = vmul.f32 %v1020_v52, %v1302_v5 }
  0x1d   : > { %1165 = vmatpush3.bf16.msra.mxu1 %v1197_v18  ;;  %1116 = vmatprep.subr.bf16.mxu0 %v1198_v22  ;;  %v437_v0 = vmul.f32 %v1051_v55, %v1302_v5  ;;  %v438_v1 = vmul.f32 %v1052_v56, %v1302_v5  ;;  %v448_v6 = vpack.c.bf16 %v420_v58, %v419_v57  ;;  %v1023_v8 = vunpack.c.l.bf16 %v1069_v63  ;;  %v764_v57 = vld [vmem:[%s1372_s9] sm:$0xff] }
  0x1e   : > { %1158 = vmatprep.subr.bf16.mxu1 %v1198_v22  ;;  %v456_v7 = vpack.c.bf16 %v436_v60, %v435_v59  ;;  %v1024_v9 = vunpack.c.h.bf16 %v1069_v63  ;;  %v449_v10 = vpack.c.bf16 %v422_v62, %v421_v61  ;;  %v1055_v11 = vunpack.c.l.bf16 %v1077_v2  ;;  %v780_v58 = vld [vmem:[%s1372_s9 + $0x80] sm:$0xff] }
  0x1f   : > { %v1056_v12 = vunpack.c.h.bf16 %v1077_v2  ;;  %v1027_v13 = vunpack.c.l.bf16 %v1070_v3  ;;  %v457_v14 = vpack.c.bf16 %v438_v1, %v437_v0  ;;  %v1028_v15 = vunpack.c.h.bf16 %v1070_v3  ;;  %v767_v1 = vld [vmem:[%s1372_s9 + $0x18] sm:$0xff] }
  0x20   : > { %1117 = vmatpush3.bf16.msra.mxu0 %v1198_v22  ;;  %v1059_v16 = vunpack.c.l.bf16 %v1078_v4  ;;  %v1060_v17 = vunpack.c.h.bf16 %v1078_v4  ;;  %v423_v18 = vmul.f32 %v1023_v8, %v1302_v5  ;;  %v424_v19 = vmul.f32 %v1024_v9, %v1302_v5  ;;  %v783_v2 = vld [vmem:[%s1372_s9 + $0x98] sm:$0xff] }
  0x21   : > { %1166 = vmatpush3.bf16.msra.mxu1 %v1198_v22  ;;  %1118 = vmatprep.subr.bf16.mxu0 %v1199_v32  ;;  %v439_v20 = vmul.f32 %v1055_v11, %v1302_v5  ;;  %v440_v21 = vmul.f32 %v1056_v12, %v1302_v5  ;;  %v425_v22 = vmul.f32 %v1027_v13, %v1302_v5  ;;  %v1031_v29 = vunpack.c.l.bf16 %v1071_v23  ;;  %v781_v11 = vld [vmem:[%s1372_s9 + $0x88] sm:$0xff] }
  0x22   : > { %1159 = vmatprep.subr.bf16.mxu1 %v1199_v32  ;;  %v426_v24 = vmul.f32 %v1028_v15, %v1302_v5  ;;  %v441_v25 = vmul.f32 %v1059_v16, %v1302_v5  ;;  %v442_v26 = vmul.f32 %v1060_v17, %v1302_v5  ;;  %v450_v28 = vpack.c.bf16 %v424_v19, %v423_v18 }
  0x23   : > { %v458_v30 = vpack.c.bf16 %v440_v21, %v439_v20  ;;  %v1032_v31 = vunpack.c.h.bf16 %v1071_v23  ;;  %v1064_v33 = vunpack.c.h.bf16 %v1079_v27  ;;  %v427_v36 = vmul.f32 %v1031_v29, %v1302_v5 }
  0x24   : > { %1119 = vmatpush3.bf16.msra.mxu0 %v1199_v32  ;;  %v451_v34 = vpack.c.bf16 %v426_v24, %v425_v22  ;;  %v459_v35 = vpack.c.bf16 %v442_v26, %v441_v25  ;;  %v770_v26 = vld [vmem:[%s1372_s9 + $0x30] sm:$0xff] }
  0x25   : > { %1167 = vmatpush3.bf16.msra.mxu1 %v1199_v32  ;;  %v1063_v32 = vunpack.c.l.bf16 %v1079_v27  ;;  %v428_v37 = vmul.f32 %v1032_v31, %v1302_v5  ;;  %v444_v39 = vmul.f32 %v1064_v33, %v1302_v5  ;;  %v786_v27 = vld [vmem:[%s1372_s9 + $0xb0] sm:$0xff] }
  0x27   : > { %1121 = vmatmul.mubr.bf16.vlgmr.msra.gmra.mrb[0].mxu0 %v446_v49  ;;  %v443_v38 = vmul.f32 %v1063_v32, %v1302_v5  ;;  %v452_v40 = vpack.c.bf16 %v428_v37, %v427_v36  ;;  %v766_v49 = vld [vmem:[%s1372_s9 + $0x10] sm:$0xff] }
  0x28   : > { %1137 = vmatmul.mubr.bf16.vlgmr.msra.gmra.mrb[0].mxu1 %v454_v50  ;;  %1124 = vmatprep.mubr.bf16.mxu0 %v447_v53  ;;  %v782_v50 = vld [vmem:[%s1372_s9 + $0x90] sm:$0xff] }
  0x29   : > { %1140 = vmatprep.mubr.bf16.mxu1 %v455_v54  ;;  %v460_v41 = vpack.c.bf16 %v444_v39, %v443_v38 }
  0x2f   : > { %1125 = vmatmul.mubr.bf16.gmra.mrb[4].mxu0 %v448_v6 }
  0x30   : > { %1141 = vmatmul.mubr.bf16.gmra.mrb[4].mxu1 %v456_v7  ;;  %1128 = vmatprep.mubr.bf16.mxu0 %v449_v10  ;;  %v765_v10 = vld [vmem:[%s1372_s9 + $0x8] sm:$0xff] }
  0x31   : > { %1144 = vmatprep.mubr.bf16.mxu1 %v457_v14 }
  0x37   : > { %1129 = vmatmul.mubr.bf16.gmra.mrb[8].mxu0 %v450_v28 }
  0x38   : > { %1145 = vmatmul.mubr.bf16.gmra.mrb[8].mxu1 %v458_v30  ;;  %1132 = vmatprep.mubr.bf16.mxu0 %v451_v34  ;;  %v768_v34 = vld [vmem:[%s1372_s9 + $0x20] sm:$0xff] }
  0x39   : > { %1148 = vmatprep.mubr.bf16.mxu1 %v459_v35  ;;  %v784_v35 = vld [vmem:[%s1372_s9 + $0xa0] sm:$0xff] }
  0x3f   : > { %1133 = vmatmul.mubr.bf16.gmra.mrb[12].mxu0 %v452_v40 }
  0x40   : > { %1149 = vmatmul.mubr.bf16.gmra.mrb[12].mxu1 %v460_v41 }
  0xfa   : > { %v1122_v5 = vpop.f32.mrb[0].mxu0 }
  0xfb   : > { %v1138_v44 = vpop.f32.mrb[0].mxu1  ;;  %v695_v45 = vmul.f32 %v1122_v5, %v1367_v42  ;;  %v559_v47 = vpop.f32.mrb[1].mxu0  ;;  %v771_v5 = vld [vmem:[%s1372_s9 + $0x38] sm:$0xff] }
  0xfc   : > { %v711_v46 = vmul.f32 %v1138_v44, %v1367_v42  ;;  %v623_v48 = vpop.f32.mrb[1].mxu1  ;;  %v693_v51 = vmul.f32 %v1367_v42, %v559_v47  ;;  %v1123_v53 = vpop.f32.mrb[2].mxu0  ;;  %v787_v44 = vld [vmem:[%s1372_s9 + $0xb8] sm:$0xff] }
  0xfd   : > { %v709_v52 = vmul.f32 %v1367_v42, %v623_v48  ;;  %v1139_v54 = vpop.f32.mrb[2].mxu1  ;;  %v734_v55 = vadd.f32 %v1377_v43, %v695_v45  ;;  %v696_v59 = vmul.f32 %v1123_v53, %v1367_v42  ;;  %v562_v61 = vpop.f32.mrb[3].mxu0 }
  0xfe   : > { %v750_v56 = vadd.f32 %v1377_v43, %v711_v46  ;;  %v712_v60 = vmul.f32 %v1139_v54, %v1367_v42  ;;  %v626_v62 = vpop.f32.mrb[3].mxu1  ;;  %v732_v63 = vadd.f32 %v1377_v43, %v693_v51  ;;  %v694_v3 = vmul.f32 %v1367_v42, %v562_v61  ;;  %v769_v51 = vld [vmem:[%s1372_s9 + $0x28] sm:$0xff] }
  0xff   : > { %v748_v0 = vadd.f32 %v1377_v43, %v709_v52  ;;  %v710_v4 = vmul.f32 %v1367_v42, %v626_v62  ;;  %v798_v6 = vadd.f32 %v766_v49, %v734_v55  ;;  %v735_v8 = vadd.f32 %v1377_v43, %v696_v59  ;;  %v785_v52 = vld [vmem:[%s1372_s9 + $0xa8] sm:$0xff] }
 0x100   : > { %v814_v7 = vadd.f32 %v782_v50, %v750_v56  ;;  %v751_v9 = vadd.f32 %v1377_v43, %v712_v60  ;;  %v796_v12 = vadd.f32 %v764_v57, %v732_v63  ;;  %v733_v14 = vadd.f32 %v1377_v43, %v694_v3  ;;  %v774_v3 = vld [vmem:[%s1372_s9 + $0x50] sm:$0xff] }
 0x101   : > { %v812_v13 = vadd.f32 %v780_v58, %v748_v0  ;;  %v749_v15 = vadd.f32 %v1377_v43, %v710_v4  ;;  %830 = vst [vmem:[%s1394_s13 + $0x10] sm:$0xff] %v798_v6  ;;  %v799_v16 = vadd.f32 %v767_v1, %v735_v8  ;;  %v790_v4 = vld [vmem:[%s1372_s9 + $0xd0] sm:$0xff] }
 0x102   : > { %846 = vst [vmem:[%s1394_s13 + $0x90] sm:$0xff] %v814_v7  ;;  %v815_v17 = vadd.f32 %v783_v2, %v751_v9  ;;  %828 = vst [vmem:[%s1394_s13] sm:$0xff] %v796_v12  ;;  %v797_v18 = vadd.f32 %v765_v10, %v733_v14  ;;  %v1126_v20 = vpop.f32.mrb[4].mxu0  ;;  %v772_v12 = vld [vmem:[%s1372_s9 + $0x40] sm:$0xff] }
 0x103   : > { %844 = vst [vmem:[%s1394_s13 + $0x80] sm:$0xff] %v812_v13  ;;  %v813_v19 = vadd.f32 %v781_v11, %v749_v15  ;;  %v1142_v21 = vpop.f32.mrb[4].mxu1  ;;  %831 = vst [vmem:[%s1394_s13 + $0x18] sm:$0xff] %v799_v16  ;;  %v699_v22 = vmul.f32 %v1126_v20, %v1367_v42  ;;  %v575_v24 = vpop.f32.mrb[5].mxu0  ;;  %v788_v13 = vld [vmem:[%s1372_s9 + $0xc0] sm:$0xff]  ;;  %v775_v20 = vld [vmem:[%s1372_s9 + $0x58] sm:$0xff] }
 0x104   : > { %847 = vst [vmem:[%s1394_s13 + $0x98] sm:$0xff] %v815_v17  ;;  %v715_v23 = vmul.f32 %v1142_v21, %v1367_v42  ;;  %v639_v25 = vpop.f32.mrb[5].mxu1  ;;  %829 = vst [vmem:[%s1394_s13 + $0x8] sm:$0xff] %v797_v18  ;;  %v697_v28 = vmul.f32 %v1367_v42, %v575_v24  ;;  %v1127_v30 = vpop.f32.mrb[6].mxu0  ;;  %v791_v21 = vld [vmem:[%s1372_s9 + $0xd8] sm:$0xff] }
 0x105   : > { %845 = vst [vmem:[%s1394_s13 + $0x88] sm:$0xff] %v813_v19  ;;  %v713_v29 = vmul.f32 %v1367_v42, %v639_v25  ;;  %v1143_v31 = vpop.f32.mrb[6].mxu1  ;;  %v738_v32 = vadd.f32 %v1377_v43, %v699_v22  ;;  %v700_v36 = vmul.f32 %v1127_v30, %v1367_v42  ;;  %v578_v38 = vpop.f32.mrb[7].mxu0 }
 0x106   : > { %v754_v33 = vadd.f32 %v1377_v43, %v715_v23  ;;  %v716_v37 = vmul.f32 %v1143_v31, %v1367_v42  ;;  %v642_v39 = vpop.f32.mrb[7].mxu1  ;;  %v736_v40 = vadd.f32 %v1377_v43, %v697_v28  ;;  %v698_v45 = vmul.f32 %v1367_v42, %v578_v38  ;;  %v773_v28 = vld [vmem:[%s1372_s9 + $0x48] sm:$0xff] }
 0x107   : > { %v752_v41 = vadd.f32 %v1377_v43, %v713_v29  ;;  %v714_v46 = vmul.f32 %v1367_v42, %v642_v39  ;;  %v802_v47 = vadd.f32 %v770_v26, %v738_v32  ;;  %v739_v49 = vadd.f32 %v1377_v43, %v700_v36  ;;  %v789_v29 = vld [vmem:[%s1372_s9 + $0xc8] sm:$0xff] }
 0x108   : > { %v818_v48 = vadd.f32 %v786_v27, %v754_v33  ;;  %v755_v50 = vadd.f32 %v1377_v43, %v716_v37  ;;  %v800_v53 = vadd.f32 %v768_v34, %v736_v40  ;;  %v737_v55 = vadd.f32 %v1377_v43, %v698_v45  ;;  %v778_v45 = vld [vmem:[%s1372_s9 + $0x70] sm:$0xff] }
 0x109   : > { %v816_v54 = vadd.f32 %v784_v35, %v752_v41  ;;  %v753_v56 = vadd.f32 %v1377_v43, %v714_v46  ;;  %834 = vst [vmem:[%s1394_s13 + $0x30] sm:$0xff] %v802_v47  ;;  %v803_v57 = vadd.f32 %v771_v5, %v739_v49  ;;  %v794_v46 = vld [vmem:[%s1372_s9 + $0xf0] sm:$0xff] }
 0x10a   : > { %850 = vst [vmem:[%s1394_s13 + $0xb0] sm:$0xff] %v818_v48  ;;  %v819_v58 = vadd.f32 %v787_v44, %v755_v50  ;;  %832 = vst [vmem:[%s1394_s13 + $0x20] sm:$0xff] %v800_v53  ;;  %v801_v59 = vadd.f32 %v769_v51, %v737_v55  ;;  %v1130_v61 = vpop.f32.mrb[8].mxu0  ;;  %v776_v53 = vld [vmem:[%s1372_s9 + $0x60] sm:$0xff] }
 0x10b   : > { %848 = vst [vmem:[%s1394_s13 + $0xa0] sm:$0xff] %v816_v54  ;;  %v817_v60 = vadd.f32 %v785_v52, %v753_v56  ;;  %v1146_v62 = vpop.f32.mrb[8].mxu1  ;;  %835 = vst [vmem:[%s1394_s13 + $0x38] sm:$0xff] %v803_v57  ;;  %v703_v63 = vmul.f32 %v1130_v61, %v1367_v42  ;;  %v591_v1 = vpop.f32.mrb[9].mxu0  ;;  %v792_v54 = vld [vmem:[%s1372_s9 + $0xe0] sm:$0xff]  ;;  %v779_v61 = vld [vmem:[%s1372_s9 + $0x78] sm:$0xff] }
 0x10c   : > { %851 = vst [vmem:[%s1394_s13 + $0xb8] sm:$0xff] %v819_v58  ;;  %v719_v0 = vmul.f32 %v1146_v62, %v1367_v42  ;;  %v655_v2 = vpop.f32.mrb[9].mxu1  ;;  %833 = vst [vmem:[%s1394_s13 + $0x28] sm:$0xff] %v801_v59  ;;  %v701_v6 = vmul.f32 %v1367_v42, %v591_v1  ;;  %v1131_v8 = vpop.f32.mrb[10].mxu0  ;;  %v795_v62 = vld [vmem:[%s1372_s9 + $0xf8] sm:$0xff] }
 0x10d   : > { %849 = vst [vmem:[%s1394_s13 + $0xa8] sm:$0xff] %v817_v60  ;;  %v717_v7 = vmul.f32 %v1367_v42, %v655_v2  ;;  %v1147_v9 = vpop.f32.mrb[10].mxu1  ;;  %v742_v10 = vadd.f32 %v1377_v43, %v703_v63  ;;  %v704_v14 = vmul.f32 %v1131_v8, %v1367_v42  ;;  %v594_v16 = vpop.f32.mrb[11].mxu0 }
 0x10e   : > { %v758_v11 = vadd.f32 %v1377_v43, %v719_v0  ;;  %v720_v15 = vmul.f32 %v1147_v9, %v1367_v42  ;;  %v658_v17 = vpop.f32.mrb[11].mxu1  ;;  %v740_v18 = vadd.f32 %v1377_v43, %v701_v6  ;;  %v702_v22 = vmul.f32 %v1367_v42, %v594_v16  ;;  %v777_v6 = vld [vmem:[%s1372_s9 + $0x68] sm:$0xff] }
 0x10f   : > { %v756_v19 = vadd.f32 %v1377_v43, %v717_v7  ;;  %v718_v23 = vmul.f32 %v1367_v42, %v658_v17  ;;  %v806_v24 = vadd.f32 %v774_v3, %v742_v10  ;;  %v743_v26 = vadd.f32 %v1377_v43, %v704_v14  ;;  %v793_v7 = vld [vmem:[%s1372_s9 + $0xe8] sm:$0xff] }
 0x110   : > { %v822_v25 = vadd.f32 %v790_v4, %v758_v11  ;;  %v759_v27 = vadd.f32 %v1377_v43, %v720_v15  ;;  %v804_v30 = vadd.f32 %v772_v12, %v740_v18  ;;  %v741_v32 = vadd.f32 %v1377_v43, %v702_v22 }
 0x111   : > { %v820_v31 = vadd.f32 %v788_v13, %v756_v19  ;;  %v757_v33 = vadd.f32 %v1377_v43, %v718_v23  ;;  %838 = vst [vmem:[%s1394_s13 + $0x50] sm:$0xff] %v806_v24  ;;  %v807_v34 = vadd.f32 %v775_v20, %v743_v26 }
 0x112   : > { %854 = vst [vmem:[%s1394_s13 + $0xd0] sm:$0xff] %v822_v25  ;;  %v823_v35 = vadd.f32 %v791_v21, %v759_v27  ;;  %836 = vst [vmem:[%s1394_s13 + $0x40] sm:$0xff] %v804_v30  ;;  %v805_v36 = vadd.f32 %v773_v28, %v741_v32  ;;  %v1134_v38 = vpop.f32.mrb[12].mxu0 }
 0x113   : > { %852 = vst [vmem:[%s1394_s13 + $0xc0] sm:$0xff] %v820_v31  ;;  %v821_v37 = vadd.f32 %v789_v29, %v757_v33  ;;  %v1150_v39 = vpop.f32.mrb[12].mxu1  ;;  %839 = vst [vmem:[%s1394_s13 + $0x58] sm:$0xff] %v807_v34  ;;  %v707_v40 = vmul.f32 %v1134_v38, %v1367_v42  ;;  %v607_v5 = vpop.f32.mrb[13].mxu0 }
 0x114   : > { %855 = vst [vmem:[%s1394_s13 + $0xd8] sm:$0xff] %v823_v35  ;;  %v723_v41 = vmul.f32 %v1150_v39, %v1367_v42  ;;  %v671_v44 = vpop.f32.mrb[13].mxu1  ;;  %837 = vst [vmem:[%s1394_s13 + $0x48] sm:$0xff] %v805_v36  ;;  %v705_v47 = vmul.f32 %v1367_v42, %v607_v5  ;;  %v1135_v49 = vpop.f32.mrb[14].mxu0 }
 0x115   : > { %853 = vst [vmem:[%s1394_s13 + $0xc8] sm:$0xff] %v821_v37  ;;  %v721_v48 = vmul.f32 %v1367_v42, %v671_v44  ;;  %v1151_v50 = vpop.f32.mrb[14].mxu1  ;;  %v746_v51 = vadd.f32 %v1377_v43, %v707_v40  ;;  %v708_v55 = vmul.f32 %v1135_v49, %v1367_v42  ;;  %v610_v57 = vpop.f32.mrb[15].mxu0 }
 0x116   : > { %v762_v52 = vadd.f32 %v1377_v43, %v723_v41  ;;  %v724_v56 = vmul.f32 %v1151_v50, %v1367_v42  ;;  %v674_v58 = vpop.f32.mrb[15].mxu1  ;;  %v744_v59 = vadd.f32 %v1377_v43, %v705_v47  ;;  %v706_v63 = vmul.f32 %v1367_v42, %v610_v57 }
 0x117   : > { %v760_v60 = vadd.f32 %v1377_v43, %v721_v48  ;;  %v722_v0 = vmul.f32 %v1367_v42, %v674_v58  ;;  %v810_v1 = vadd.f32 %v778_v45, %v746_v51  ;;  %v747_v3 = vadd.f32 %v1377_v43, %v708_v55 }
 0x118   : > { %v826_v2 = vadd.f32 %v794_v46, %v762_v52  ;;  %v763_v4 = vadd.f32 %v1377_v43, %v724_v56  ;;  %v808_v8 = vadd.f32 %v776_v53, %v744_v59  ;;  %v745_v10 = vadd.f32 %v1377_v43, %v706_v63 }
 0x119   : > { %v824_v9 = vadd.f32 %v792_v54, %v760_v60  ;;  %v761_v11 = vadd.f32 %v1377_v43, %v722_v0  ;;  %842 = vst [vmem:[%s1394_s13 + $0x70] sm:$0xff] %v810_v1  ;;  %v811_v42 = vadd.f32 %v779_v61, %v747_v3 }
 0x11a   : > { %858 = vst [vmem:[%s1394_s13 + $0xf0] sm:$0xff] %v826_v2  ;;  %v827_v12 = vadd.f32 %v795_v62, %v763_v4  ;;  %840 = vst [vmem:[%s1394_s13 + $0x60] sm:$0xff] %v808_v8  ;;  %v809_v13 = vadd.f32 %v777_v6, %v745_v10 }
 0x11b   : > { %856 = vst [vmem:[%s1394_s13 + $0xe0] sm:$0xff] %v824_v9  ;;  %v825_v14 = vadd.f32 %v793_v7, %v761_v11  ;;  %843 = vst [vmem:[%s1394_s13 + $0x78] sm:$0xff] %v811_v42 }
 0x11c   : > { %859 = vst [vmem:[%s1394_s13 + $0xf8] sm:$0xff] %v827_v12  ;;  %841 = vst [vmem:[%s1394_s13 + $0x68] sm:$0xff] %v809_v13 }
 0x11d   : > { %857 = vst [vmem:[%s1394_s13 + $0xe8] sm:$0xff] %v825_v14 }
 0x11e PF: > { %s16_s23 = sadd.s32 1, %s1222_s23   ;;  %s1528_s21 = smov %s1218_s22 }
 0x11f   : > { %p13_p5 = scmp.ge.s32.totalorder %s16_s23, 4   ;;  %s1529_s22 = smov %s1531_s24 }
 0x121   :  { %15 = sbr.rel (!%p13_p5) target bundleno = 2 (0x2), region = 80 }

// kernel: mbconv_forward.2
= control target key start
LH: loop header
LB: loop body
LE: loop exit
PB: predicated region body
PF: predicated region fallthrough
CT: control target
= control target key end

     0   :  { %s5064_s27 = smov 0   ;;  %s5066_s28 = smov 0   ;;  %s8327_s0 = inlined_call_operand.vmem [shape: bf16[2,18,32,128], index: 0, kind: input, shape index: {}]   ;;  %s8328_s1 = inlined_call_operand.vmem [shape: bf16[128,128], index: 1, kind: input, shape index: {}]   ;;  %s8329_s2 = inlined_call_operand.vmem [shape: f32[1,128], index: 2, kind: input, shape index: {}]   ;;  %s8330_s3 = inlined_call_operand.vmem [shape: f32[1,128], index: 3, kind: input, shape index: {}]   ;;  %s8331_s4 = inlined_call_operand.vmem [shape: f32[3,3,128], index: 4, kind: input, shape index: {}]   ;;  %s8332_s5 = inlined_call_operand.vmem [shape: f32[1,128], index: 5, kind: input, shape index: {}]   ;;  %s8333_s6 = inlined_call_operand.vmem [shape: f32[1,128], index: 6, kind: input, shape index: {}]   ;;  %s8334_s7 = inlined_call_operand.vmem [shape: bf16[2,16,16,128], index: 7, kind: output, shape index: {0}]   ;;  %s8335_s8 = inlined_call_operand.vmem [shape: f32[2,1,1,128], index: 8, kind: output, shape index: {1}]  }
   0x1   :  { %s5068_s29 = smov 0  }
   0x2 LB: > { %s31_s30 = sadd.s32 1, %s5013_s28  ;;  %p4141_p0 = scmp.ge.s32.totalorder %s5017_s29, 1  ;;  %s5017_s29 = sphi %s5068_s29, %s19_s29   ;;  %s5013_s28 = sphi %s5066_s28, %s9059_s28   ;;  %s5009_s27 = sphi %s5064_s27, %s9058_s27  }
   0x3   : > { %p33_p1 = scmp.ge.s32.totalorder %s31_s30, 2  ;;  %p247_p2 = scmp.lt.s32.totalorder %s5017_s29, 3 }
   0x5   : > { %s9061_s30 = smov (%p33_p1, %s31_s30), 0  ;;  %p248_p3 = pnand %p4141_p0, %p247_p2 }
   0x7   : > { %251 = sbr.rel (%p248_p3) target bundleno = 795 (0x31b), region = 44 }
   0xe   : > { %p286_p4 = scmp.lt.s32.totalorder %s5009_s27, 1  ;;  %s4355_s9 = smul.u32 288, %s5009_s27 }
  0x10   : > { %s9063_s27 = smov (!%p286_p4, %s5009_s27), 1  ;;  %s5087_s12 = scalar_lea.vmem %s8327_s0, %s4355_s9 }
  0x11   : > { %s4354_s13 = sshll.u32 %s9063_s27, 7  ;;  %s301_s16 = scalar_lea.vmem %s8335_s8, %s9063_s27  ;;  %v345_v0 = vld [vmem:[%s5087_s12] sm:$0xff]  ;;  %v5096_v1 = vld [vmem:[%s5087_s12 + $0x8] sm:$0xff]  ;;  %v5099_v2 = vld [vmem:[%s5087_s12 + $0x10] sm:$0xff] }
  0x12   : > { %s5104_s19 = scalar_lea.vmem %s8334_s7, %s4354_s13  ;;  %v5107_v3 = vld [vmem:[%s5087_s12 + $0x18] sm:$0xff]  ;;  %v5110_v4 = vld [vmem:[%s5087_s12 + $0x20] sm:$0xff]  ;;  %v5113_v5 = vld [vmem:[%s5087_s12 + $0x28] sm:$0xff] }
  0x13   : > { %v5116_v6 = vld [vmem:[%s5087_s12 + $0x30] sm:$0xff]  ;;  %v5119_v7 = vld [vmem:[%s5087_s12 + $0x38] sm:$0xff]  ;;  %v5122_v8 = vld [vmem:[%s5087_s12 + $0x40] sm:$0xff] }
  0x14   : > { %v5125_v9 = vld [vmem:[%s5087_s12 + $0x48] sm:$0xff]  ;;  %v5128_v10 = vld [vmem:[%s5087_s12 + $0x50] sm:$0xff]  ;;  %v5131_v11 = vld [vmem:[%s5087_s12 + $0x58] sm:$0xff] }
  0x15   : > { %v5134_v12 = vld [vmem:[%s5087_s12 + $0x60] sm:$0xff]  ;;  %v5137_v13 = vld [vmem:[%s5087_s12 + $0x68] sm:$0xff]  ;;  %v5140_v14 = vld [vmem:[%s5087_s12 + $0x70] sm:$0xff] }
  0x16   : > { %v5143_v15 = vld [vmem:[%s5087_s12 + $0x78] sm:$0xff]  ;;  %v5146_v16 = vld [vmem:[%s5087_s12 + $0x80] sm:$0xff]  ;;  %v5149_v17 = vld [vmem:[%s5087_s12 + $0x88] sm:$0xff] }
  0x17   : > { %v381_v18 = vld [vmem:[%s5087_s12 + $0x90] sm:$0xff]  ;;  %v383_v19 = vld [vmem:[%s5087_s12 + $0x98] sm:$0xff]  ;;  %v5154_v20 = vld [vmem:[%s5087_s12 + $0xa0] sm:$0xff] }
  0x18   : > { %v5157_v21 = vld [vmem:[%s5087_s12 + $0xa8] sm:$0xff]  ;;  %v5160_v22 = vld [vmem:[%s5087_s12 + $0xb0] sm:$0xff]  ;;  %v5163_v23 = vld [vmem:[%s5087_s12 + $0xb8] sm:$0xff] }
  0x19   : > { %v5166_v24 = vld [vmem:[%s5087_s12 + $0xc0] sm:$0xff]  ;;  %v5169_v25 = vld [vmem:[%s5087_s12 + $0xc8] sm:$0xff]  ;;  %v5172_v26 = vld [vmem:[%s5087_s12 + $0xd0] sm:$0xff] }
  0x1a   : > { %v5175_v27 = vld [vmem:[%s5087_s12 + $0xd8] sm:$0xff]  ;;  %v5178_v28 = vld [vmem:[%s5087_s12 + $0xe0] sm:$0xff]  ;;  %v5181_v29 = vld [vmem:[%s5087_s12 + $0xe8] sm:$0xff] }
  0x1b   : > { %v5184_v30 = vld [vmem:[%s5087_s12 + $0xf0] sm:$0xff]  ;;  %v5187_v31 = vld [vmem:[%s5087_s12 + $0xf8] sm:$0xff]  ;;  %v5190_v32 = vld [vmem:[%s5087_s12 + $0x100] sm:$0xff] }
  0x1c   : > { %v5193_v33 = vld [vmem:[%s5087_s12 + $0x108] sm:$0xff]  ;;  %v5196_v34 = vld [vmem:[%s5087_s12 + $0x110] sm:$0xff]  ;;  %v5199_v35 = vld [vmem:[%s5087_s12 + $0x118] sm:$0xff] }
  0x1d   : > { %424 = vsyncadd [#allocation3], 4608 }
  0x1e   : > { %5005 = dma.done.wait [#allocation3], 4608 }
  0x1f   : > { %5006 = vsyncadd [#allocation3], 4294962688  ;;  %4543 = vmatprep.mubr.bf16.mxu0 %v345_v0  ;;  %4579 = vmatprep.mubr.bf16.mxu1 %v381_v18  ;;  %v4655_v36 = vld [vmem:[%s8328_s1] sm:$0xff]   ;;  %v4656_v37 = vld [vmem:[%s8328_s1 + $0x8] sm:$0xff]   ;;  %vm2118_vm2 = vcmask 1046528   ;;  %vm2851_vm3 = vcmask 1045504  }
  0x20   : > { %4527 = vmatprep.subr.bf16.mxu0 %v4655_v36  ;;  %4615 = vmatprep.subr.bf16.mxu1 %v4655_v36  ;;  %v4657_v38 = vld [vmem:[%s8328_s1 + $0x10] sm:$0xff]   ;;  %v4658_v39 = vld [vmem:[%s8328_s1 + $0x18] sm:$0xff]   ;;  %v4659_v40 = vld [vmem:[%s8328_s1 + $0x20] sm:$0xff]  }
  0x21   : > { %4528 = vmatpush3.bf16.msra.mxu0 %v4655_v36  ;;  %4623 = vmatpush3.bf16.msra.mxu1 %v4655_v36  ;;  %v4660_v41 = vld [vmem:[%s8328_s1 + $0x28] sm:$0xff]   ;;  %v4661_v42 = vld [vmem:[%s8328_s1 + $0x30] sm:$0xff]   ;;  %v4662_v43 = vld [vmem:[%s8328_s1 + $0x38] sm:$0xff]  }
  0x22   : > { %4529 = vmatprep.subr.bf16.mxu0 %v4656_v37  ;;  %4616 = vmatprep.subr.bf16.mxu1 %v4656_v37  ;;  %v5261_v44 = vld [vmem:[%s8329_s2] ss:$0 sm:$0xff] }
  0x23   : > { %v5266_v47 = vld [vmem:[%s8330_s3] ss:$0 sm:$0xff] }
  0x25   : > { %4530 = vmatpush3.bf16.msra.mxu0 %v4656_v37  ;;  %4624 = vmatpush3.bf16.msra.mxu1 %v4656_v37 }
  0x26   : > { %4531 = vmatprep.subr.bf16.mxu0 %v4657_v38  ;;  %4617 = vmatprep.subr.bf16.mxu1 %v4657_v38 }
  0x29   : > { %4532 = vmatpush3.bf16.msra.mxu0 %v4657_v38  ;;  %4625 = vmatpush3.bf16.msra.mxu1 %v4657_v38 }
  0x2a   : > { %4533 = vmatprep.subr.bf16.mxu0 %v4658_v39  ;;  %4618 = vmatprep.subr.bf16.mxu1 %v4658_v39 }
  0x2d   : > { %4534 = vmatpush3.bf16.msra.mxu0 %v4658_v39  ;;  %4626 = vmatpush3.bf16.msra.mxu1 %v4658_v39 }
  0x2e   : > { %4535 = vmatprep.subr.bf16.mxu0 %v4659_v40  ;;  %4619 = vmatprep.subr.bf16.mxu1 %v4659_v40 }
  0x31   : > { %4536 = vmatpush3.bf16.msra.mxu0 %v4659_v40  ;;  %4627 = vmatpush3.bf16.msra.mxu1 %v4659_v40  ;;  %v1842_v40 = vld [vmem:[%s8331_s4 + $0x4] sm:$0x7] }
  0x32   : > { %4537 = vmatprep.subr.bf16.mxu0 %v4660_v41  ;;  %4620 = vmatprep.subr.bf16.mxu1 %v4660_v41 }
  0x35   : > { %4538 = vmatpush3.bf16.msra.mxu0 %v4660_v41  ;;  %4628 = vmatpush3.bf16.msra.mxu1 %v4660_v41 }
  0x36   : > { %4539 = vmatprep.subr.bf16.mxu0 %v4661_v42  ;;  %4621 = vmatprep.subr.bf16.mxu1 %v4661_v42 }
  0x39   : > { %4540 = vmatpush3.bf16.msra.mxu0 %v4661_v42  ;;  %4629 = vmatpush3.bf16.msra.mxu1 %v4661_v42 }
  0x3a   : > { %4541 = vmatprep.subr.bf16.mxu0 %v4662_v43  ;;  %4622 = vmatprep.subr.bf16.mxu1 %v4662_v43 }
  0x3d   : > { %4542 = vmatpush3.bf16.msra.mxu0 %v4662_v43  ;;  %4630 = vmatpush3.bf16.msra.mxu1 %v4662_v43 }
  0x40   : > { %4544 = vmatmul.mubr.bf16.vlgmr.msra.gmra.mrb[0].mxu0 %v5096_v1  ;;  %4580 = vmatmul.mubr.bf16.vlgmr.msra.gmra.mrb[0].mxu1 %v383_v19  ;;  %v1507_v1 = vlaneseq }
  0x41   : > { %4547 = vmatprep.mubr.bf16.mxu0 %v5099_v2  ;;  %4583 = vmatprep.mubr.bf16.mxu1 %v5154_v20 }
  0x48   : > { %4548 = vmatmul.mubr.bf16.gmra.mrb[4].mxu0 %v5107_v3  ;;  %4584 = vmatmul.mubr.bf16.gmra.mrb[4].mxu1 %v5157_v21 }
  0x49   : > { %4551 = vmatprep.mubr.bf16.mxu0 %v5110_v4  ;;  %4587 = vmatprep.mubr.bf16.mxu1 %v5160_v22 }
  0x50   : > { %4552 = vmatmul.mubr.bf16.gmra.mrb[8].mxu0 %v5113_v5  ;;  %4588 = vmatmul.mubr.bf16.gmra.mrb[8].mxu1 %v5163_v23 }
  0x51   : > { %4555 = vmatprep.mubr.bf16.mxu0 %v5116_v6  ;;  %4591 = vmatprep.mubr.bf16.mxu1 %v5166_v24 }
  0x58   : > { %4556 = vmatmul.mubr.bf16.gmra.mrb[12].mxu0 %v5119_v7  ;;  %4592 = vmatmul.mubr.bf16.gmra.mrb[12].mxu1 %v5169_v25 }
  0x59   : > { %4559 = vmatprep.mubr.bf16.mxu0 %v5122_v8  ;;  %4595 = vmatprep.mubr.bf16.mxu1 %v5172_v26 }
  0x60   : > { %4560 = vmatmul.mubr.bf16.gmra.mrb[16].mxu0 %v5125_v9  ;;  %4596 = vmatmul.mubr.bf16.gmra.mrb[16].mxu1 %v5175_v27 }
  0x61   : > { %4563 = vmatprep.mubr.bf16.mxu0 %v5128_v10  ;;  %4599 = vmatprep.mubr.bf16.mxu1 %v5178_v28 }
  0x68   : > { %4564 = vmatmul.mubr.bf16.gmra.mrb[20].mxu0 %v5131_v11  ;;  %4600 = vmatmul.mubr.bf16.gmra.mrb[20].mxu1 %v5181_v29 }
  0x69   : > { %4567 = vmatprep.mubr.bf16.mxu0 %v5134_v12  ;;  %4603 = vmatprep.mubr.bf16.mxu1 %v5184_v30 }
  0x70   : > { %4568 = vmatmul.mubr.bf16.gmra.mrb[24].mxu0 %v5137_v13  ;;  %4604 = vmatmul.mubr.bf16.gmra.mrb[24].mxu1 %v5187_v31 }
  0x71   : > { %4571 = vmatprep.mubr.bf16.mxu0 %v5140_v14  ;;  %4607 = vmatprep.mubr.bf16.mxu1 %v5190_v32 }
  0x78   : > { %4572 = vmatmul.mubr.bf16.gmra.mrb[28].mxu0 %v5143_v15  ;;  %4608 = vmatmul.mubr.bf16.gmra.mrb[28].mxu1 %v5193_v33 }
  0x79   : > { %4575 = vmatprep.mubr.bf16.mxu0 %v5146_v16  ;;  %4611 = vmatprep.mubr.bf16.mxu1 %v5196_v34 }
  0x80   : > { %4576 = vmatmul.mubr.bf16.gmra.mrb[32].mxu0 %v5149_v17  ;;  %4612 = vmatmul.mubr.bf16.gmra.mrb[32].mxu1 %v5199_v35  ;;  %v5300_v17 = vshrl.u32 %v1507_v1, 7  ;;  %v1841_v35 = vld [vmem:[%s8331_s4] sm:$0x7] }
  0x82   : > { %8463 = vst [vmem:[#allocation7_spill] sm:$0xff] %v5300_v17  ;;  %v5312_v28 = vadd.s32 16, %v5300_v17  ;;  %v2020_v36 = vsub.s32 1, %v5300_v17  ;;  %v2753_v41 = vsub.s32 2, %v5300_v17  ;;  %vm1565_vm1 = vcmp.ge.s32.totalorder %v5300_v17, 1 }
  0x84   : > { %8464 = vst [vmem:[#allocation8_spill] sm:$0xff] %v5312_v28  ;;  %vm1624_vm0 = vcmp.lt.s32.totalorder %v5312_v28, 17 }
 0x113   : > { %v4545_v45 = vpop.f32.mrb[0].mxu0  ;;  %v4581_v46 = vpop.f32.mrb[0].mxu1 }
 0x114   : > { %v1025_v48 = vmul.f32 %v4581_v46, %v5261_v44  ;;  %v720_v49 = vpop.f32.mrb[1].mxu0  ;;  %v855_v50 = vpop.f32.mrb[1].mxu1 }
 0x115   : > { %v1023_v51 = vmul.f32 %v5261_v44, %v855_v50  ;;  %v4546_v52 = vpop.f32.mrb[2].mxu0  ;;  %v4582_v53 = vpop.f32.mrb[2].mxu1  ;;  %v5333_v49 = vld [vmem:[%s8331_s4 + $0x8] sm:$0x7]  ;;  %v5336_v50 = vsub.s32 0, %v5300_v17 }
 0x116   : > { %v5271_v54 = vadd.f32 %v5266_v47, %v1025_v48  ;;  %v723_v55 = vpop.f32.mrb[3].mxu0  ;;  %v858_v56 = vpop.f32.mrb[3].mxu1 }
 0x117   : > { %v5274_v57 = vadd.f32 %v5266_v47, %v1023_v51  ;;  %v1024_v58 = vmul.f32 %v5261_v44, %v858_v56  ;;  %v5344_v56 = vrot.slane %v1841_v35, %v2020_v36  ;;  %v5358_v1 = vrot.slane %v1841_v35, %v5336_v50 }
 0x118   : > { %v4259_v59 = vmul.f32 -1.442695, %v5271_v54 }
 0x119   : > { %v4257_v60 = vmul.f32 -1.442695, %v5274_v57  ;;  %v5280_v61 = vadd.f32 %v5266_v47, %v1024_v58  ;;  %8465 = vst [vmem:[#allocation9_spill] sm:$0xff] %v5344_v56  ;;  %v5346_v58 = vrot.slane %v1842_v40, %v2020_v36 }
 0x11a   : > { %4663 = vpow2.f32 %v4259_v59 }
 0x11b   : > { %4665 = vpow2.f32 %v4257_v60  ;;  %v4258_v62 = vmul.f32 -1.442695, %v5280_v61  ;;  %v4549_v63 = vpop.f32.mrb[4].mxu0  ;;  %v4585_v0 = vpop.f32.mrb[4].mxu1  ;;  %v5350_v60 = vrot.slane %v5333_v49, %v2020_v36 }
 0x11c   : > { %v1001_v2 = vmul.f32 %v4549_v63, %v5261_v44  ;;  %v1028_v3 = vmul.f32 %v4585_v0, %v5261_v44  ;;  %v735_v4 = vpop.f32.mrb[5].mxu0  ;;  %v870_v5 = vpop.f32.mrb[5].mxu1  ;;  %v5354_v63 = vrot.slane %v1842_v40, %v2753_v41 }
 0x11d   : > { %4667 = vpow2.f32 %v4258_v62  ;;  %v999_v6 = vmul.f32 %v5261_v44, %v735_v4  ;;  %v1026_v7 = vmul.f32 %v5261_v44, %v870_v5  ;;  %v4550_v8 = vpop.f32.mrb[6].mxu0  ;;  %v4586_v9 = vpop.f32.mrb[6].mxu1  ;;  %v5352_v62 = vrot.slane %v1841_v35, %v2753_v41 }
 0x11e   : > { %v5288_v10 = vadd.f32 %v5266_v47, %v1001_v2  ;;  %v5291_v11 = vadd.f32 %v5266_v47, %v1028_v3  ;;  %v738_v12 = vpop.f32.mrb[7].mxu0  ;;  %v873_v13 = vpop.f32.mrb[7].mxu1  ;;  %v5361_v2 = vrot.slane %v5333_v49, %v2753_v41  ;;  %v5368_v8 = vrot.slane %v1842_v40, %v5336_v50 }
 0x11f   : > { %v5294_v14 = vadd.f32 %v5266_v47, %v999_v6  ;;  %v5297_v15 = vadd.f32 %v5266_v47, %v1026_v7  ;;  %v1000_v16 = vmul.f32 %v5261_v44, %v738_v12  ;;  %v1027_v23 = vmul.f32 %v5261_v44, %v873_v13 }
 0x120   : > { %v4235_v18 = vmul.f32 -1.442695, %v5288_v10  ;;  %v4262_v19 = vmul.f32 -1.442695, %v5291_v11  ;;  %v5371_v9 = vmul.f32 0.0, %v5344_v56 }
 0x121   : > { %v4233_v20 = vmul.f32 -1.442695, %v5294_v14  ;;  %v4260_v21 = vmul.f32 -1.442695, %v5297_v15  ;;  %v5307_v22 = vadd.f32 %v5266_v47, %v1000_v16  ;;  %v5321_v37 = vadd.f32 %v5266_v47, %v1027_v23 }
 0x122   : > { %4669 = vpow2.f32 %v4235_v18  ;;  %8467 = vst [vmem:[#allocation11_spill] sm:$0xff] %v5371_v9 }
 0x123   : > { %4671 = vpow2.f32 %v4262_v19  ;;  %v4234_v24 = vmul.f32 -1.442695, %v5307_v22  ;;  %v4553_v25 = vpop.f32.mrb[8].mxu0  ;;  %v4589_v26 = vpop.f32.mrb[8].mxu1  ;;  %v4261_v59 = vmul.f32 -1.442695, %v5321_v37 }
 0x124   : > { %v4664_v27 = vpop.eup %4663  ;;  %4673 = vpow2.f32 %v4233_v20  ;;  %v1004_v29 = vmul.f32 %v4553_v25, %v5261_v44  ;;  %v1031_v30 = vmul.f32 %v4589_v26, %v5261_v44  ;;  %v750_v31 = vpop.f32.mrb[9].mxu0 }
 0x125   : > { %v885_v32 = vpop.f32.mrb[9].mxu1  ;;  %v4666_v33 = vpop.eup %4665  ;;  %v1302_v34 = vadd.f32 1.0, %v4664_v27  ;;  %4675 = vpow2.f32 %v4260_v21  ;;  %v1002_v52 = vmul.f32 %v5261_v44, %v750_v31 }
 0x126   : > { %v4554_v38 = vpop.f32.mrb[10].mxu0  ;;  %v4590_v39 = vpop.f32.mrb[10].mxu1  ;;  %v1300_v42 = vadd.f32 1.0, %v4666_v33  ;;  %4677 = vpow2.f32 %v4234_v24  ;;  %v5328_v43 = vadd.f32 %v5266_v47, %v1004_v29  ;;  %v5339_v51 = vadd.f32 %v5266_v47, %v1031_v30 }
 0x127   : > { %v753_v45 = vpop.f32.mrb[11].mxu0  ;;  %v888_v46 = vpop.f32.mrb[11].mxu1  ;;  %4679 = vrcp.f32 %v1302_v34  ;;  %v1029_v55 = vmul.f32 %v5261_v44, %v885_v32  ;;  %v5365_v4 = vadd.f32 %v5266_v47, %v1002_v52  ;;  %v5383_v32 = vmul.f32 0.0, %v5358_v1 }
 0x128   : > { %v4668_v48 = vpop.eup %4667  ;;  %4681 = vrcp.f32 %v1300_v42  ;;  %v4238_v0 = vmul.f32 -1.442695, %v5328_v43  ;;  %v4265_v3 = vmul.f32 -1.442695, %v5339_v51  ;;  %v1003_v20 = vmul.f32 %v5261_v44, %v753_v45 }
 0x129   : > { %v1301_v53 = vadd.f32 1.0, %v4668_v48  ;;  %8466 = vst [vmem:[#allocation10_spill] sm:$0xff] %v5365_v4  ;;  %v5374_v12 = vadd.f32 %v5266_v47, %v1029_v55  ;;  %v1030_v21 = vmul.f32 %v5261_v44, %v888_v46  ;;  %v4236_v33 = vmul.f32 -1.442695, %v5365_v4 }
 0x12a   : > { %v5387_v34 = vmul.f32 0.0, %v5352_v62  ;;  %v5393_v42 = vadd.f32 %v5266_v47, %v1003_v20 }
 0x12b   : > { %v4557_v5 = vpop.f32.mrb[12].mxu0  ;;  %v4593_v6 = vpop.f32.mrb[12].mxu1  ;;  %4683 = vrcp.f32 %v1301_v53  ;;  %8468 = vst [vmem:[#allocation12_spill] sm:$0xff] %v5374_v12  ;;  %v4263_v38 = vmul.f32 -1.442695, %v5374_v12  ;;  %v5396_v45 = vadd.f32 %v5266_v47, %v1030_v21 }
 0x12c   : > { %v4670_v7 = vpop.eup %4669  ;;  %v765_v13 = vpop.f32.mrb[13].mxu0  ;;  %4685 = vpow2.f32 %v4261_v59  ;;  %v1007_v27 = vmul.f32 %v4557_v5, %v5261_v44  ;;  %8469 = vst [vmem:[#allocation13_spill] sm:$0xff] %v5387_v34  ;;  %v1034_v39 = vmul.f32 %v4593_v6, %v5261_v44  ;;  %8470 = vst [vmem:[#allocation14_spill] sm:$0xff] %v5393_v42 }
 0x12d   : > { %v900_v16 = vpop.f32.mrb[13].mxu1  ;;  %v4672_v18 = vpop.eup %4671  ;;  %v1278_v19 = vadd.f32 1.0, %v4670_v7  ;;  %4687 = vpow2.f32 %v4238_v0  ;;  %8471 = vst [vmem:[#allocation15_spill] sm:$0xff] %v5396_v45  ;;  %v1005_v55 = vmul.f32 %v5261_v44, %v765_v13 }
 0x12e   : > { %v4558_v23 = vpop.f32.mrb[14].mxu0  ;;  %v4594_v24 = vpop.f32.mrb[14].mxu1  ;;  %v1305_v26 = vadd.f32 1.0, %v4672_v18  ;;  %4689 = vpow2.f32 %v4265_v3  ;;  %v5400_v53 = vadd.f32 %v5266_v47, %v1007_v27  ;;  %v1032_v3 = vmul.f32 %v5261_v44, %v900_v16 }
 0x12f   : > { %v4674_v25 = vpop.eup %4673  ;;  %v768_v29 = vpop.f32.mrb[15].mxu0  ;;  %4691 = vrcp.f32 %v1278_v19  ;;  %v5413_v18 = vadd.f32 %v5266_v47, %v1034_v39  ;;  %v5422_v16 = vmul.f32 -1.442695, %v5393_v42  ;;  %v5425_v19 = vmul.f32 -1.442695, %v5396_v45 }
 0x130   : > { %v5380_v30 = vpop.f32.mrb[15].mxu1  ;;  %v4676_v31 = vpop.eup %4675  ;;  %4693 = vrcp.f32 %v1305_v26  ;;  %v1276_v41 = vadd.f32 1.0, %v4674_v25  ;;  %8472 = vst [vmem:[#allocation16_spill] sm:$0xff] %v5400_v53 }
 0x131   : > { %v4678_v35 = vpop.eup %4677  ;;  %v1303_v52 = vadd.f32 1.0, %v4676_v31  ;;  %4695 = vpow2.f32 %v4236_v33  ;;  %8475 = vst [vmem:[#allocation19_spill] sm:$0xff] %v5413_v18  ;;  %8478 = vst [vmem:[#allocation22_spill] sm:$0xff] %v5425_v19  ;;  %v5448_v39 = vmul.f32 -1.442695, %v5413_v18 }
 0x132   : > { %v4680_v40 = vpop.eup %4679  ;;  %v1277_v7 = vadd.f32 1.0, %v4678_v35  ;;  %4697 = vpow2.f32 %v4263_v38 }
 0x133   : > { %v4682_v46 = vpop.eup %4681  ;;  %v1464_v48 = vmul.f32 %v4680_v40, %v5271_v54  ;;  %v5406_v5 = vpop.f32.mrb[16].mxu0  ;;  %4699 = vrcp.f32 %v1276_v41  ;;  %8483 = vst [vmem:[#allocation27_spill] sm:$0xff] %v5448_v39  ;;  %v5451_v40 = vadd.f32 %v5266_v47, %v1032_v3  ;;  %v5454_v41 = vmul.f32 %v5261_v44, %v768_v29 }
 0x134   : > { %v1462_v59 = vmul.f32 %v4682_v46, %v5274_v57  ;;  %8473 = vst [vmem:[#allocation17_spill] sm:$0xff] %v5406_v5  ;;  %v5408_v6 = vpop.f32.mrb[16].mxu1  ;;  %v5415_v13 = vpop.f32.mrb[17].mxu0  ;;  %v5419_v57 = vrot.slane %v5333_v49, %v5336_v50  ;;  %4701 = vrcp.f32 %v1303_v52  ;;  %v5434_v49 = vmul.f32 -1.442695, %v5400_v53 }
 0x135   : > { %8474 = vst [vmem:[#allocation18_spill] sm:$0xff] %v5408_v6  ;;  %v1816_v54 = vsel %vm1624_vm0, %v1464_v48, 0.0  ;;  %8476 = vst [vmem:[#allocation20_spill] sm:$0xff] %v5415_v13  ;;  %v5427_v20 = vpop.f32.mrb[17].mxu1  ;;  %v4562_v21 = vpop.f32.mrb[18].mxu0  ;;  %v5437_v50 = vadd.f32 %v5266_v47, %v1005_v55  ;;  %4703 = vrcp.f32 %v1277_v7 }
 0x136   : > { %8477 = vst [vmem:[#allocation21_spill] sm:$0xff] %v5419_v57  ;;  %8479 = vst [vmem:[#allocation23_spill] sm:$0xff] %v5427_v20  ;;  %v4684_v23 = vpop.eup %4683  ;;  %v5431_v24 = vsel %vm1565_vm1, %v1462_v59, 0.0  ;;  %v4598_v25 = vpop.f32.mrb[18].mxu1  ;;  %v2293_v27 = vmul.f32 %v5346_v58, %v1816_v54  ;;  %v2534_v31 = vmul.f32 %v5350_v60, %v1816_v54  ;;  %v2784_v33 = vmul.f32 %v5352_v62, %v1816_v54 }
 0x137   : > { %8480 = vst [vmem:[#allocation24_spill] sm:$0xff] %v5431_v24  ;;  %8481 = vst [vmem:[#allocation25_spill] sm:$0xff] %v5434_v49  ;;  %v5439_v26 = vpop.eup %4685  ;;  %v3026_v35 = vmul.f32 %v5354_v63, %v1816_v54  ;;  %v5459_v48 = vmul.f32 %v5344_v56, %v1816_v54  ;;  %v2291_v52 = vmul.f32 %v5346_v58, %v5431_v24  ;;  %v5475_v45 = vpop.f32.mrb[19].mxu0  ;;  %4705 = vpow2.f32 %v5422_v16 }
 0x138   : > { %8482 = vst [vmem:[#allocation26_spill] sm:$0xff] %v5437_v50  ;;  %v5445_v38 = vpop.eup %4687  ;;  %8484 = vst [vmem:[#allocation28_spill] sm:$0xff] %v5451_v40  ;;  %v2532_v55 = vmul.f32 %v5350_v60, %v5431_v24  ;;  %v5466_v59 = vmul.f32 %v4684_v23, %v5280_v61  ;;  %v3267_v3 = vmul.f32 %v5361_v2, %v1816_v54  ;;  %v2406_v36 = vrot.slane %v2293_v27, 1 }
 0x139   : > { %v5456_v46 = vpop.eup %4689  ;;  %v2782_v29 = vmul.f32 %v5352_v62, %v5431_v24  ;;  %v3024_v21 = vmul.f32 %v5354_v63, %v5431_v24  ;;  %v3265_v25 = vmul.f32 %v5361_v2, %v5431_v24  ;;  %v2645_v18 = vrot.slane %v2534_v31, 1  ;;  %8486 = vst [vmem:[#allocation30_spill] sm:$0xff] %v5475_v45 }
 0x13a   : > { %8485 = vst [vmem:[#allocation29_spill] sm:$0xff] %v5466_v59  ;;  %v4692_v7 = vpop.eup %4691  ;;  %v2900_v20 = vrot.slane %v2784_v33, 2  ;;  %v3139_v13 = vrot.slane %v3026_v35, 2  ;;  %v2403_v53 = vrot.slane %v2291_v52, 1  ;;  %v2642_v61 = vrot.slane %v2532_v55, 1 }
 0x13b   : > { %v4694_v0 = vpop.eup %4693  ;;  %v2897_v23 = vrot.slane %v2782_v29, 2  ;;  %v3136_v6 = vrot.slane %v3024_v21, 2  ;;  %v2292_v39 = vmul.f32 %v5346_v58, %v5466_v59  ;;  %v2533_v34 = vmul.f32 %v5350_v60, %v5466_v59 }
 0x13c   : > { %v5477_v54 = vpop.eup %4695  ;;  %v2783_v27 = vmul.f32 %v5352_v62, %v5466_v59  ;;  %v3025_v31 = vmul.f32 %v5354_v63, %v5466_v59  ;;  %v3375_v35 = vrot.slane %v3265_v25, 2  ;;  %v3266_v52 = vmul.f32 %v5361_v2, %v5466_v59 }
 0x13d   : > { %v5487_v33 = vpop.eup %4697  ;;  %v1440_v55 = vmul.f32 %v4692_v7, %v5288_v10  ;;  %v1467_v29 = vmul.f32 %v4694_v0, %v5291_v11  ;;  %v2404_v45 = vrot.slane %v2292_v39, 1  ;;  %v2643_v49 = vrot.slane %v2533_v34, 1 }
 0x13e   : > { %v4700_v21 = vpop.eup %4699  ;;  %v2898_v42 = vrot.slane %v2783_v27, 2  ;;  %v3137_v9 = vrot.slane %v3025_v31, 2  ;;  %v3378_v57 = vrot.slane %v3267_v3, 2  ;;  %v3376_v5 = vrot.slane %v3266_v52, 2 }
 0x13f   : > { %v4702_v12 = vpop.eup %4701  ;;  %v1792_v19 = vsel %vm1624_vm0, %v1440_v55, 0.0  ;;  %v1819_v25 = vsel %vm1624_vm0, %v1467_v29, 0.0  ;;  %v5498_v4 = vsel %vm2118_vm2, %v2403_v53, %v2404_v45  ;;  %v5501_v10 = vsel %vm2118_vm2, %v2404_v45, %v2406_v36 }
 0x140   : > { %8487 = vst [vmem:[#allocation31_spill] sm:$0xff] %v5498_v4  ;;  %8488 = vst [vmem:[#allocation32_spill] sm:$0xff] %v5501_v10  ;;  %v5504_v11 = vsel %vm2118_vm2, %v2642_v61, %v2643_v49  ;;  %v5507_v34 = vsel %vm2118_vm2, %v2643_v49, %v2645_v18  ;;  %v4704_v0 = vpop.eup %4703  ;;  %v5510_v39 = vsel %vm2851_vm3, %v2897_v23, %v2898_v42  ;;  %v5529_v49 = vmul.f32 -1.442695, %v5437_v50 }
 0x141   : > { %8489 = vst [vmem:[#allocation33_spill] sm:$0xff] %v5504_v11  ;;  %8490 = vst [vmem:[#allocation34_spill] sm:$0xff] %v5507_v34  ;;  %v5513_v7 = vsel %vm2851_vm3, %v2898_v42, %v2900_v20  ;;  %v5516_v3 = vsel %vm2851_vm3, %v3136_v6, %v3137_v9  ;;  %v5519_v53 = vsel %vm2851_vm3, %v3137_v9, %v3139_v13  ;;  %v5542_v13 = vmul.f32 -1.442695, %v5451_v40 }
 0x142   : > { %8491 = vst [vmem:[#allocation35_spill] sm:$0xff] %v5510_v39  ;;  %8492 = vst [vmem:[#allocation36_spill] sm:$0xff] %v5513_v7  ;;  %v5522_v36 = vsel %vm2851_vm3, %v3375_v35, %v3376_v5  ;;  %v5525_v45 = vsel %vm2851_vm3, %v3376_v5, %v3378_v57  ;;  %v1438_v18 = vmul.f32 %v4700_v21, %v5294_v14  ;;  %v1304_v23 = vadd.f32 1.0, %v5439_v26 }
 0x143   : > { %8493 = vst [vmem:[#allocation37_spill] sm:$0xff] %v5516_v3  ;;  %8494 = vst [vmem:[#allocation38_spill] sm:$0xff] %v5519_v53  ;;  %v5533_v42 = vmul.f32 %v5344_v56, %v5431_v24  ;;  %v5536_v6 = vmul.f32 %v5344_v56, %v1792_v19  ;;  %v5539_v9 = vmul.f32 %v5346_v58, %v1792_v19  ;;  %v5605_v3 = vpop.f32.mrb[19].mxu1  ;;  %v1281_v11 = vadd.f32 1.0, %v5445_v38 }
 0x144   : > { %8495 = vst [vmem:[#allocation39_spill] sm:$0xff] %v5522_v36  ;;  %8496 = vst [vmem:[#allocation40_spill] sm:$0xff] %v5525_v45  ;;  %v5545_v5 = vmul.f32 %v5352_v62, %v1792_v19  ;;  %v5548_v14 = vmul.f32 %v5354_v63, %v1792_v19  ;;  %v5551_v57 = vmul.f32 %v5344_v56, %v1819_v25  ;;  %v1790_v35 = vsel %vm1565_vm1, %v1438_v18, 0.0 }
 0x145   : > { %8497 = vst [vmem:[#allocation41_spill] sm:$0xff] %v5542_v13  ;;  %v5555_v20 = vmul.f32 %v5261_v44, %v5380_v30  ;;  %v5562_v27 = vadd.f32 %v5266_v47, %v5454_v41  ;;  %v1868_v19 = vmul.f32 %v5358_v1, %v5431_v24  ;;  %v5568_v31 = vmul.f32 %v5358_v1, %v5466_v59  ;;  %v4706_v24 = vpop.eup %4705 }
 0x146   : > { %v5571_v30 = vmul.f32 %v5346_v58, %v1819_v25  ;;  %v2127_v16 = vrot.slane %v5536_v6, 1  ;;  %v2366_v41 = vrot.slane %v5539_v9, 1  ;;  %v5579_v52 = vmul.f32 %v5350_v60, %v1819_v25  ;;  %8500 = vst [vmem:[#allocation44_spill] sm:$0xff] %v5605_v3 }
 0x147   : > { %8498 = vst [vmem:[#allocation42_spill] sm:$0xff] %v5562_v27  ;;  %v2860_v55 = vrot.slane %v5545_v5, 2  ;;  %v3099_v29 = vrot.slane %v5548_v14, 2  ;;  %v5585_v61 = vmul.f32 %v5352_v62, %v1819_v25  ;;  %v5588_v18 = vmul.f32 %v5354_v63, %v1819_v25 }
 0x148   : > { %v5591_v26 = vmul.f32 %v5361_v2, %v1819_v25  ;;  %v1886_v6 = vmul.f32 %v5368_v8, %v1790_v35  ;;  %v1465_v9 = vmul.f32 %v4702_v12, %v5297_v15  ;;  %v2025_v5 = vmul.f32 %v5344_v56, %v1790_v35 }
 0x149   : > { %v2267_v14 = vmul.f32 %v5346_v58, %v1790_v35  ;;  %4707 = vrcp.f32 %v1304_v23  ;;  %v2758_v36 = vmul.f32 %v5352_v62, %v1790_v35  ;;  %v3000_v53 = vmul.f32 %v5354_v63, %v1790_v35 }
 0x14a   : > { %v5603_v25 = vsel %vm1565_vm1, %v1465_v9, 0.0  ;;  %v5609_v12 = vmul.f32 %v5358_v1, %v1790_v35  ;;  %v5614_v45 = vmul.f32 %v4704_v0, %v5307_v22  ;;  %v5619_v9 = vadd.f32 %v1886_v6, %v5383_v32 }
 0x14b   : > { %8499 = vst [vmem:[#allocation43_spill] sm:$0xff] %v5603_v25  ;;  %v1904_v23 = vmul.f32 %v5368_v8, %v5603_v25  ;;  %v2124_v10 = vrot.slane %v2025_v5, 1  ;;  %v2363_v15 = vrot.slane %v2267_v14, 1  ;;  %v1308_v35 = vadd.f32 1.0, %v5456_v46 }
 0x14c   : > { %v2857_v40 = vrot.slane %v2758_v36, 2  ;;  %v3096_v50 = vrot.slane %v3000_v53, 2  ;;  %v5627_v22 = vmul.f32 %v5344_v56, %v5603_v25  ;;  %v1279_v0 = vadd.f32 1.0, %v5477_v54 }
 0x14d   : > { %v5622_v4 = vadd.f32 %v1904_v23, %v1868_v19  ;;  %v2535_v6 = vmul.f32 %v5350_v60, %v5603_v25  ;;  %v2785_v38 = vmul.f32 %v5352_v62, %v5603_v25  ;;  %v2026_v19 = vmul.f32 %v5344_v56, %v5614_v45 }
 0x14e   : > { %v2268_v46 = vmul.f32 %v5346_v58, %v5614_v45  ;;  %v3027_v53 = vmul.f32 %v5354_v63, %v5603_v25  ;;  %v2759_v36 = vmul.f32 %v5352_v62, %v5614_v45  ;;  %v3001_v54 = vmul.f32 %v5354_v63, %v5614_v45 }
 0x14f   : > { %4709 = vrcp.f32 %v1281_v11  ;;  %v2125_v5 = vrot.slane %v2026_v19, 1  ;;  %v1306_v23 = vadd.f32 1.0, %v5487_v33  ;;  %v2050_v3 = vmul.f32 %v5344_v56, %v5466_v59 }
 0x150   : > { %v2364_v14 = vrot.slane %v2268_v46, 1  ;;  %4711 = vrcp.f32 %v1308_v35  ;;  %v2858_v34 = vrot.slane %v2759_v36, 2  ;;  %v3097_v21 = vrot.slane %v3001_v54, 2  ;;  %v5689_v54 = vpop.f32.mrb[20].mxu0 }
 0x151   : > { %4713 = vrcp.f32 %v1279_v0  ;;  %v5648_v39 = vsel %vm2118_vm2, %v2124_v10, %v2125_v5  ;;  %v5651_v13 = vsel %vm2118_vm2, %v2125_v5, %v2127_v16  ;;  %v5673_v16 = vmul.f32 %v5358_v1, %v5603_v25  ;;  %8506 = vst [vmem:[#allocation50_spill] sm:$0xff] %v5689_v54  ;;  %v8535_v54 = vld [vmem:[#allocation11_spill] sm:$0xff] }
 0x152   : > { %8501 = vst [vmem:[#allocation45_spill] sm:$0xff] %v5648_v39  ;;  %8502 = vst [vmem:[#allocation46_spill] sm:$0xff] %v5651_v13  ;;  %v5654_v11 = vsel %vm2118_vm2, %v2363_v15, %v2364_v14  ;;  %v5657_v35 = vsel %vm2118_vm2, %v2364_v14, %v2366_v41  ;;  %v5660_v33 = vsel %vm2851_vm3, %v2857_v40, %v2858_v34  ;;  %v2165_v40 = vrot.slane %v2050_v3, 1  ;;  %v5712_v13 = vpop.f32.mrb[20].mxu1 }
 0x153   : > { %v4708_v7 = vpop.eup %4707  ;;  %8503 = vst [vmem:[#allocation47_spill] sm:$0xff] %v5660_v33  ;;  %v5663_v0 = vsel %vm2851_vm3, %v2858_v34, %v2860_v55  ;;  %v5666_v19 = vsel %vm2851_vm3, %v3096_v50, %v3097_v21  ;;  %v5669_v10 = vsel %vm2851_vm3, %v3097_v21, %v3099_v29  ;;  %v3268_v41 = vmul.f32 %v5361_v2, %v5603_v25 }
 0x154   : > { %8504 = vst [vmem:[#allocation48_spill] sm:$0xff] %v5663_v0  ;;  %v5678_v15 = vmul.f32 %v4708_v7, %v5321_v37  ;;  %v5683_v50 = vmul.f32 %v5346_v58, %v5603_v25  ;;  %v2647_v55 = vrot.slane %v2535_v6, 1  ;;  %v2902_v29 = vrot.slane %v2785_v38, 2  ;;  %8509 = vst [vmem:[#allocation51_spill] sm:$0xff] %v5712_v13 }
 0x155   : > { %v3141_v21 = vrot.slane %v3027_v53, 2  ;;  %4715 = vrcp.f32 %v1306_v23  ;;  %v8507_v6 = vrot.slane %v5533_v42, 1  ;;  %v3380_v53 = vrot.slane %v3268_v41, 2 }
 0x156   : > { %8505 = vst [vmem:[#allocation49_spill] sm:$0xff] %v5678_v15  ;;  %v1905_v46 = vmul.f32 %v5368_v8, %v5678_v15  ;;  %v2536_v36 = vmul.f32 %v5350_v60, %v5678_v15  ;;  %v2786_v37 = vmul.f32 %v5352_v62, %v5678_v15  ;;  %v3028_v7 = vmul.f32 %v5354_v63, %v5678_v15 }
 0x157   : > { %v3269_v3 = vmul.f32 %v5361_v2, %v5678_v15  ;;  %v5700_v38 = vsel %vm2118_vm2, %v8507_v6, %v2165_v40  ;;  %v8508_v23 = vrot.slane %v5459_v48, 1  ;;  %v1887_v25 = vmul.f32 %v5368_v8, %v5614_v45 }
 0x158   : > { %v5703_v5 = vadd.f32 %v1905_v46, %v5568_v31  ;;  %v2648_v14 = vrot.slane %v2536_v36, 1  ;;  %v2903_v0 = vrot.slane %v2786_v37, 2  ;;  %v3142_v33 = vrot.slane %v3028_v7, 2 }
 0x159   : > { %v5708_v34 = vsel %vm2118_vm2, %v2165_v40, %v8508_v23  ;;  %v4710_v59 = vpop.eup %4709  ;;  %v3381_v42 = vrot.slane %v3269_v3, 2  ;;  %v8511_v31 = vrot.slane %v5579_v52, 1  ;;  %v1280_v46 = vadd.f32 1.0, %v4706_v24 }
 0x15a   : > { %v4712_v6 = vpop.eup %4711  ;;  %v5715_v41 = vsel %vm2118_vm2, %v2647_v55, %v2648_v14  ;;  %v1443_v40 = vmul.f32 %v4710_v59, %v5328_v43  ;;  %v5724_v23 = vsel %vm2851_vm3, %v2902_v29, %v2903_v0  ;;  %v8514_v37 = vrot.slane %v5585_v61, 2 }
 0x15b   : > { %8510 = vst [vmem:[#allocation52_spill] sm:$0xff] %v5715_v41  ;;  %v5720_v48 = vsel %vm2118_vm2, %v2648_v14, %v8511_v31  ;;  %v4714_v36 = vpop.eup %4713  ;;  %8513 = vst [vmem:[#allocation54_spill] sm:$0xff] %v5724_v23  ;;  %v5732_v55 = vsel %vm2851_vm3, %v3141_v21, %v3142_v33  ;;  %v8517_v52 = vrot.slane %v5588_v18, 2  ;;  %v5740_v43 = vsel %vm2851_vm3, %v3380_v53, %v3381_v42  ;;  %v8523_v14 = vld [vmem:[#allocation10_spill] sm:$0xff]  ;;  %v8530_v23 = vld [vmem:[#allocation12_spill] sm:$0xff] }
 0x15c   : > { %8512 = vst [vmem:[#allocation53_spill] sm:$0xff] %v5720_v48  ;;  %v5729_v7 = vsel %vm2851_vm3, %v2903_v0, %v8514_v37  ;;  %8516 = vst [vmem:[#allocation56_spill] sm:$0xff] %v5732_v55  ;;  %v8520_v24 = vrot.slane %v5591_v26, 2  ;;  %v1795_v61 = vsel %vm1624_vm0, %v1443_v40, 0.0  ;;  %v1470_v0 = vmul.f32 %v4712_v6, %v5339_v51  ;;  %v5779_v6 = vpop.f32.mrb[21].mxu0 }
 0x15d   : > { %8515 = vst [vmem:[#allocation55_spill] sm:$0xff] %v5729_v7  ;;  %v5737_v3 = vsel %vm2851_vm3, %v3142_v33, %v8517_v52  ;;  %8519 = vst [vmem:[#allocation58_spill] sm:$0xff] %v5740_v43  ;;  %v2408_v29 = vrot.slane %v5683_v50, 1  ;;  %v5753_v18 = vmul.f32 %v5358_v1, %v5614_v45  ;;  %v5756_v33 = vadd.f32 %v1887_v25, %v5383_v32  ;;  %v4566_v52 = vpop.f32.mrb[22].mxu0 }
 0x15e   : > { %8518 = vst [vmem:[#allocation57_spill] sm:$0xff] %v5737_v3  ;;  %v5745_v59 = vsel %vm2851_vm3, %v3381_v42, %v8520_v24  ;;  %v2295_v26 = vmul.f32 %v5346_v58, %v5678_v15  ;;  %v5761_v21 = vmul.f32 %v5344_v56, %v1795_v61  ;;  %v1822_v53 = vsel %vm1624_vm0, %v1470_v0, 0.0  ;;  %v8524_v42 = vld [vmem:[#allocation22_spill] sm:$0xff]  ;;  %8525 = vst [vmem:[#allocation10_spill] sm:$0xff] %v5779_v6  ;;  %v8529_v6 = vld [vmem:[#allocation21_spill] sm:$0xff] }
 0x15f   : > { %8521 = vst [vmem:[#allocation59_spill] sm:$0xff] %v5745_v59  ;;  %v1441_v51 = vmul.f32 %v4714_v36, %v8523_v14  ;;  %4717 = vpow2.f32 %v8524_v42  ;;  %v5768_v50 = vmul.f32 %v5346_v58, %v1795_v61  ;;  %v5771_v45 = vmul.f32 %v5350_v60, %v1795_v61  ;;  %v4716_v31 = vpop.eup %4715 }
 0x160   : > { %8522 = vst [vmem:[#allocation60_spill] sm:$0xff] %v5761_v21  ;;  %v5774_v32 = vmul.f32 %v5352_v62, %v1795_v61  ;;  %v5777_v25 = vmul.f32 %v5354_v63, %v1795_v61  ;;  %v5782_v40 = vmul.f32 %v5361_v2, %v1795_v61  ;;  %4719 = vrcp.f32 %v1280_v46  ;;  %v8527_v61 = vld [vmem:[#allocation17_spill] sm:$0xff] }
 0x161   : > { %v5785_v36 = vmul.f32 -1.442695, %v5562_v27  ;;  %v5789_v37 = vadd.f32 %v5266_v47, %v5555_v20  ;;  %v5793_v24 = vmul.f32 %v5358_v1, %v5678_v15  ;;  %v5796_v0 = vmul.f32 %v5344_v56, %v1822_v53 }
 0x162   : > { %v2409_v14 = vrot.slane %v2295_v26, 1  ;;  %v5800_v42 = vmul.f32 %v8527_v61, %v5261_v44  ;;  %v5804_v59 = vmul.f32 %v5346_v58, %v1822_v53  ;;  %v5807_v20 = vmul.f32 %v5350_v60, %v1822_v53 }
 0x163   : > { %8526 = vst [vmem:[#allocation22_spill] sm:$0xff] %v5796_v0  ;;  %v1793_v52 = vsel %vm1565_vm1, %v1441_v51, 0.0  ;;  %v1468_v27 = vmul.f32 %v4716_v31, %v8530_v23  ;;  %v5821_v51 = vmul.f32 %v5352_v62, %v1822_v53  ;;  %v5824_v43 = vmul.f32 %v5354_v63, %v1822_v53  ;;  %v5843_v0 = vpop.f32.mrb[21].mxu1 }
 0x164   : > { %8528 = vst [vmem:[#allocation17_spill] sm:$0xff] %v5804_v59  ;;  %v1888_v46 = vmul.f32 %v5368_v8, %v1793_v52  ;;  %v1954_v7 = vmul.f32 %v8529_v6, %v1793_v52  ;;  %v5827_v26 = vmul.f32 %v5361_v2, %v1822_v53  ;;  %v5836_v31 = vmul.f32 %v5344_v56, %v1793_v52 }
 0x165   : > { %8531 = vst [vmem:[#allocation21_spill] sm:$0xff] %v5821_v51  ;;  %v5839_v39 = vmul.f32 %v5346_v58, %v1793_v52  ;;  %v2511_v13 = vmul.f32 %v5350_v60, %v1793_v52  ;;  %v2761_v53 = vmul.f32 %v5352_v62, %v1793_v52  ;;  %8534 = vst [vmem:[#allocation62_spill] sm:$0xff] %v5843_v0  ;;  %v8536_v41 = vrot.slane %v8535_v54, 1 }
 0x166   : > { %8532 = vst [vmem:[#allocation12_spill] sm:$0xff] %v5827_v26  ;;  %v5832_v48 = vadd.f32 %v1888_v46, %v5609_v12  ;;  %v1986_v23 = vadd.f32 %v1954_v7, %v5619_v9  ;;  %v3003_v12 = vmul.f32 %v5354_v63, %v1793_v52  ;;  %v5850_v9 = vsel %vm1565_vm1, %v1468_v27, 0.0  ;;  %v4602_v46 = vpop.f32.mrb[22].mxu1 }
 0x167   : > { %v2410_v7 = vsel %vm2118_vm2, %v2408_v29, %v2409_v14  ;;  %v3244_v59 = vmul.f32 %v5361_v2, %v1793_v52  ;;  %v1906_v0 = vmul.f32 %v5368_v8, %v5850_v9  ;;  %v1972_v3 = vmul.f32 %v8529_v6, %v5850_v9 }
 0x168   : > { %8533 = vst [vmem:[#allocation61_spill] sm:$0xff] %v5832_v48  ;;  %v2231_v21 = vadd.f32 %v8536_v41, %v1986_v23  ;;  %v8537_v29 = vrot.slane %v5571_v30, 1  ;;  %v5868_v48 = vmul.f32 %v5358_v1, %v1793_v52  ;;  %v2368_v23 = vrot.slane %v5839_v39, 1  ;;  %v8542_v39 = vld [vmem:[#allocation25_spill] sm:$0xff] }
 0x169   : > { %v4718_v61 = vpop.eup %4717  ;;  %v5872_v55 = vadd.f32 %v1906_v0, %v5673_v16  ;;  %v2004_v51 = vadd.f32 %v1972_v3, %v5622_v4  ;;  %v2607_v17 = vrot.slane %v2511_v13, 1  ;;  %v2862_v26 = vrot.slane %v2761_v53, 2 }
 0x16a   : > { %v4720_v41 = vpop.eup %4719  ;;  %v2475_v27 = vadd.f32 %v5654_v11, %v2231_v21  ;;  %v5865_v46 = vsel %vm2118_vm2, %v2409_v14, %v8537_v29  ;;  %8538 = vst [vmem:[#allocation11_spill] sm:$0xff] %v5868_v48  ;;  %v3101_v11 = vrot.slane %v3003_v12, 2  ;;  %v3340_v21 = vrot.slane %v3244_v59, 2  ;;  %v8540_v14 = vld [vmem:[#allocation14_spill] sm:$0xff] }
 0x16b   : > { %8539 = vst [vmem:[#allocation63_spill] sm:$0xff] %v5872_v55  ;;  %v2249_v30 = vadd.f32 %v5700_v38, %v2004_v51  ;;  %v5878_v29 = vmul.f32 %v4720_v41, %v8540_v14  ;;  %v1307_v52 = vadd.f32 1.0, %v4718_v61  ;;  %v5882_v28 = vmul.f32 %v5358_v1, %v5850_v9 }
 0x16c   : > { %v5886_v16 = vmul.f32 %v5344_v56, %v5850_v9  ;;  %v5890_v4 = vmul.f32 %v5350_v60, %v5850_v9  ;;  %4721 = vpow2.f32 %v8542_v39  ;;  %v2053_v59 = vmul.f32 %v5344_v56, %v5678_v15 }
 0x16d   : > { %8541 = vst [vmem:[#allocation14_spill] sm:$0xff] %v5882_v28  ;;  %v5893_v13 = vadd.f32 %v2410_v7, %v2249_v30  ;;  %v1889_v38 = vmul.f32 %v5368_v8, %v5878_v29  ;;  %v1955_v3 = vmul.f32 %v8529_v6, %v5878_v29  ;;  %v2512_v0 = vmul.f32 %v5350_v60, %v5878_v29  ;;  %v5915_v30 = vpop.f32.mrb[23].mxu0 }
 0x16e   : > { %v2762_v61 = vmul.f32 %v5352_v62, %v5878_v29  ;;  %v3004_v51 = vmul.f32 %v5354_v63, %v5878_v29  ;;  %v3245_v53 = vmul.f32 %v5361_v2, %v5878_v29  ;;  %4723 = vrcp.f32 %v1307_v52  ;;  %8544 = vst [vmem:[#allocation64_spill] sm:$0xff] %v5915_v30 }
 0x16f   : > { %v5910_v12 = vadd.f32 %v1889_v38, %v5753_v18  ;;  %v1987_v7 = vadd.f32 %v1955_v3, %v5756_v33  ;;  %v2271_v41 = vmul.f32 %v5346_v58, %v5878_v29  ;;  %v2608_v14 = vrot.slane %v2512_v0, 1 }
 0x170   : > { %v2863_v39 = vrot.slane %v2762_v61, 2  ;;  %v3102_v15 = vrot.slane %v3004_v51, 2  ;;  %v3341_v55 = vrot.slane %v3245_v53, 2  ;;  %v5919_v28 = vmul.f32 %v5352_v62, %v5850_v9 }
 0x171   : > { %8543 = vst [vmem:[#allocation25_spill] sm:$0xff] %v5910_v12  ;;  %v8545_v48 = vrot.slane %v8535_v54, 1  ;;  %v2369_v38 = vrot.slane %v2271_v41, 1  ;;  %v2170_v12 = vrot.slane %v2053_v59, 1  ;;  %v2609_v33 = vsel %vm2118_vm2, %v2607_v17, %v2608_v14 }
 0x172   : > { %v8546_v52 = vrot.slane %v5771_v45, 1  ;;  %v5928_v0 = vsel %vm2851_vm3, %v2862_v26, %v2863_v39  ;;  %v8548_v61 = vrot.slane %v5774_v32, 2  ;;  %v2719_v54 = vadd.f32 %v2609_v33, %v2475_v27 }
 0x173   : > { %v2232_v18 = vadd.f32 %v8545_v48, %v1987_v7  ;;  %8547 = vst [vmem:[#allocation65_spill] sm:$0xff] %v5928_v0  ;;  %v5937_v48 = vsel %vm2851_vm3, %v3101_v11, %v3102_v15  ;;  %v8550_v17 = vrot.slane %v5777_v25, 2  ;;  %v5946_v26 = vmul.f32 %v5354_v63, %v5850_v9  ;;  %v8552_v11 = vld [vmem:[#allocation13_spill] sm:$0xff] }
 0x174   : > { %v2611_v3 = vsel %vm2118_vm2, %v2608_v14, %v8546_v52  ;;  %v5933_v51 = vsel %vm2851_vm3, %v2863_v39, %v8548_v61  ;;  %v3342_v32 = vsel %vm2851_vm3, %v3340_v21, %v3341_v55  ;;  %v8551_v59 = vrot.slane %v5782_v40, 2  ;;  %v8554_v14 = vld [vmem:[#allocation27_spill] sm:$0xff] }
 0x175   : > { %8549 = vst [vmem:[#allocation66_spill] sm:$0xff] %v5933_v51  ;;  %v2476_v53 = vadd.f32 %v5657_v35, %v2232_v18  ;;  %v5942_v45 = vsel %vm2851_vm3, %v3102_v15, %v8550_v17  ;;  %v5953_v35 = vsel %vm2118_vm2, %v2368_v23, %v2369_v38  ;;  %v8553_v41 = vrot.slane %v8552_v11, 2  ;;  %v8560_v11 = vld [vmem:[#allocation15_spill] sm:$0xff] }
 0x176   : > { %v3344_v7 = vsel %vm2851_vm3, %v3341_v55, %v8551_v59  ;;  %4725 = vpow2.f32 %v8554_v14  ;;  %v8555_v15 = vrot.slane %v5768_v50, 1  ;;  %v4722_v18 = vpop.eup %4721  ;;  %v5965_v40 = vmul.f32 %v5361_v2, %v5850_v9 }
 0x177   : > { %v2720_v27 = vadd.f32 %v2611_v3, %v2476_v53  ;;  %v2964_v25 = vadd.f32 %v8553_v41, %v2719_v54  ;;  %4727 = vpow2.f32 %v5529_v49  ;;  %v8556_v55 = vrot.slane %v5627_v22, 1 }
 0x178   : > { %v5961_v39 = vsel %vm2118_vm2, %v2369_v38, %v8555_v15  ;;  %v8557_v21 = vrot.slane %v5551_v57, 1  ;;  %v8558_v50 = vmov %v8553_v41  ;;  %v1284_v3 = vadd.f32 1.0, %v4722_v18  ;;  %v5990_v57 = vld [vmem:[%s8332_s5] ss:$0 sm:$0xff]  ;;  %v6028_v18 = vpop.f32.mrb[23].mxu1 }
 0x179   : > { %v5971_v23 = vsel %vm2118_vm2, %v8556_v55, %v2170_v12  ;;  %v2965_v38 = vadd.f32 %v8558_v50, %v2720_v27  ;;  %v3208_v52 = vadd.f32 %v5666_v19, %v2964_v25  ;;  %v4267_v61 = vmul.f32 -1.442695, %v5789_v37  ;;  %v4724_v19 = vpop.eup %4723  ;;  %v6004_v27 = vld [vmem:[%s8333_s6] ss:$0 sm:$0xff]  ;;  %8562 = vst [vmem:[#allocation13_spill] sm:$0xff] %v6028_v18  ;;  %v8610_v18 = vld [vmem:[#allocation22_spill] sm:$0xff] }
 0x17a   : > { %v5976_v33 = vsel %vm2118_vm2, %v2170_v12, %v8557_v21  ;;  %v5984_v49 = vmul.f32 %v5346_v58, %v5850_v9  ;;  %v2652_v22 = vrot.slane %v5890_v4, 1  ;;  %v8559_v12 = vld [vmem:[#allocation41_spill] sm:$0xff]  ;;  %v5995_v53 = vadd.f32 %v5266_v47, %v5800_v42 }
 0x17b   : > { %4729 = vpow2.f32 %v8559_v12  ;;  %v2907_v54 = vrot.slane %v5919_v28, 2  ;;  %v3209_v17 = vadd.f32 %v5669_v10, %v2965_v38  ;;  %v3452_v9 = vadd.f32 %v3342_v32, %v3208_v52  ;;  %v8561_v10 = vld [vmem:[#allocation18_spill] sm:$0xff] }
 0x17c   : > { %4731 = vrcp.f32 %v1284_v3  ;;  %v3146_v4 = vrot.slane %v5946_v26, 2  ;;  %v3385_v59 = vrot.slane %v5965_v40, 2  ;;  %v6007_v41 = vmul.f32 %v4724_v19, %v8560_v11 }
 0x17d   : > { %4733 = vpow2.f32 %v5785_v36  ;;  %v3453_v47 = vadd.f32 %v3344_v7, %v3209_v17  ;;  %v3490_v28 = vmul.f32 %v5990_v57, %v3452_v9  ;;  %v1037_v42 = vmul.f32 %v8561_v10, %v5261_v44 }
 0x17e   : > { %4735 = vpow2.f32 %v4267_v61  ;;  %v1907_v26 = vmul.f32 %v5368_v8, %v6007_v41  ;;  %v1973_v32 = vmul.f32 %v8529_v6, %v6007_v41  ;;  %v2539_v25 = vmul.f32 %v5350_v60, %v6007_v41 }
 0x17f   : > { %v4244_v14 = vmul.f32 -1.442695, %v5995_v53  ;;  %v3491_v36 = vmul.f32 %v5990_v57, %v3453_v47  ;;  %v6022_v7 = vadd.f32 %v6004_v27, %v3490_v28  ;;  %v2789_v15 = vmul.f32 %v5352_v62, %v6007_v41 }
 0x180   : > { %v3031_v44 = vmul.f32 %v5354_v63, %v6007_v41  ;;  %v6031_v40 = vadd.f32 %v1907_v26, %v5793_v24  ;;  %v2005_v55 = vadd.f32 %v1973_v32, %v5703_v5  ;;  %v2653_v21 = vrot.slane %v2539_v25, 1  ;;  %v4726_v38 = vpop.eup %4725  ;;  %v8565_v25 = vld [vmem:[#allocation21_spill] sm:$0xff] }
 0x181   : > { %v3272_v50 = vmul.f32 %v5361_v2, %v6007_v41  ;;  %v6037_v52 = vadd.f32 %v6004_v27, %v3491_v36  ;;  %v4286_v3 = vmul.f32 -1.442695, %v6022_v7  ;;  %v2908_v61 = vrot.slane %v2789_v15, 2  ;;  %v4728_v19 = vpop.eup %4727 }
 0x182   : > { %v3147_v12 = vrot.slane %v3031_v44, 2  ;;  %v2250_v17 = vadd.f32 %v5708_v34, %v2005_v55  ;;  %v2654_v24 = vsel %vm2118_vm2, %v2652_v22, %v2653_v21  ;;  %v8563_v9 = vrot.slane %v5807_v20, 1 }
 0x183   : > { %v3386_v11 = vrot.slane %v3272_v50, 2  ;;  %4737 = vpow2.f32 %v4286_v3  ;;  %v4287_v47 = vmul.f32 -1.442695, %v6037_v52  ;;  %v2737_v28 = vadd.f32 %v2654_v24, %v5893_v13 }
 0x184   : > { %v2656_v5 = vsel %vm2118_vm2, %v2653_v21, %v8563_v9  ;;  %v6048_v10 = vsel %vm2851_vm3, %v2907_v54, %v2908_v61  ;;  %v2494_v32 = vadd.f32 %v5865_v46, %v2250_v17  ;;  %v8566_v34 = vrot.slane %v8565_v25, 2  ;;  %v8571_v54 = vld [vmem:[#allocation35_spill] sm:$0xff]  ;;  %v8572_v46 = vld [vmem:[#allocation12_spill] sm:$0xff] }
 0x185   : > { %8564 = vst [vmem:[#allocation27_spill] sm:$0xff] %v6048_v10  ;;  %v4730_v26 = vpop.eup %4729  ;;  %v6057_v20 = vsel %vm2851_vm3, %v3146_v4, %v3147_v12  ;;  %v8569_v36 = vrot.slane %v5824_v43, 2  ;;  %4739 = vpow2.f32 %v4287_v47  ;;  %v2982_v44 = vadd.f32 %v8571_v54, %v2737_v28  ;;  %v8574_v17 = vld [vmem:[#allocation16_spill] sm:$0xff]  ;;  %v6073_v43 = vld [vmem:[%s8329_s2] ss:$0 sm:$0xff] }
 0x186   : > { %v6054_v22 = vsel %vm2851_vm3, %v2908_v61, %v8566_v34  ;;  %8568 = vst [vmem:[#allocation15_spill] sm:$0xff] %v6057_v20  ;;  %v4732_v13 = vpop.eup %4731  ;;  %v3387_v55 = vsel %vm2851_vm3, %v3385_v59, %v3386_v11  ;;  %v8573_v21 = vrot.slane %v8572_v46, 2  ;;  %v2738_v61 = vadd.f32 %v2656_v5, %v2494_v32  ;;  %8575 = vst [vmem:[#allocation21_spill] sm:$0xff] %v6073_v43  ;;  %v8577_v28 = vld [vmem:[#allocation56_spill] sm:$0xff] }
 0x187   : > { %8567 = vst [vmem:[#allocation41_spill] sm:$0xff] %v6054_v22  ;;  %v6062_v15 = vsel %vm2851_vm3, %v3147_v12, %v8569_v36  ;;  %v4734_v3 = vpop.eup %4733  ;;  %v1446_v4 = vmul.f32 %v4732_v13, %v8574_v17  ;;  %v1311_v24 = vadd.f32 1.0, %v4726_v38  ;;  %v8576_v12 = vld [vmem:[#allocation20_spill] sm:$0xff]  ;;  %v3226_v25 = vadd.f32 %v8577_v28, %v2982_v44  ;;  %v8580_v44 = vld [vmem:[#allocation57_spill] sm:$0xff] }
 0x188   : > { %8570 = vst [vmem:[#allocation18_spill] sm:$0xff] %v6062_v15  ;;  %v3389_v50 = vsel %vm2851_vm3, %v3386_v11, %v8573_v21  ;;  %v1008_v9 = vmul.f32 %v6073_v43, %v8576_v12  ;;  %v4736_v47 = vpop.eup %4735  ;;  %4741 = vpow2.f32 %v4244_v14  ;;  %v2029_v5 = vmul.f32 %v5344_v56, %v5878_v29  ;;  %v8578_v32 = vld [vmem:[#allocation36_spill] sm:$0xff]  ;;  %v6110_v12 = vpop.f32.mrb[24].mxu0 }
 0x189   : > { %v2413_v11 = vrot.slane %v5984_v49, 1  ;;  %v6084_v38 = vmul.f32 %v5358_v1, %v5878_v29  ;;  %v2983_v34 = vadd.f32 %v8578_v32, %v2738_v61  ;;  %4743 = vrcp.f32 %v1311_v24  ;;  %v6095_v49 = vld [vmem:[%s8330_s3] ss:$0 sm:$0xff]  ;;  %8585 = vst [vmem:[#allocation20_spill] sm:$0xff] %v6110_v12  ;;  %v6171_v0 = vpop.f32.mrb[25].mxu0 }
 0x18a   : > { %v3470_v36 = vadd.f32 %v3387_v55, %v3226_v25  ;;  %v1798_v54 = vsel %vm1624_vm0, %v1446_v4, 0.0  ;;  %v1282_v46 = vadd.f32 1.0, %v4728_v19  ;;  %v2298_v14 = vmul.f32 %v5346_v58, %v6007_v41  ;;  %8581 = vst [vmem:[#allocation35_spill] sm:$0xff] %v6095_v49  ;;  %v8584_v24 = vld [vmem:[#allocation23_spill] sm:$0xff] }
 0x18b   : > { %v3227_v21 = vadd.f32 %v8580_v44, %v2983_v34  ;;  %v1309_v17 = vadd.f32 1.0, %v4730_v26  ;;  %v6098_v29 = vadd.f32 %v6095_v49, %v1037_v42  ;;  %v6101_v55 = vadd.f32 %v6095_v49, %v1008_v9 }
 0x18c   : > { %v6105_v19 = vmul.f32 %v5358_v1, %v6007_v41  ;;  %v3508_v61 = vmul.f32 %v5990_v57, %v3470_v36  ;;  %v2130_v4 = vrot.slane %v2029_v5, 1  ;;  %v1035_v26 = vmul.f32 %v6073_v43, %v8584_v24 }
 0x18d   : > { %8582 = vst [vmem:[#allocation12_spill] sm:$0xff] %v6098_v29  ;;  %8583 = vst [vmem:[#allocation16_spill] sm:$0xff] %v6101_v55  ;;  %v3471_v28 = vadd.f32 %v3389_v50, %v3227_v21  ;;  %v6113_v25 = vmul.f32 %v5344_v56, %v1798_v54  ;;  %v1283_v42 = vadd.f32 1.0, %v4734_v3  ;;  %v1310_v32 = vadd.f32 1.0, %v4736_v47  ;;  %v4738_v9 = vpop.eup %4737  ;;  %v6125_v50 = vpop.f32.mrb[24].mxu1 }
 0x18e   : > { %v6116_v34 = vadd.f32 %v6004_v27, %v3508_v61  ;;  %v6119_v44 = vmul.f32 %v5346_v58, %v1798_v54  ;;  %4745 = vrcp.f32 %v1282_v46  ;;  %v2414_v5 = vrot.slane %v2298_v14, 1  ;;  %8588 = vst [vmem:[#allocation57_spill] sm:$0xff] %v6125_v50  ;;  %v8589_v46 = vld [vmem:[#allocation17_spill] sm:$0xff] }
 0x18f   : > { %8586 = vst [vmem:[#allocation56_spill] sm:$0xff] %v6113_v25  ;;  %v3656_v36 = vadd.f32 1.0, %v4738_v9  ;;  %v3509_v24 = vmul.f32 %v5990_v57, %v3471_v28  ;;  %v6123_v59 = vmul.f32 %v5350_v60, %v1798_v54  ;;  %4747 = vrcp.f32 %v1309_v17  ;;  %v4740_v3 = vpop.eup %4739 }
 0x190   : > { %8587 = vst [vmem:[#allocation36_spill] sm:$0xff] %v6119_v44  ;;  %v4304_v47 = vmul.f32 -1.442695, %v6116_v34  ;;  %v6129_v21 = vmul.f32 %v5352_v62, %v1798_v54  ;;  %v6132_v61 = vsel %vm2118_vm2, %v2413_v11, %v2414_v5  ;;  %v8590_v14 = vrot.slane %v8589_v46, 1 }
 0x191   : > { %v3657_v28 = vadd.f32 1.0, %v4740_v3  ;;  %4749 = vrcp.f32 %v3656_v36  ;;  %v6140_v17 = vadd.f32 %v6004_v27, %v3509_v24  ;;  %v6143_v22 = vmul.f32 %v5354_v63, %v1798_v54 }
 0x192   : > { %v6137_v9 = vsel %vm2118_vm2, %v2414_v5, %v8590_v14  ;;  %v4742_v10 = vpop.eup %4741  ;;  %4751 = vpow2.f32 %v4304_v47  ;;  %v6146_v51 = vmul.f32 %v5361_v2, %v1798_v54  ;;  %v8591_v11 = vrot.slane %v5836_v31, 1  ;;  %v8593_v5 = vld [vmem:[#allocation60_spill] sm:$0xff]  ;;  %v8596_v31 = vld [vmem:[#allocation19_spill] sm:$0xff] }
 0x193   : > { %v8594_v14 = vrot.slane %v8593_v5, 1  ;;  %v4744_v24 = vpop.eup %4743  ;;  %4753 = vrcp.f32 %v3657_v28  ;;  %v4305_v3 = vmul.f32 -1.442695, %v6140_v17  ;;  %v2056_v54 = vmul.f32 %v5344_v56, %v6007_v41  ;;  %v8598_v5 = vld [vmem:[#allocation30_spill] sm:$0xff]  ;;  %8600 = vst [vmem:[#allocation19_spill] sm:$0xff] %v6171_v0 }
 0x194   : > { %v6151_v46 = vsel %vm2118_vm2, %v8591_v11, %v2130_v4  ;;  %v1473_v50 = vmul.f32 %v4744_v24, %v8596_v31  ;;  %v6165_v11 = vadd.f32 %v6095_v49, %v1035_v26  ;;  %v4570_v26 = vpop.f32.mrb[26].mxu0  ;;  %v8601_v41 = vrot.slane %v5886_v16, 1  ;;  %v8605_v31 = vld [vmem:[#allocation50_spill] sm:$0xff] }
 0x195   : > { %8592 = vst [vmem:[#allocation23_spill] sm:$0xff] %v6151_v46  ;;  %v6156_v36 = vsel %vm2118_vm2, %v2130_v4, %v8594_v14  ;;  %v1009_v4 = vmul.f32 %v6073_v43, %v8598_v5  ;;  %4755 = vpow2.f32 %v4305_v3  ;;  %v1287_v14 = vadd.f32 1.0, %v4742_v10  ;;  %v8608_v0 = vld [vmem:[#allocation26_spill] sm:$0xff] }
 0x196   : > { %8595 = vst [vmem:[#allocation17_spill] sm:$0xff] %v6156_v36  ;;  %8597 = vst [vmem:[#allocation60_spill] sm:$0xff] %v6165_v11  ;;  %v2175_v28 = vrot.slane %v2056_v54, 1  ;;  %v8599_v36 = vld [vmem:[#allocation44_spill] sm:$0xff]  ;;  %v1825_v24 = vsel %vm1624_vm0, %v1473_v50, 0.0  ;;  %4757 = vrcp.f32 %v1283_v42 }
 0x197   : > { %v1036_v46 = vmul.f32 %v6073_v43, %v8599_v36  ;;  %v4271_v10 = vmul.f32 -1.442695, %v6098_v29  ;;  %v4242_v54 = vmul.f32 -1.442695, %v6101_v55  ;;  %4759 = vrcp.f32 %v1310_v32  ;;  %v8613_v55 = vld [vmem:[#allocation51_spill] sm:$0xff] }
 0x198   : > { %v4746_v36 = vpop.eup %4745  ;;  %v4269_v5 = vmul.f32 -1.442695, %v6165_v11  ;;  %v6185_v47 = vsel %vm2118_vm2, %v8601_v41, %v2175_v28  ;;  %v6188_v42 = vadd.f32 %v6095_v49, %v1009_v4  ;;  %v6191_v26 = vmul.f32 %v5344_v56, %v1825_v24 }
 0x199   : > { %8602 = vst [vmem:[#allocation30_spill] sm:$0xff] %v6185_v47  ;;  %v4748_v50 = vpop.eup %4747  ;;  %4761 = vrcp.f32 %v1287_v14  ;;  %v6194_v3 = vadd.f32 %v6095_v49, %v1036_v46  ;;  %v6198_v32 = vmul.f32 %v6073_v43, %v8605_v31  ;;  %v6201_v16 = vmul.f32 %v5346_v58, %v1825_v24  ;;  %v8609_v46 = vld [vmem:[#allocation28_spill] sm:$0xff] }
 0x19a   : > { %8603 = vst [vmem:[#allocation44_spill] sm:$0xff] %v6191_v26  ;;  %v6204_v41 = vmul.f32 %v5350_v60, %v1825_v24  ;;  %v6207_v4 = vmul.f32 %v5352_v62, %v1825_v24  ;;  %v1444_v47 = vmul.f32 %v4746_v36, %v8608_v0  ;;  %v6211_v14 = vmul.f32 %v5354_v63, %v1825_v24  ;;  %v8621_v26 = vld [vmem:[#allocation61_spill] sm:$0xff] }
 0x19b   : > { %8604 = vst [vmem:[#allocation67_spill] sm:$0xff] %v6194_v3  ;;  %8606 = vst [vmem:[#allocation50_spill] sm:$0xff] %v6198_v32  ;;  %v4750_v11 = vpop.eup %4749  ;;  %v1471_v12 = vmul.f32 %v4748_v50, %v8609_v46  ;;  %v8611_v31 = vrot.slane %v8610_v18, 1  ;;  %v6221_v29 = vmul.f32 %v6073_v43, %v8613_v55  ;;  %v6227_v0 = vmul.f32 %v5361_v2, %v1825_v24 }
 0x19c   : > { %8607 = vst [vmem:[#allocation68_spill] sm:$0xff] %v6201_v16  ;;  %v4752_v25 = vpop.eup %4751  ;;  %v6224_v3 = vmul.f32 %v4750_v11, %v6022_v7  ;;  %v6231_v49 = vsel %vm1565_vm1, %v1444_v47, 0.0  ;;  %4763 = vpow2.f32 %v4271_v10  ;;  %v6238_v7 = vpop.f32.mrb[25].mxu1  ;;  %v8622_v47 = vld [vmem:[#allocation45_spill] sm:$0xff] }
 0x19d   : > { %v6217_v30 = vsel %vm2118_vm2, %v2175_v28, %v8611_v31  ;;  %8614 = vst [vmem:[#allocation28_spill] sm:$0xff] %v6221_v29  ;;  %v4754_v18 = vpop.eup %4753  ;;  %v3674_v50 = vadd.f32 1.0, %v4752_v25  ;;  %v1890_v55 = vmul.f32 %v5368_v8, %v6231_v49  ;;  %v1956_v46 = vmul.f32 %v8529_v6, %v6231_v49  ;;  %8617 = vst [vmem:[#allocation51_spill] sm:$0xff] %v6238_v7  ;;  %v4606_v25 = vpop.f32.mrb[26].mxu1  ;;  %v8619_v28 = vld [vmem:[#allocation11_spill] sm:$0xff] }
 0x19e   : > { %8612 = vst [vmem:[#allocation26_spill] sm:$0xff] %v6217_v30  ;;  %8615 = vst [vmem:[#allocation22_spill] sm:$0xff] %v6224_v3  ;;  %v6241_v11 = vmul.f32 %v4754_v18, %v6037_v52  ;;  %v6252_v7 = vsel %vm1565_vm1, %v1471_v12, 0.0 }
 0x19f   : > { %v4756_v31 = vpop.eup %4755  ;;  %4765 = vrcp.f32 %v3674_v50  ;;  %v6247_v30 = vadd.f32 %v1890_v55, %v8619_v28  ;;  %v1988_v29 = vadd.f32 %v1956_v46, %v8621_v26  ;;  %v2514_v28 = vmul.f32 %v5350_v60, %v6231_v49 }
 0x1a0   : > { %8618 = vst [vmem:[#allocation69_spill] sm:$0xff] %v6241_v11  ;;  %v4758_v52 = vpop.eup %4757  ;;  %v4391_v18 = vpack.c.bf16 %v6241_v11, %v6224_v3  ;;  %v3675_v24 = vadd.f32 1.0, %v4756_v31  ;;  %v2764_v26 = vmul.f32 %v5352_v62, %v6231_v49  ;;  %4767 = vpow2.f32 %v4242_v54  ;;  %v8623_v54 = vld [vmem:[#allocation42_spill] sm:$0xff] }
 0x1a1   : > { %8620 = vst [vmem:[#allocation11_spill] sm:$0xff] %v6247_v30  ;;  %v2233_v50 = vadd.f32 %v8622_v47, %v1988_v29  ;;  %v4760_v12 = vpop.eup %4759  ;;  %v3006_v55 = vmul.f32 %v5354_v63, %v6231_v49  ;;  %v3247_v46 = vmul.f32 %v5361_v2, %v6231_v49  ;;  %v1908_v31 = vmul.f32 %v5368_v8, %v6252_v7  ;;  %v8627_v11 = vld [vmem:[#allocation14_spill] sm:$0xff] }
 0x1a2   : > { %4392 = vst [vmem:[%s5104_s19] sm:$0xff] %v4391_v18   ;;  %4769 = vrcp.f32 %v3675_v24  ;;  %v1974_v25 = vmul.f32 %v8529_v6, %v6252_v7  ;;  %v6276_v10 = vmul.f32 %v4758_v52, %v8623_v54  ;;  %v6280_v24 = vmul.f32 %v5344_v56, %v6231_v49 }
 0x1a3   : > { %v6270_v29 = vpop.eup %4761  ;;  %v2477_v47 = vadd.f32 %v5953_v35, %v2233_v50  ;;  %4771 = vpow2.f32 %v4269_v5  ;;  %v6284_v18 = vmul.f32 %v5346_v58, %v6231_v49  ;;  %v6287_v3 = vadd.f32 %v1908_v31, %v8627_v11  ;;  %v6293_v50 = vpop.f32.mrb[27].mxu0  ;;  %v8630_v5 = vld [vmem:[#allocation63_spill] sm:$0xff] }
 0x1a4   : > { %8624 = vst [vmem:[#allocation61_spill] sm:$0xff] %v6276_v10  ;;  %8625 = vst [vmem:[#allocation45_spill] sm:$0xff] %v6280_v24  ;;  %v6291_v35 = vmul.f32 %v5350_v60, %v6252_v7  ;;  %v2612_v52 = vrot.slane %v2514_v28, 1  ;;  %v2867_v54 = vrot.slane %v2764_v26, 2  ;;  %v2006_v30 = vadd.f32 %v1974_v25, %v8630_v5 }
 0x1a5   : > { %8626 = vst [vmem:[#allocation42_spill] sm:$0xff] %v6284_v18  ;;  %8628 = vst [vmem:[#allocation14_spill] sm:$0xff] %v6287_v3  ;;  %v6298_v36 = vmul.f32 %v5352_v62, %v6252_v7  ;;  %v3106_v16 = vrot.slane %v3006_v55, 2  ;;  %v3345_v43 = vrot.slane %v3247_v46, 2  ;;  %v6304_v11 = vmul.f32 %v5344_v56, %v6252_v7 }
 0x1a6   : > { %8629 = vst [vmem:[#allocation70_spill] sm:$0xff] %v6293_v50  ;;  %v6300_v32 = vpop.eup %4763  ;;  %v6308_v31 = vmul.f32 %v5354_v63, %v6252_v7  ;;  %v2251_v28 = vadd.f32 %v5971_v23, %v2006_v30  ;;  %v2657_v25 = vrot.slane %v6291_v35, 1  ;;  %v6314_v26 = vmul.f32 %v5361_v2, %v6252_v7 }
 0x1a7   : > { %8631 = vst [vmem:[#allocation63_spill] sm:$0xff] %v6300_v32  ;;  %8632 = vst [vmem:[#allocation71_spill] sm:$0xff] %v6304_v11  ;;  %v1891_v55 = vmul.f32 %v5368_v8, %v6276_v10  ;;  %v2912_v46 = vrot.slane %v6298_v36, 2  ;;  %v1957_v5 = vmul.f32 %v8529_v6, %v6276_v10  ;;  %v2515_v50 = vmul.f32 %v5350_v60, %v6276_v10  ;;  %v8634_v32 = vld [vmem:[#allocation25_spill] sm:$0xff] }
 0x1a8   : > { %v2765_v30 = vmul.f32 %v5352_v62, %v6276_v10  ;;  %v2495_v35 = vadd.f32 %v6132_v61, %v2251_v28  ;;  %v3007_v44 = vmul.f32 %v5354_v63, %v6276_v10  ;;  %v3248_v36 = vmul.f32 %v5361_v2, %v6276_v10 }
 0x1a9   : > { %v4766_v23 = vpop.eup %4765  ;;  %v6327_v3 = vadd.f32 %v1891_v55, %v6084_v38  ;;  %v3151_v56 = vrot.slane %v6308_v31, 2  ;;  %v1989_v15 = vadd.f32 %v1957_v5, %v8634_v32  ;;  %v2613_v13 = vrot.slane %v2515_v50, 1 }
 0x1aa   : > { %v2868_v11 = vrot.slane %v2765_v30, 2  ;;  %v6335_v18 = vpop.eup %4767  ;;  %v6338_v20 = vmul.f32 %v4766_v23, %v6116_v34  ;;  %v3107_v61 = vrot.slane %v3007_v44, 2  ;;  %v3346_v38 = vrot.slane %v3248_v36, 2  ;;  %v8646_v36 = vld [vmem:[#allocation48_spill] sm:$0xff] }
 0x1ab   : > { %8633 = vst [vmem:[#allocation72_spill] sm:$0xff] %v6327_v3  ;;  %v6341_v28 = vmul.f32 %v4760_v12, %v5789_v37  ;;  %v8636_v3 = vld [vmem:[#allocation46_spill] sm:$0xff]  ;;  %v2614_v10 = vsel %vm2118_vm2, %v2612_v52, %v2613_v13  ;;  %v8637_v31 = vrot.slane %v6123_v59, 1  ;;  %v8640_v44 = vrot.slane %v6129_v21, 2 }
 0x1ac   : > { %8635 = vst [vmem:[#allocation25_spill] sm:$0xff] %v6338_v20  ;;  %v4770_v55 = vpop.eup %4769  ;;  %v2234_v24 = vadd.f32 %v8636_v3, %v1989_v15  ;;  %v6349_v50 = vsel %vm2851_vm3, %v2867_v54, %v2868_v11  ;;  %v2721_v37 = vadd.f32 %v2614_v10, %v2477_v47  ;;  %v6362_v3 = vsel %vm2851_vm3, %v3106_v16, %v3107_v61  ;;  %v8645_v16 = vld [vmem:[#allocation47_spill] sm:$0xff] }
 0x1ad   : > { %v2616_v32 = vsel %vm2118_vm2, %v2613_v13, %v8637_v31  ;;  %8638 = vst [vmem:[#allocation46_spill] sm:$0xff] %v6349_v50  ;;  %v6351_v5 = vpop.eup %4771  ;;  %v6354_v34 = vmul.f32 %v4770_v55, %v6140_v17  ;;  %v6359_v15 = vsel %vm2851_vm3, %v2868_v11, %v8640_v44  ;;  %v8642_v13 = vrot.slane %v6143_v22, 2  ;;  %v8690_v50 = vld [vmem:[#allocation44_spill] sm:$0xff] }
 0x1ae   : > { %8641 = vst [vmem:[#allocation74_spill] sm:$0xff] %v6359_v15  ;;  %v2478_v59 = vadd.f32 %v5961_v39, %v2234_v24  ;;  %v3347_v17 = vsel %vm2851_vm3, %v3345_v43, %v3346_v38  ;;  %v8644_v52 = vrot.slane %v6146_v51, 2  ;;  %v3390_v47 = vrot.slane %v6314_v26, 2 }
 0x1af   : > { %8639 = vst [vmem:[#allocation73_spill] sm:$0xff] %v6354_v34  ;;  %v6368_v12 = vsel %vm2851_vm3, %v3107_v61, %v8642_v13  ;;  %v4436_v21 = vpack.c.bf16 %v6354_v34, %v6338_v20  ;;  %v2966_v54 = vadd.f32 %v8645_v16, %v2721_v37  ;;  %v1909_v39 = vmul.f32 %v5368_v8, %v6341_v28  ;;  %v6405_v16 = vpop.f32.mrb[27].mxu1  ;;  %v8682_v20 = vld [vmem:[#allocation56_spill] sm:$0xff] }
 0x1b0   : > { %8643 = vst [vmem:[#allocation75_spill] sm:$0xff] %v6368_v12  ;;  %v3349_v10 = vsel %vm2851_vm3, %v3346_v38, %v8644_v52  ;;  %v2722_v22 = vadd.f32 %v2616_v32, %v2478_v59  ;;  %v1975_v24 = vmul.f32 %v8529_v6, %v6341_v28  ;;  %v2542_v43 = vmul.f32 %v5350_v60, %v6341_v28 }
 0x1b1   : > { %v2792_v51 = vmul.f32 %v5352_v62, %v6341_v28  ;;  %4476 = vst [vmem:[%s5104_s19 + $0x48] sm:$0xff] %v4436_v21   ;;  %v3210_v11 = vadd.f32 %v5937_v48, %v2966_v54  ;;  %v6389_v26 = vadd.f32 %v1909_v39, %v6105_v19  ;;  %v3034_v30 = vmul.f32 %v5354_v63, %v6341_v28 }
 0x1b2   : > { %v3275_v23 = vmul.f32 %v5361_v2, %v6341_v28  ;;  %v2967_v61 = vadd.f32 %v8646_v36, %v2722_v22  ;;  %v2007_v38 = vadd.f32 %v1975_v24, %v6031_v40  ;;  %v2658_v55 = vrot.slane %v2542_v43, 1  ;;  %v8658_v36 = vld [vmem:[#allocation42_spill] sm:$0xff] }
 0x1b3   : > { %v2913_v31 = vrot.slane %v2792_v51, 2  ;;  %v3454_v32 = vadd.f32 %v3347_v17, %v3210_v11  ;;  %v3152_v37 = vrot.slane %v3034_v30, 2  ;;  %v1449_v48 = vmul.f32 %v6270_v29, %v5995_v53  ;;  %v8656_v11 = vld [vmem:[#allocation45_spill] sm:$0xff] }
 0x1b4   : > { %v3391_v44 = vrot.slane %v3275_v23, 2  ;;  %v3211_v19 = vadd.f32 %v5942_v45, %v2967_v61  ;;  %v2252_v59 = vadd.f32 %v5976_v33, %v2007_v38  ;;  %v2659_v13 = vsel %vm2118_vm2, %v2657_v25, %v2658_v55  ;;  %v8657_v23 = vld [vmem:[#allocation15_spill] sm:$0xff] }
 0x1b5   : > { %v8647_v52 = vrot.slane %v6204_v41, 1  ;;  %v3492_v40 = vmul.f32 %v5990_v57, %v3454_v32  ;;  %v2739_v17 = vadd.f32 %v2659_v13, %v2495_v35  ;;  %v6409_v54 = vsel %vm2851_vm3, %v2912_v46, %v2913_v31  ;;  %v8654_v46 = vld [vmem:[#allocation54_spill] sm:$0xff] }
 0x1b6   : > { %8648 = vst [vmem:[#allocation47_spill] sm:$0xff] %v6409_v54  ;;  %v8649_v53 = vrot.slane %v6207_v4, 2  ;;  %v3455_v33 = vadd.f32 %v3349_v10, %v3211_v19  ;;  %v2496_v29 = vadd.f32 %v6137_v9, %v2252_v59  ;;  %v6418_v41 = vsel %vm2851_vm3, %v3151_v56, %v3152_v37 }
 0x1b7   : > { %v2661_v21 = vsel %vm2118_vm2, %v2658_v55, %v8647_v52  ;;  %8651 = vst [vmem:[#allocation76_spill] sm:$0xff] %v6418_v41  ;;  %v8652_v25 = vrot.slane %v6211_v14, 2  ;;  %v6426_v35 = vadd.f32 %v6004_v27, %v3492_v40  ;;  %v2984_v22 = vadd.f32 %v8654_v46, %v2739_v17  ;;  %v8662_v52 = vld [vmem:[#allocation61_spill] sm:$0xff]  ;;  %v8663_v40 = vld [vmem:[#allocation18_spill] sm:$0xff] }
 0x1b8   : > { %v6414_v45 = vsel %vm2851_vm3, %v2913_v31, %v8649_v53  ;;  %v3392_v4 = vsel %vm2851_vm3, %v3390_v47, %v3391_v44  ;;  %v8655_v24 = vrot.slane %v6227_v0, 2  ;;  %v2300_v56 = vmul.f32 %v5346_v58, %v6252_v7  ;;  %v8659_v31 = vld [vmem:[#allocation55_spill] sm:$0xff] }
 0x1b9   : > { %8650 = vst [vmem:[#allocation48_spill] sm:$0xff] %v6414_v45  ;;  %v6423_v39 = vsel %vm2851_vm3, %v3152_v37, %v8652_v25  ;;  %v3493_v9 = vmul.f32 %v5990_v57, %v3455_v33  ;;  %v2740_v14 = vadd.f32 %v2661_v21, %v2496_v29  ;;  %v4243_v43 = vmul.f32 -1.442695, %v6188_v42  ;;  %v8660_v37 = vld [vmem:[#allocation71_spill] sm:$0xff] }
 0x1ba   : > { %8653 = vst [vmem:[#allocation77_spill] sm:$0xff] %v6423_v39  ;;  %v3394_v10 = vsel %vm2851_vm3, %v3391_v44, %v8655_v24  ;;  %v6439_v51 = vmul.f32 %v5358_v1, %v6231_v49  ;;  %v2134_v30 = vrot.slane %v8656_v11, 1  ;;  %v4288_v47 = vmul.f32 -1.442695, %v6426_v35  ;;  %v8664_v33 = vld [vmem:[#allocation63_spill] sm:$0xff]  ;;  %v8665_v24 = vld [vmem:[#allocation9_spill] sm:$0xff] }
 0x1bb   : > { %v3228_v0 = vadd.f32 %v8657_v23, %v2984_v22  ;;  %v2373_v61 = vrot.slane %v8658_v36, 1  ;;  %v6447_v38 = vmul.f32 %v5358_v1, %v6252_v7  ;;  %v6450_v55 = vadd.f32 %v6004_v27, %v3493_v9  ;;  %v6467_v22 = vpop.f32.mrb[28].mxu0 }
 0x1bc   : > { %v2985_v32 = vadd.f32 %v8659_v31, %v2740_v14  ;;  %4773 = vpow2.f32 %v4288_v47  ;;  %v1801_v59 = vsel %vm1624_vm0, %v1449_v48, 0.0  ;;  %v2418_v13 = vrot.slane %v2300_v56, 1  ;;  %v8668_v31 = vld [vmem:[#allocation36_spill] sm:$0xff] }
 0x1bd   : > { %v3472_v44 = vadd.f32 %v3392_v4, %v3228_v0  ;;  %v6458_v21 = vmul.f32 %v5358_v1, %v8662_v52  ;;  %v4289_v7 = vmul.f32 -1.442695, %v6450_v55  ;;  %v1314_v29 = vadd.f32 1.0, %v8664_v33 }
 0x1be   : > { %v3229_v17 = vadd.f32 %v8663_v40, %v2985_v32  ;;  %v1285_v25 = vadd.f32 1.0, %v6335_v18  ;;  %v2274_v46 = vmul.f32 %v5346_v58, %v8662_v52  ;;  %v6471_v48 = vmul.f32 %v5358_v1, %v6341_v28 }
 0x1bf   : > { %v3510_v53 = vmul.f32 %v5990_v57, %v3472_v44  ;;  %4775 = vpow2.f32 %v4289_v7  ;;  %v6474_v56 = vmul.f32 %v8665_v24, %v1801_v59  ;;  %v1312_v18 = vadd.f32 1.0, %v6351_v5 }
 0x1c0   : > { %v3473_v4 = vadd.f32 %v3394_v10, %v3229_v17  ;;  %4777 = vrcp.f32 %v1314_v29  ;;  %v2374_v14 = vrot.slane %v2274_v46, 1  ;;  %v6482_v47 = vmul.f32 %v5346_v58, %v1801_v59 }
 0x1c1   : > { %8666 = vst [vmem:[#allocation54_spill] sm:$0xff] %v6474_v56  ;;  %v6477_v9 = vadd.f32 %v6004_v27, %v3510_v53  ;;  %4779 = vrcp.f32 %v1285_v25  ;;  %v2301_v23 = vmul.f32 %v5346_v58, %v6341_v28  ;;  %v6488_v0 = vmul.f32 %v5350_v60, %v1801_v59  ;;  %v8671_v53 = vld [vmem:[#allocation21_spill] sm:$0xff]  ;;  %v8693_v56 = vld [vmem:[#allocation64_spill] sm:$0xff] }
 0x1c2   : > { %v3511_v11 = vmul.f32 %v5990_v57, %v3473_v4  ;;  %8667 = vst [vmem:[#allocation45_spill] sm:$0xff] %v6482_v47  ;;  %v6491_v36 = vsel %vm2118_vm2, %v2373_v61, %v2374_v14  ;;  %v8669_v32 = vrot.slane %v8668_v31, 1  ;;  %v6498_v57 = vpop.f32.mrb[28].mxu1  ;;  %v6504_v7 = vmul.f32 %v5352_v62, %v1801_v59  ;;  %v8670_v61 = vld [vmem:[#allocation10_spill] sm:$0xff]  ;;  %v8676_v31 = vld [vmem:[#allocation67_spill] sm:$0xff]  ;;  %v8704_v47 = vld [vmem:[#allocation60_spill] sm:$0xff] }
 0x1c3   : > { %v4306_v10 = vmul.f32 -1.442695, %v6477_v9  ;;  %4781 = vrcp.f32 %v1312_v18  ;;  %v2419_v40 = vrot.slane %v2301_v23, 1  ;;  %v1011_v33 = vmul.f32 %v8671_v53, %v8670_v61  ;;  %v8674_v18 = vld [vmem:[#allocation50_spill] sm:$0xff]  ;;  %v8677_v61 = vld [vmem:[#allocation28_spill] sm:$0xff] }
 0x1c4   : > { %v6496_v5 = vsel %vm2118_vm2, %v2374_v14, %v8669_v32  ;;  %v6501_v44 = vadd.f32 %v6004_v27, %v3511_v11  ;;  %v2032_v29 = vmul.f32 %v8665_v24, %v8662_v52  ;;  %v8672_v27 = vld [vmem:[#allocation68_spill] sm:$0xff]  ;;  %v8675_v11 = vld [vmem:[#allocation35_spill] sm:$0xff]  ;;  %v4270_v32 = vmul.f32 -1.442695, %v8676_v31 }
 0x1c5   : > { %4783 = vpow2.f32 %v4306_v10  ;;  %v6513_v46 = vsel %vm2118_vm2, %v2418_v13, %v2419_v40  ;;  %v8673_v4 = vrot.slane %v8672_v27, 1  ;;  %v6522_v23 = vadd.f32 %v8675_v11, %v8674_v18  ;;  %v8680_v27 = vld [vmem:[#allocation62_spill] sm:$0xff]  ;;  %v6536_v18 = vpop.f32.mrb[29].mxu0 }
 0x1c6   : > { %v4307_v25 = vmul.f32 -1.442695, %v6501_v44  ;;  %v4774_v10 = vpop.eup %4773  ;;  %v6527_v52 = vadd.f32 %v8675_v11, %v8677_v61  ;;  %v6530_v17 = vadd.f32 %v8675_v11, %v1011_v33  ;;  %v2135_v13 = vrot.slane %v2032_v29, 1 }
 0x1c7   : > { %v6518_v14 = vsel %vm2118_vm2, %v2419_v40, %v8673_v4  ;;  %v3658_v49 = vadd.f32 1.0, %v4774_v10  ;;  %v1038_v40 = vmul.f32 %v8671_v53, %v8680_v27  ;;  %v2059_v4 = vmul.f32 %v8665_v24, %v6341_v28 }
 0x1c8   : > { %8678 = vst [vmem:[#allocation15_spill] sm:$0xff] %v6527_v52  ;;  %8679 = vst [vmem:[#allocation42_spill] sm:$0xff] %v6530_v17  ;;  %4785 = vpow2.f32 %v4307_v25  ;;  %v6540_v61 = vsel %vm2118_vm2, %v2134_v30, %v2135_v13  ;;  %v8683_v33 = vrot.slane %v8682_v20, 1  ;;  %v4574_v25 = vpop.f32.mrb[30].mxu0  ;;  %v6548_v27 = vmul.f32 %v5354_v63, %v1801_v59 }
 0x1c9   : > { %4787 = vpow2.f32 %v4243_v43  ;;  %8681 = vst [vmem:[#allocation55_spill] sm:$0xff] %v6540_v61  ;;  %v4776_v10 = vpop.eup %4775  ;;  %v4247_v28 = vmul.f32 -1.442695, %v6522_v23  ;;  %v2180_v45 = vrot.slane %v2059_v4, 1  ;;  %v6552_v43 = vmul.f32 %v5361_v2, %v1801_v59 }
 0x1ca   : > { %v6545_v29 = vsel %vm2118_vm2, %v2135_v13, %v8683_v33  ;;  %4789 = vrcp.f32 %v3658_v49  ;;  %v4778_v54 = vpop.eup %4777  ;;  %v3659_v34 = vadd.f32 1.0, %v4776_v10  ;;  %v4274_v20 = vmul.f32 -1.442695, %v6527_v52  ;;  %v8685_v13 = vld [vmem:[#allocation12_spill] sm:$0xff] }
 0x1cb   : > { %8684 = vst [vmem:[#allocation71_spill] sm:$0xff] %v6545_v29  ;;  %4791 = vpow2.f32 %v4270_v32  ;;  %v4780_v30 = vpop.eup %4779  ;;  %v1476_v33 = vmul.f32 %v4778_v54, %v8685_v13  ;;  %v4245_v25 = vmul.f32 -1.442695, %v6530_v17  ;;  %v6558_v49 = vadd.f32 %v8675_v11, %v1038_v40  ;;  %v8689_v10 = vld [vmem:[#allocation16_spill] sm:$0xff] }
 0x1cc   : > { %v8687_v15 = vrot.slane %v8660_v37, 1  ;;  %4793 = vrcp.f32 %v3659_v34  ;;  %v1447_v59 = vmul.f32 %v4780_v30, %v8689_v10  ;;  %v8691_v32 = vrot.slane %v8690_v50, 1  ;;  %v6581_v10 = vpop.f32.mrb[29].mxu1 }
 0x1cd   : > { %8686 = vst [vmem:[#allocation61_spill] sm:$0xff] %v6558_v49  ;;  %v1012_v54 = vmul.f32 %v8671_v53, %v8693_v56  ;;  %v4782_v13 = vpop.eup %4781  ;;  %4795 = vpow2.f32 %v4247_v28  ;;  %8695 = vst [vmem:[#allocation9_spill] sm:$0xff] %v6581_v10  ;;  %v4272_v28 = vmul.f32 -1.442695, %v6558_v49  ;;  %v8707_v10 = vld [vmem:[#allocation11_spill] sm:$0xff] }
 0x1ce   : > { %v6563_v4 = vsel %vm2118_vm2, %v8687_v15, %v2180_v45  ;;  %v6569_v29 = vsel %vm2118_vm2, %v2180_v45, %v8691_v32  ;;  %v1828_v15 = vsel %vm1624_vm0, %v1476_v33, 0.0  ;;  %4797 = vpow2.f32 %v4274_v20  ;;  %v8694_v45 = vld [vmem:[#allocation13_spill] sm:$0xff]  ;;  %v4610_v33 = vpop.f32.mrb[30].mxu1 }
 0x1cf   : > { %8688 = vst [vmem:[#allocation18_spill] sm:$0xff] %v6563_v4  ;;  %8692 = vst [vmem:[#allocation63_spill] sm:$0xff] %v6569_v29  ;;  %v4784_v34 = vpop.eup %4783  ;;  %v1039_v30 = vmul.f32 %v8671_v53, %v8694_v45  ;;  %v6584_v32 = vmul.f32 %v8665_v24, %v1828_v15  ;;  %v1799_v40 = vsel %vm1565_vm1, %v1447_v59, 0.0  ;;  %v6590_v37 = vmul.f32 %v5346_v58, %v1828_v15  ;;  %v8700_v45 = vld [vmem:[#allocation20_spill] sm:$0xff] }
 0x1d0   : > { %v3676_v56 = vadd.f32 1.0, %v4784_v34  ;;  %4799 = vpow2.f32 %v4245_v25  ;;  %v6593_v20 = vadd.f32 %v8675_v11, %v1012_v54  ;;  %v6597_v50 = vmul.f32 %v8671_v53, %v8700_v45 }
 0x1d1   : > { %8696 = vst [vmem:[#allocation36_spill] sm:$0xff] %v6584_v32  ;;  %8698 = vst [vmem:[#allocation10_spill] sm:$0xff] %v6590_v37  ;;  %v6600_v29 = vmul.f32 %v5350_v60, %v1828_v15  ;;  %v6603_v59 = vmul.f32 %v5352_v62, %v1828_v15  ;;  %v6606_v33 = vmul.f32 %v5354_v63, %v1828_v15 }
 0x1d2   : > { %8699 = vst [vmem:[#allocation21_spill] sm:$0xff] %v6593_v20  ;;  %v4786_v34 = vpop.eup %4785  ;;  %4801 = vrcp.f32 %v3676_v56  ;;  %v1892_v54 = vmul.f32 %v5368_v8, %v1799_v40  ;;  %v1958_v49 = vmul.f32 %v8529_v6, %v1799_v40  ;;  %v1474_v45 = vmul.f32 %v4782_v13, %v8704_v47 }
 0x1d3   : > { %8701 = vst [vmem:[#allocation68_spill] sm:$0xff] %v6600_v29  ;;  %8702 = vst [vmem:[#allocation50_spill] sm:$0xff] %v6603_v59  ;;  %v4788_v4 = vpop.eup %4787  ;;  %v3677_v25 = vadd.f32 1.0, %v4786_v34  ;;  %v6613_v52 = vmul.f32 %v5361_v2, %v1828_v15  ;;  %4803 = vpow2.f32 %v4272_v28  ;;  %v6616_v39 = vadd.f32 %v8675_v11, %v1039_v30  ;;  %v8708_v30 = vld [vmem:[#allocation22_spill] sm:$0xff] }
 0x1d4   : > { %8703 = vst [vmem:[#allocation35_spill] sm:$0xff] %v6606_v33  ;;  %v4790_v17 = vpop.eup %4789  ;;  %v6620_v34 = vadd.f32 %v1892_v54, %v6439_v51  ;;  %v1990_v12 = vadd.f32 %v1958_v49, %v8707_v10  ;;  %v6639_v54 = vmul.f32 %v5350_v60, %v1799_v40  ;;  %v6642_v47 = vmul.f32 %v5352_v62, %v1799_v40 }
 0x1d5   : > { %8705 = vst [vmem:[#allocation67_spill] sm:$0xff] %v6616_v39  ;;  %v4792_v19 = vpop.eup %4791  ;;  %v3754_v41 = vmul.f32 %v4790_v17, %v6426_v35  ;;  %4805 = vrcp.f32 %v3677_v25  ;;  %v6631_v35 = vmul.f32 %v8665_v24, %v1799_v40  ;;  %v8711_v17 = vld [vmem:[#allocation23_spill] sm:$0xff]  ;;  %v6635_v25 = vmul.f32 %v5346_v58, %v1799_v40 }
 0x1d6   : > { %8706 = vst [vmem:[#allocation28_spill] sm:$0xff] %v6620_v34  ;;  %v4794_v56 = vpop.eup %4793  ;;  %v2235_v51 = vadd.f32 %v8711_v17, %v1990_v12  ;;  %v6650_v12 = vmul.f32 %v5354_v63, %v1799_v40  ;;  %v6653_v17 = vmul.f32 %v5361_v2, %v1799_v40  ;;  %v1286_v34 = vadd.f32 1.0, %v4788_v4 }
 0x1d7   : > { %v6628_v32 = vadd.f32 %v3754_v41, %v8708_v30  ;;  %8710 = vst [vmem:[#allocation56_spill] sm:$0xff] %v6631_v35  ;;  %v4796_v49 = vpop.eup %4795  ;;  %v3755_v10 = vmul.f32 %v4794_v56, %v6450_v55  ;;  %v1826_v30 = vsel %vm1565_vm1, %v1474_v45, 0.0  ;;  %v6656_v56 = vpop.f32.mrb[31].mxu0  ;;  %v1313_v59 = vadd.f32 1.0, %v4792_v19 }
 0x1d8   : > { %v4798_v28 = vpop.eup %4797  ;;  %v6647_v15 = vadd.f32 %v6491_v36, %v2235_v51  ;;  %v1910_v55 = vmul.f32 %v5368_v8, %v1826_v30  ;;  %8712 = vst [vmem:[#allocation12_spill] sm:$0xff] %v6656_v56  ;;  %v1976_v45 = vmul.f32 %v8529_v6, %v1826_v30  ;;  %v6664_v51 = vmul.f32 %v5358_v1, %v1799_v40  ;;  %v8716_v56 = vld [vmem:[#allocation14_spill] sm:$0xff] }
 0x1d9   : > { %8709 = vst [vmem:[#allocation62_spill] sm:$0xff] %v6628_v32  ;;  %v4396_v13 = vpack.c.bf16 %v3755_v10, %v3754_v41  ;;  %v8713_v32 = vld [vmem:[#allocation69_spill] sm:$0xff]  ;;  %v6680_v19 = vmul.f32 %v8665_v24, %v1826_v30  ;;  %4807 = vrcp.f32 %v1286_v34  ;;  %v6690_v40 = vmul.f32 %v5346_v58, %v1826_v30 }
 0x1da   : > { %v6659_v37 = vadd.f32 %v3755_v10, %v8713_v32  ;;  %v4800_v61 = vpop.eup %4799  ;;  %v6667_v33 = vadd.f32 %v1910_v55, %v6447_v38  ;;  %v2008_v4 = vadd.f32 %v1976_v45, %v8716_v56  ;;  %v6686_v32 = vmul.f32 %v5358_v1, %v1826_v30  ;;  %v8720_v56 = vld [vmem:[#allocation30_spill] sm:$0xff] }
 0x1db   : > { %4468 = vst [vmem:[%s5104_s19 + $0x8] sm:$0xff] %v4396_v13   ;;  %v6693_v38 = vmul.f32 %v5350_v60, %v1826_v30  ;;  %4809 = vrcp.f32 %v1313_v59  ;;  %v6702_v34 = vmul.f32 %v5352_v62, %v1826_v30  ;;  %v1288_v35 = vadd.f32 1.0, %v4800_v61 }
 0x1dc   : > { %8714 = vst [vmem:[#allocation16_spill] sm:$0xff] %v6659_v37  ;;  %8715 = vst [vmem:[#allocation44_spill] sm:$0xff] %v6667_v33  ;;  %v4802_v29 = vpop.eup %4801  ;;  %v6674_v37 = vpop.f32.mrb[31].mxu1  ;;  %v2253_v45 = vadd.f32 %v8720_v56, %v2008_v4  ;;  %v4246_v61 = vmul.f32 -1.442695, %v6593_v20 }
 0x1dd   : > { %8717 = vst [vmem:[#allocation64_spill] sm:$0xff] %v6674_v37  ;;  %v4613_v13 = vpop.f32.mrb[32].mxu1  ;;  %v4804_v55 = vpop.eup %4803  ;;  %v6683_v41 = vmul.f32 %v4802_v29, %v6477_v9  ;;  %8719 = vst [vmem:[#allocation20_spill] sm:$0xff] %v6686_v32  ;;  %v8722_v32 = vld [vmem:[#allocation57_spill] sm:$0xff] }
 0x1de   : > { %v975_v10 = vpop.f32.mrb[33].mxu1  ;;  %v1290_v13 = vadd.f32 1.0, %v4796_v49  ;;  %v6699_v29 = vadd.f32 %v6513_v46, %v2253_v45  ;;  %v1315_v33 = vadd.f32 1.0, %v4804_v55  ;;  %v1043_v59 = vmul.f32 %v8671_v53, %v8722_v32  ;;  %v8726_v32 = vld [vmem:[#allocation70_spill] sm:$0xff] }
 0x1df   : > { %8718 = vst [vmem:[#allocation13_spill] sm:$0xff] %v6683_v41  ;;  %v4806_v36 = vpop.eup %4805  ;;  %v4614_v37 = vpop.f32.mrb[34].mxu1  ;;  %v1317_v10 = vadd.f32 1.0, %v4798_v28  ;;  %v6711_v46 = vadd.f32 %v8675_v11, %v6597_v50  ;;  %v6718_v45 = vmul.f32 %v5354_v63, %v1826_v30  ;;  %v1015_v55 = vmul.f32 %v8671_v53, %v8726_v32 }
 0x1e0   : > { %v6696_v9 = vmul.f32 %v4806_v36, %v6501_v44  ;;  %v978_v4 = vpop.f32.mrb[35].mxu1  ;;  %v8724_v37 = vld [vmem:[#allocation19_spill] sm:$0xff]  ;;  %4811 = vrcp.f32 %v1290_v13  ;;  %v4273_v50 = vmul.f32 -1.442695, %v6616_v39  ;;  %v1042_v32 = vmul.f32 %v8671_v53, %v6405_v16 }
 0x1e1   : > { %8723 = vst [vmem:[#allocation11_spill] sm:$0xff] %v6711_v46  ;;  %v1014_v49 = vmul.f32 %v8671_v53, %v8724_v37  ;;  %v8725_v36 = vld [vmem:[#allocation51_spill] sm:$0xff]  ;;  %v6725_v4 = vmul.f32 %v5361_v2, %v1826_v30  ;;  %4813 = vrcp.f32 %v1317_v10  ;;  %v6729_v37 = vadd.f32 %v8675_v11, %v1043_v59 }
 0x1e2   : > { %8721 = vst [vmem:[#allocation60_spill] sm:$0xff] %v6696_v9  ;;  %v4441_v44 = vpack.c.bf16 %v6696_v9, %v6683_v41  ;;  %v1041_v28 = vmul.f32 %v8671_v53, %v8725_v36  ;;  %4815 = vrcp.f32 %v1288_v35  ;;  %v4250_v30 = vmul.f32 -1.442695, %v6711_v46 }
 0x1e3   : > { %8727 = vst [vmem:[#allocation22_spill] sm:$0xff] %v6729_v37  ;;  %v6732_v36 = vadd.f32 %v8675_v11, %v1014_v49  ;;  %4817 = vrcp.f32 %v1315_v33  ;;  %v6741_v10 = vadd.f32 %v8675_v11, %v1015_v55  ;;  %v1019_v59 = vmul.f32 %v8671_v53, %v6467_v22 }
 0x1e4   : > { %4477 = vst [vmem:[%s5104_s19 + $0x50] sm:$0xff] %v4441_v44   ;;  %v6735_v13 = vadd.f32 %v8675_v11, %v1041_v28  ;;  %4819 = vpow2.f32 %v4246_v61  ;;  %v4808_v28 = vpop.eup %4807  ;;  %v4277_v33 = vmul.f32 -1.442695, %v6729_v37  ;;  %v6761_v61 = vadd.f32 %v8675_v11, %v1042_v32  ;;  %v8735_v44 = vld [vmem:[#allocation72_spill] sm:$0xff] }
 0x1e5   : > { %8728 = vst [vmem:[#allocation23_spill] sm:$0xff] %v6732_v36  ;;  %8730 = vst [vmem:[#allocation14_spill] sm:$0xff] %v6741_v10  ;;  %4821 = vpow2.f32 %v4273_v50  ;;  %v4810_v55 = vpop.eup %4809  ;;  %v6752_v9 = vmul.f32 %v4808_v28, %v6188_v42  ;;  %v6755_v22 = vmul.f32 -1.442695, %v6732_v36  ;;  %v6767_v50 = vmul.f32 -1.442695, %v6741_v10 }
 0x1e6   : > { %8729 = vst [vmem:[#allocation69_spill] sm:$0xff] %v6735_v13  ;;  %v6758_v35 = vmul.f32 -1.442695, %v6735_v13  ;;  %8731 = vst [vmem:[#allocation30_spill] sm:$0xff] %v6761_v61  ;;  %v6764_v56 = vmul.f32 %v4810_v55, %v8676_v31  ;;  %4823 = vpow2.f32 %v4250_v30  ;;  %v6770_v16 = vadd.f32 %v8675_v11, %v1019_v59 }
 0x1e7   : > { %8732 = vst [vmem:[#allocation57_spill] sm:$0xff] %v6767_v50  ;;  %v1893_v42 = vmul.f32 %v5368_v8, %v6752_v9  ;;  %v1959_v28 = vmul.f32 %v8529_v6, %v6752_v9  ;;  %v2518_v32 = vmul.f32 %v5350_v60, %v6752_v9  ;;  %v6780_v31 = vmul.f32 %v8671_v53, %v6498_v57 }
 0x1e8   : > { %8733 = vst [vmem:[#allocation19_spill] sm:$0xff] %v6770_v16  ;;  %v2768_v30 = vmul.f32 %v5352_v62, %v6752_v9  ;;  %v3010_v11 = vmul.f32 %v5354_v63, %v6752_v9  ;;  %v3251_v59 = vmul.f32 %v5361_v2, %v6752_v9  ;;  %4825 = vpow2.f32 %v4277_v33  ;;  %v8736_v33 = vld [vmem:[#allocation17_spill] sm:$0xff] }
 0x1e9   : > { %v6789_v49 = vadd.f32 %v1893_v42, %v6458_v21  ;;  %v1991_v41 = vadd.f32 %v1959_v28, %v8735_v44  ;;  %v2618_v10 = vrot.slane %v2518_v32, 1  ;;  %v1911_v57 = vmul.f32 %v5368_v8, %v6764_v56 }
 0x1ea   : > { %v4812_v55 = vpop.eup %4811  ;;  %v2873_v36 = vrot.slane %v2768_v30, 2  ;;  %v3112_v37 = vrot.slane %v3010_v11, 2  ;;  %v3351_v46 = vrot.slane %v3251_v59, 2  ;;  %v1977_v39 = vmul.f32 %v8529_v6, %v6764_v56 }
 0x1eb   : > { %8734 = vst [vmem:[#allocation51_spill] sm:$0xff] %v6789_v49  ;;  %v6794_v13 = vpop.eup %4813  ;;  %v2236_v50 = vadd.f32 %v8736_v33, %v1991_v41  ;;  %v8737_v21 = vrot.slane %v6639_v54, 1  ;;  %v8738_v42 = vrot.slane %v6488_v0, 1  ;;  %v6808_v32 = vadd.f32 %v1911_v57, %v6471_v48 }
 0x1ec   : > { %v6798_v20 = vpop.eup %4815  ;;  %v8739_v59 = vrot.slane %v6642_v47, 2  ;;  %v8741_v54 = vrot.slane %v6504_v7, 2  ;;  %v8743_v0 = vrot.slane %v6650_v12, 2  ;;  %v8747_v33 = vrot.slane %v6653_v17, 2 }
 0x1ed   : > { %v2619_v44 = vsel %vm2118_vm2, %v8737_v21, %v2618_v10  ;;  %v2621_v28 = vsel %vm2118_vm2, %v2618_v10, %v8738_v42  ;;  %v6810_v30 = vpop.eup %4817  ;;  %v2480_v57 = vadd.f32 %v6496_v5, %v2236_v50  ;;  %v2545_v5 = vmul.f32 %v5350_v60, %v6764_v56  ;;  %v6856_v50 = vpop.f32.mrb[32].mxu0 }
 0x1ee   : > { %v2723_v11 = vadd.f32 %v2619_v44, %v6647_v15  ;;  %v6816_v49 = vsel %vm2851_vm3, %v8739_v59, %v2873_v36  ;;  %v6821_v41 = vsel %vm2851_vm3, %v2873_v36, %v8741_v54  ;;  %v6826_v10 = vsel %vm2851_vm3, %v8743_v0, %v3112_v37  ;;  %v6828_v48 = vpop.eup %4819  ;;  %v8749_v44 = vld [vmem:[#allocation65_spill] sm:$0xff] }
 0x1ef   : > { %8740 = vst [vmem:[#allocation70_spill] sm:$0xff] %v6816_v49  ;;  %8742 = vst [vmem:[#allocation72_spill] sm:$0xff] %v6821_v41  ;;  %v8745_v15 = vrot.slane %v6548_v27, 2  ;;  %v3352_v7 = vsel %vm2851_vm3, %v8747_v33, %v3351_v46  ;;  %v8748_v36 = vrot.slane %v6552_v43, 2  ;;  %v6842_v21 = vpop.eup %4821  ;;  %v2009_v59 = vadd.f32 %v1977_v39, %v6389_v26  ;;  %v8751_v39 = vld [vmem:[#allocation26_spill] sm:$0xff] }
 0x1f0   : > { %8744 = vst [vmem:[#allocation17_spill] sm:$0xff] %v6826_v10  ;;  %v2968_v42 = vadd.f32 %v8749_v44, %v2723_v11  ;;  %v2795_v27 = vmul.f32 %v5352_v62, %v6764_v56  ;;  %v3037_v17 = vmul.f32 %v5354_v63, %v6764_v56  ;;  %v3278_v43 = vmul.f32 %v5361_v2, %v6764_v56  ;;  %v6858_v11 = vpop.eup %4823 }
 0x1f1   : > { %v6834_v47 = vsel %vm2851_vm3, %v3112_v37, %v8745_v15  ;;  %v3354_v12 = vsel %vm2851_vm3, %v3351_v46, %v8748_v36  ;;  %v2724_v37 = vadd.f32 %v2621_v28, %v2480_v57  ;;  %v1017_v46 = vmul.f32 %v8671_v53, %v6536_v18  ;;  %8750 = vst [vmem:[#allocation65_spill] sm:$0xff] %v6856_v50  ;;  %v8752_v28 = vld [vmem:[#allocation66_spill] sm:$0xff] }
 0x1f2   : > { %8746 = vst [vmem:[#allocation78_spill] sm:$0xff] %v6834_v47  ;;  %v3212_v26 = vadd.f32 %v6362_v3, %v2968_v42  ;;  %v2254_v54 = vadd.f32 %v8751_v39, %v2009_v59  ;;  %v2663_v0 = vrot.slane %v2545_v5, 1  ;;  %v2918_v15 = vrot.slane %v2795_v27, 2  ;;  %v6864_v41 = vpop.eup %4825  ;;  %v8754_v3 = vld [vmem:[#allocation68_spill] sm:$0xff]  ;;  %v8756_v5 = vld [vmem:[#allocation75_spill] sm:$0xff] }
 0x1f3   : > { %v2969_v57 = vadd.f32 %v8752_v28, %v2724_v37  ;;  %v3157_v33 = vrot.slane %v3037_v17, 2  ;;  %v3396_v36 = vrot.slane %v3278_v43, 2  ;;  %v1452_v44 = vmul.f32 %v4812_v55, %v6522_v23  ;;  %v8759_v55 = vld [vmem:[#allocation50_spill] sm:$0xff] }
 0x1f4   : > { %v3456_v49 = vadd.f32 %v3352_v7, %v3212_v26  ;;  %v2498_v53 = vadd.f32 %v6518_v14, %v2254_v54  ;;  %v8753_v18 = vrot.slane %v6693_v38, 1  ;;  %v8755_v42 = vrot.slane %v8754_v3, 1  ;;  %v6888_v38 = vld [vmem:[%s8332_s5] ss:$0 sm:$0xff] }
 0x1f5   : > { %v3213_v27 = vadd.f32 %v8756_v5, %v2969_v57  ;;  %v8757_v17 = vrot.slane %v6702_v34, 2  ;;  %v8760_v7 = vrot.slane %v8759_v55, 2  ;;  %8762 = vst [vmem:[#allocation68_spill] sm:$0xff] %v6888_v38  ;;  %v8769_v57 = vrot.slane %v6725_v4, 2  ;;  %v6923_v4 = vld [vmem:[%s8329_s2] ss:$0 sm:$0xff] }
 0x1f6   : > { %v2664_v50 = vsel %vm2118_vm2, %v8753_v18, %v2663_v0  ;;  %v2666_v59 = vsel %vm2118_vm2, %v2663_v0, %v8755_v42  ;;  %v3494_v43 = vmul.f32 %v6888_v38, %v3456_v49  ;;  %v8770_v49 = vrot.slane %v6613_v52, 2  ;;  %v8773_v52 = vld [vmem:[#allocation9_spill] sm:$0xff]  ;;  %v8774_v5 = vld [vmem:[#allocation76_spill] sm:$0xff] }
 0x1f7   : > { %v2741_v37 = vadd.f32 %v2664_v50, %v6699_v29  ;;  %v6878_v23 = vsel %vm2851_vm3, %v8757_v17, %v2918_v15  ;;  %v6883_v14 = vsel %vm2851_vm3, %v2918_v15, %v8760_v7  ;;  %v2742_v26 = vadd.f32 %v2666_v59, %v2498_v53  ;;  %v8765_v50 = vld [vmem:[#allocation35_spill] sm:$0xff]  ;;  %v8776_v7 = vld [vmem:[#allocation77_spill] sm:$0xff] }
 0x1f8   : > { %8758 = vst [vmem:[#allocation26_spill] sm:$0xff] %v6878_v23  ;;  %8761 = vst [vmem:[#allocation66_spill] sm:$0xff] %v6883_v14  ;;  %v8763_v29 = vrot.slane %v6718_v45, 2  ;;  %v8766_v39 = vrot.slane %v8765_v50, 2  ;;  %v3457_v0 = vadd.f32 %v3354_v12, %v3213_v27  ;;  %v8768_v15 = vld [vmem:[#allocation27_spill] sm:$0xff]  ;;  %v3397_v18 = vsel %vm2851_vm3, %v8769_v57, %v3396_v36 }
 0x1f9   : > { %v2986_v28 = vadd.f32 %v8768_v15, %v2741_v37  ;;  %v3399_v53 = vsel %vm2851_vm3, %v3396_v36, %v8770_v49  ;;  %v6911_v45 = vld [vmem:[%s8333_s6] ss:$0 sm:$0xff]  ;;  %v6918_v42 = vmul.f32 -1.442695, %v6761_v61  ;;  %v1044_v36 = vmul.f32 %v6923_v4, %v8773_v52 }
 0x1fa   : > { %v6894_v34 = vsel %vm2851_vm3, %v8763_v29, %v3157_v33  ;;  %v6899_v54 = vsel %vm2851_vm3, %v3157_v33, %v8766_v39  ;;  %8771 = vst [vmem:[#allocation35_spill] sm:$0xff] %v6911_v45  ;;  %v6914_v3 = vadd.f32 %v6911_v45, %v3494_v43  ;;  %v8772_v33 = vld [vmem:[#allocation41_spill] sm:$0xff]  ;;  %v3495_v59 = vmul.f32 %v6888_v38, %v3457_v0  ;;  %v6940_v29 = vld [vmem:[%s8330_s3] ss:$0 sm:$0xff]  ;;  %v6946_v39 = vpop.f32.mrb[33].mxu0 }
 0x1fb   : > { %8764 = vst [vmem:[#allocation75_spill] sm:$0xff] %v6894_v34  ;;  %8767 = vst [vmem:[#allocation50_spill] sm:$0xff] %v6899_v54  ;;  %v2987_v12 = vadd.f32 %v8772_v33, %v2742_v26  ;;  %v3230_v27 = vadd.f32 %v8774_v5, %v2986_v28  ;;  %v1804_v17 = vsel %vm1624_vm0, %v1452_v44, 0.0  ;;  %4827 = vpow2.f32 %v6755_v22  ;;  %v4578_v15 = vpop.f32.mrb[34].mxu0 }
 0x1fc   : > { %v4290_v55 = vmul.f32 -1.442695, %v6914_v3  ;;  %v6935_v26 = vmul.f32 -1.442695, %v6770_v16  ;;  %v6944_v50 = vadd.f32 %v6940_v29, %v6780_v31  ;;  %8778 = vst [vmem:[#allocation41_spill] sm:$0xff] %v6946_v39  ;;  %v6949_v22 = vadd.f32 %v6911_v45, %v3495_v59  ;;  %v8794_v39 = vld [vmem:[#allocation45_spill] sm:$0xff] }
 0x1fd   : > { %v3231_v43 = vadd.f32 %v8776_v7, %v2987_v12  ;;  %v3474_v44 = vadd.f32 %v3397_v18, %v3230_v27  ;;  %4829 = vpow2.f32 %v6758_v35  ;;  %v6953_v0 = vadd.f32 %v6940_v29, %v1017_v46  ;;  %v8782_v12 = vld [vmem:[#allocation15_spill] sm:$0xff]  ;;  %v8783_v35 = vld [vmem:[#allocation42_spill] sm:$0xff]  ;;  %v7049_v54 = vpop.f32.mrb[35].mxu0 }
 0x1fe   : > { %8777 = vst [vmem:[#allocation27_spill] sm:$0xff] %v6944_v50  ;;  %4831 = vpow2.f32 %v4290_v55  ;;  %v6956_v57 = vmul.f32 %v8665_v24, %v1804_v17  ;;  %v6959_v31 = vadd.f32 %v6940_v29, %v1044_v36  ;;  %v4291_v49 = vmul.f32 -1.442695, %v6949_v22 }
 0x1ff   : > { %8779 = vst [vmem:[#allocation9_spill] sm:$0xff] %v6953_v0  ;;  %v3475_v28 = vadd.f32 %v3399_v53, %v3231_v43  ;;  %v3512_v33 = vmul.f32 %v6888_v38, %v3474_v44  ;;  %v1479_v18 = vmul.f32 %v6794_v13, %v8782_v12  ;;  %v1450_v46 = vmul.f32 %v6798_v20, %v8783_v35 }
 0x200   : > { %8780 = vst [vmem:[#allocation76_spill] sm:$0xff] %v6956_v57  ;;  %8781 = vst [vmem:[#allocation77_spill] sm:$0xff] %v6959_v31  ;;  %v6969_v52 = vmul.f32 %v5358_v1, %v6752_v9  ;;  %v6973_v59 = vmul.f32 %v5346_v58, %v1804_v17  ;;  %v6976_v36 = vmul.f32 %v5350_v60, %v1804_v17  ;;  %4833 = vpow2.f32 %v4291_v49 }
 0x201   : > { %v3513_v53 = vmul.f32 %v6888_v38, %v3475_v28  ;;  %v6980_v5 = vmul.f32 %v5358_v1, %v6764_v56  ;;  %v6983_v13 = vadd.f32 %v6911_v45, %v3512_v33  ;;  %v1831_v20 = vsel %vm1624_vm0, %v1479_v18, 0.0 }
 0x202   : > { %8784 = vst [vmem:[#allocation15_spill] sm:$0xff] %v6973_v59  ;;  %v6992_v7 = vmul.f32 %v5352_v62, %v1804_v17  ;;  %v6995_v43 = vmul.f32 %v5354_v63, %v1804_v17  ;;  %v6999_v15 = vmul.f32 %v5361_v2, %v1804_v17  ;;  %v1802_v49 = vsel %vm1565_vm1, %v1450_v46, 0.0 }
 0x203   : > { %v6988_v27 = vadd.f32 %v6911_v45, %v3513_v53  ;;  %v4308_v44 = vmul.f32 -1.442695, %v6983_v13  ;;  %v2277_v33 = vmul.f32 %v5346_v58, %v6752_v9  ;;  %v7009_v53 = vmul.f32 %v8665_v24, %v1831_v20  ;;  %v8792_v45 = vld [vmem:[#allocation28_spill] sm:$0xff] }
 0x204   : > { %v7014_v17 = vmul.f32 %v5346_v58, %v1831_v20  ;;  %v7017_v46 = vmul.f32 %v5350_v60, %v1831_v20  ;;  %v7020_v14 = vmul.f32 %v5352_v62, %v1831_v20  ;;  %v7023_v18 = vmul.f32 %v5354_v63, %v1831_v20  ;;  %8796 = vst [vmem:[#allocation28_spill] sm:$0xff] %v7049_v54 }
 0x205   : > { %v4309_v12 = vmul.f32 -1.442695, %v6988_v27  ;;  %8786 = vst [vmem:[#allocation42_spill] sm:$0xff] %v7009_v53  ;;  %v7011_v55 = vpop.eup %4827  ;;  %4835 = vpow2.f32 %v4308_v44  ;;  %v1894_v35 = vmul.f32 %v5368_v8, %v1802_v49  ;;  %v1960_v23 = vmul.f32 %v8529_v6, %v1802_v49  ;;  %v8801_v53 = vld [vmem:[#allocation20_spill] sm:$0xff] }
 0x206   : > { %8787 = vst [vmem:[#allocation79_spill] sm:$0xff] %v7014_v17  ;;  %8788 = vst [vmem:[#allocation80_spill] sm:$0xff] %v7020_v14  ;;  %v2379_v57 = vrot.slane %v2277_v33, 1  ;;  %v8793_v44 = vrot.slane %v6635_v25, 1  ;;  %v8795_v33 = vrot.slane %v8794_v39, 1  ;;  %v7056_v25 = vmul.f32 %v8665_v24, %v1802_v49 }
 0x207   : > { %4837 = vpow2.f32 %v4309_v12  ;;  %8789 = vst [vmem:[#allocation81_spill] sm:$0xff] %v7023_v18  ;;  %v7027_v16 = vpop.eup %4829  ;;  %v7034_v12 = vmul.f32 %v5361_v2, %v1831_v20  ;;  %v7037_v34 = vadd.f32 %v1894_v35, %v6664_v51  ;;  %v1992_v37 = vadd.f32 %v1960_v23, %v8792_v45  ;;  %v8797_v45 = vld [vmem:[#allocation55_spill] sm:$0xff] }
 0x208   : > { %v4832_v59 = vpop.eup %4831  ;;  %v2380_v61 = vsel %vm2118_vm2, %v8793_v44, %v2379_v57  ;;  %v7047_v10 = vsel %vm2118_vm2, %v2379_v57, %v8795_v33  ;;  %8798 = vst [vmem:[#allocation45_spill] sm:$0xff] %v7056_v25  ;;  %v7059_v39 = vmul.f32 %v5346_v58, %v1802_v49  ;;  %v8799_v57 = vld [vmem:[#allocation61_spill] sm:$0xff]  ;;  %v2304_v51 = vmul.f32 %v5346_v58, %v6764_v56  ;;  %v8804_v25 = vld [vmem:[#allocation10_spill] sm:$0xff] }
 0x209   : > { %8790 = vst [vmem:[#allocation82_spill] sm:$0xff] %v7034_v12  ;;  %8791 = vst [vmem:[#allocation83_spill] sm:$0xff] %v7037_v34  ;;  %v3660_v38 = vadd.f32 1.0, %v4832_v59  ;;  %v2237_v59 = vadd.f32 %v8797_v45, %v1992_v37  ;;  %v1477_v44 = vmul.f32 %v6810_v30, %v8799_v57  ;;  %v7069_v37 = vmul.f32 %v5358_v1, %v1802_v49  ;;  %v8802_v34 = vld [vmem:[#allocation44_spill] sm:$0xff] }
 0x20a   : > { %v4834_v35 = vpop.eup %4833  ;;  %v7075_v45 = vmul.f32 %v5352_v62, %v1802_v49  ;;  %v7091_v54 = vmul.f32 %v5361_v2, %v1802_v49  ;;  %v1289_v28 = vadd.f32 1.0, %v6828_v48  ;;  %v8803_v18 = vrot.slane %v6690_v40, 1 }
 0x20b   : > { %4839 = vrcp.f32 %v3660_v38  ;;  %v3661_v33 = vadd.f32 1.0, %v4834_v35  ;;  %v7064_v20 = vadd.f32 %v2380_v61, %v2237_v59  ;;  %8800 = vst [vmem:[#allocation55_spill] sm:$0xff] %v7069_v37  ;;  %v7072_v38 = vmul.f32 %v5350_v60, %v1802_v49 }
 0x20c   : > { %v7079_v30 = vsel %vm1565_vm1, %v1477_v44, 0.0  ;;  %v7082_v61 = vmul.f32 %v5354_v63, %v1802_v49  ;;  %v2424_v44 = vrot.slane %v2304_v51, 1  ;;  %v8805_v23 = vrot.slane %v8804_v25, 1 }
 0x20d   : > { %4841 = vrcp.f32 %v3661_v33  ;;  %v1912_v59 = vmul.f32 %v5368_v8, %v7079_v30  ;;  %v1978_v35 = vmul.f32 %v8529_v6, %v7079_v30  ;;  %v1316_v51 = vadd.f32 1.0, %v6842_v21 }
 0x20e   : > { %v2425_v47 = vsel %vm2118_vm2, %v8803_v18, %v2424_v44  ;;  %v7104_v49 = vsel %vm2118_vm2, %v2424_v44, %v8805_v23  ;;  %v1293_v21 = vadd.f32 1.0, %v6858_v11  ;;  %v2035_v23 = vmul.f32 %v8665_v24, %v6752_v9 }
 0x20f   : > { %v4836_v57 = vpop.eup %4835  ;;  %v7094_v17 = vadd.f32 %v1912_v59, %v8801_v53  ;;  %v2010_v37 = vadd.f32 %v1978_v35, %v8802_v34  ;;  %v8806_v34 = vld [vmem:[#allocation18_spill] sm:$0xff]  ;;  %v7134_v11 = vmul.f32 %v5354_v63, %v7079_v30  ;;  %v1320_v9 = vadd.f32 1.0, %v6864_v41 }
 0x210   : > { %v3678_v33 = vadd.f32 1.0, %v4836_v57  ;;  %v2140_v57 = vrot.slane %v2035_v23, 1  ;;  %v8812_v41 = vld [vmem:[#allocation54_spill] sm:$0xff]  ;;  %v1318_v59 = vadd.f32 1.0, %v7027_v16  ;;  %v8829_v16 = vld [vmem:[#allocation67_spill] sm:$0xff] }
 0x211   : > { %v4838_v14 = vpop.eup %4837  ;;  %v2255_v35 = vadd.f32 %v8806_v34, %v2010_v37  ;;  %v7127_v37 = vmul.f32 %v5352_v62, %v7079_v30  ;;  %v8813_v23 = vrot.slane %v8812_v41, 1 }
 0x212   : > { %v3679_v12 = vadd.f32 1.0, %v4838_v14  ;;  %4843 = vrcp.f32 %v3678_v33  ;;  %v7114_v14 = vmul.f32 %v5346_v58, %v7079_v30  ;;  %v7140_v33 = vmul.f32 %v5361_v2, %v7079_v30 }
 0x213   : > { %v7116_v18 = vadd.f32 %v2425_v47, %v2255_v35  ;;  %8807 = vst [vmem:[#allocation61_spill] sm:$0xff] %v7127_v37  ;;  %v2062_v47 = vmul.f32 %v8665_v24, %v6764_v56  ;;  %v8808_v56 = vld [vmem:[#allocation62_spill] sm:$0xff]  ;;  %v7154_v44 = vsel %vm2118_vm2, %v2140_v57, %v8813_v23 }
 0x214   : > { %4845 = vrcp.f32 %v3679_v12  ;;  %v7123_v12 = vmul.f32 %v5350_v60, %v7079_v30  ;;  %8814 = vst [vmem:[#allocation44_spill] sm:$0xff] %v7154_v44 }
 0x215   : > { %4847 = vrcp.f32 %v1289_v28  ;;  %v4840_v25 = vpop.eup %4839  ;;  %v2185_v34 = vrot.slane %v2062_v47, 1 }
 0x216   : > { %4849 = vrcp.f32 %v1316_v51  ;;  %v3756_v28 = vmul.f32 %v4840_v25, %v6914_v3  ;;  %v1291_v51 = vadd.f32 1.0, %v7011_v55  ;;  %v8810_v3 = vld [vmem:[#allocation56_spill] sm:$0xff]  ;;  %v8815_v55 = vrot.slane %v6680_v19, 1 }
 0x217   : > { %v4842_v35 = vpop.eup %4841  ;;  %v8811_v25 = vrot.slane %v8810_v3, 1  ;;  %4851 = vrcp.f32 %v1293_v21  ;;  %v8819_v21 = vld [vmem:[#allocation16_spill] sm:$0xff]  ;;  %v7176_v19 = vmul.f32 %v8665_v24, %v7079_v30 }
 0x218   : > { %v7144_v40 = vadd.f32 %v8808_v56, %v3756_v28  ;;  %v3757_v53 = vmul.f32 %v4842_v35, %v6949_v22  ;;  %v7161_v47 = vsel %vm2118_vm2, %v8815_v55, %v2185_v34  ;;  %v8816_v56 = vld [vmem:[#allocation36_spill] sm:$0xff]  ;;  %4853 = vrcp.f32 %v1320_v9 }
 0x219   : > { %v7149_v48 = vsel %vm2118_vm2, %v8811_v25, %v2140_v57  ;;  %v8817_v3 = vrot.slane %v8816_v56, 1  ;;  %4855 = vrcp.f32 %v1291_v51  ;;  %8821 = vst [vmem:[#allocation62_spill] sm:$0xff] %v7176_v19  ;;  %v4280_v55 = vmul.f32 -1.442695, %v6944_v50  ;;  %v8822_v56 = vld [vmem:[#allocation12_spill] sm:$0xff]  ;;  %v8833_v19 = vld [vmem:[#allocation71_spill] sm:$0xff] }
 0x21a   : > { %8809 = vst [vmem:[#allocation20_spill] sm:$0xff] %v7144_v40  ;;  %v4401_v22 = vpack.c.bf16 %v3757_v53, %v3756_v28  ;;  %v7172_v35 = vadd.f32 %v8819_v21, %v3757_v53  ;;  %4857 = vrcp.f32 %v1318_v59  ;;  %v8824_v53 = vld [vmem:[#allocation57_spill] sm:$0xff]  ;;  %v4251_v9 = vmul.f32 -1.442695, %v6953_v0 }
 0x21b   : > { %v7166_v25 = vsel %vm2118_vm2, %v2185_v34, %v8817_v3  ;;  %v1018_v3 = vmul.f32 %v6923_v4, %v8822_v56  ;;  %4859 = vpow2.f32 %v8824_v53  ;;  %v7189_v51 = vmul.f32 -1.442695, %v6959_v31  ;;  %v8827_v56 = vld [vmem:[#allocation21_spill] sm:$0xff] }
 0x21c   : > { %8818 = vst [vmem:[#allocation10_spill] sm:$0xff] %v7166_v25  ;;  %8820 = vst [vmem:[#allocation18_spill] sm:$0xff] %v7172_v35  ;;  %v4844_v23 = vpop.eup %4843  ;;  %4861 = vpow2.f32 %v6918_v42 }
 0x21d   : > { %4469 = vst [vmem:[%s5104_s19 + $0x10] sm:$0xff] %v4401_v22   ;;  %v7184_v28 = vmul.f32 %v4844_v23, %v6983_v13  ;;  %v7197_v22 = vmul.f32 %v5358_v1, %v7079_v30  ;;  %v7200_v13 = vmul.f32 0.0, %v8529_v6  ;;  %4863 = vpow2.f32 %v6935_v26 }
 0x21e   : > { %v4846_v57 = vpop.eup %4845  ;;  %v7215_v41 = vadd.f32 %v6940_v29, %v1018_v3  ;;  %4865 = vpow2.f32 %v4280_v55 }
 0x21f   : > { %8823 = vst [vmem:[#allocation56_spill] sm:$0xff] %v7184_v28  ;;  %v4848_v21 = vpop.eup %4847  ;;  %v7192_v59 = vmul.f32 %v4846_v57, %v6988_v27  ;;  %8826 = vst [vmem:[#allocation36_spill] sm:$0xff] %v7200_v13  ;;  %v8828_v27 = vld [vmem:[#allocation64_spill] sm:$0xff]  ;;  %v7218_v13 = vmul.f32 0.0, %v5350_v60  ;;  %4867 = vpow2.f32 %v4251_v9  ;;  %v8851_v9 = vrot.slane %v7123_v12, 1 }
 0x220   : > { %v4850_v23 = vpop.eup %4849  ;;  %v7203_v53 = vmul.f32 %v4848_v21, %v8827_v56  ;;  %v1045_v57 = vmul.f32 %v6923_v4, %v8828_v27  ;;  %8830 = vst [vmem:[#allocation16_spill] sm:$0xff] %v7215_v41  ;;  %4869 = vpow2.f32 %v7189_v51 }
 0x221   : > { %8825 = vst [vmem:[#allocation54_spill] sm:$0xff] %v7192_v59  ;;  %v4446_v42 = vpack.c.bf16 %v7192_v59, %v7184_v28  ;;  %v7212_v30 = vmul.f32 %v4850_v23, %v8829_v16  ;;  %8831 = vst [vmem:[#allocation12_spill] sm:$0xff] %v7218_v13  ;;  %v4852_v34 = vpop.eup %4851  ;;  %v8832_v28 = vld [vmem:[#allocation51_spill] sm:$0xff] }
 0x222   : > { %v1895_v26 = vmul.f32 %v5368_v8, %v7203_v53  ;;  %v1961_v21 = vmul.f32 %v8529_v6, %v7203_v53  ;;  %v2521_v56 = vmul.f32 %v5350_v60, %v7203_v53  ;;  %v2771_v16 = vmul.f32 %v5352_v62, %v7203_v53  ;;  %v4854_v0 = vpop.eup %4853 }
 0x223   : > { %4478 = vst [vmem:[%s5104_s19 + $0x58] sm:$0xff] %v4446_v42   ;;  %v3013_v3 = vmul.f32 %v5354_v63, %v7203_v53  ;;  %v3254_v23 = vmul.f32 %v5361_v2, %v7203_v53  ;;  %v1913_v27 = vmul.f32 %v5368_v8, %v7212_v30  ;;  %v1979_v42 = vmul.f32 %v8529_v6, %v7212_v30  ;;  %v7244_v35 = vpop.eup %4855 }
 0x224   : > { %v7236_v59 = vadd.f32 %v1895_v26, %v6969_v52  ;;  %v1993_v31 = vadd.f32 %v1961_v21, %v8832_v28  ;;  %v2623_v55 = vrot.slane %v2521_v56, 1  ;;  %v2878_v50 = vrot.slane %v2771_v16, 2  ;;  %v7254_v16 = vpop.eup %4857 }
 0x225   : > { %v3117_v25 = vrot.slane %v3013_v3, 2  ;;  %v3356_v44 = vrot.slane %v3254_v23, 2  ;;  %v7242_v37 = vadd.f32 %v1913_v27, %v6980_v5  ;;  %v8834_v52 = vrot.slane %v7072_v38, 1 }
 0x226   : > { %v2238_v40 = vadd.f32 %v8833_v19, %v1993_v31  ;;  %v8835_v28 = vrot.slane %v6976_v36, 1  ;;  %v2011_v56 = vadd.f32 %v1979_v42, %v6808_v32  ;;  %v8836_v5 = vrot.slane %v7075_v45, 2  ;;  %v7272_v32 = vpop.eup %4859 }
 0x227   : > { %v2624_v26 = vsel %vm2118_vm2, %v8834_v52, %v2623_v55  ;;  %v8838_v31 = vrot.slane %v6992_v7, 2  ;;  %v8840_v36 = vrot.slane %v7082_v61, 2  ;;  %v7286_v42 = vpop.eup %4861  ;;  %v8845_v52 = vld [vmem:[#allocation46_spill] sm:$0xff] }
 0x228   : > { %v2626_v21 = vsel %vm2118_vm2, %v2623_v55, %v8835_v28  ;;  %v2725_v3 = vadd.f32 %v2624_v26, %v7064_v20  ;;  %v7260_v23 = vsel %vm2851_vm3, %v8836_v5, %v2878_v50  ;;  %v2482_v27 = vadd.f32 %v7047_v10, %v2238_v40  ;;  %v8846_v28 = vld [vmem:[#allocation63_spill] sm:$0xff]  ;;  %v7294_v40 = vpop.eup %4863 }
 0x229   : > { %8837 = vst [vmem:[#allocation57_spill] sm:$0xff] %v7260_v23  ;;  %v7265_v38 = vsel %vm2851_vm3, %v2878_v50, %v8838_v31  ;;  %v7270_v19 = vsel %vm2851_vm3, %v8840_v36, %v3117_v25  ;;  %v8841_v20 = vrot.slane %v6995_v43, 2  ;;  %v8843_v55 = vrot.slane %v7091_v54, 2 }
 0x22a   : > { %8839 = vst [vmem:[#allocation21_spill] sm:$0xff] %v7265_v38  ;;  %v8844_v50 = vrot.slane %v6999_v15, 2  ;;  %v2970_v26 = vadd.f32 %v8845_v52, %v2725_v3  ;;  %v2256_v5 = vadd.f32 %v8846_v28, %v2011_v56  ;;  %v2548_v10 = vmul.f32 %v5350_v60, %v7212_v30  ;;  %v8850_v28 = vld [vmem:[#allocation11_spill] sm:$0xff] }
 0x22b   : > { %v7278_v45 = vsel %vm2851_vm3, %v3117_v25, %v8841_v20  ;;  %v3357_v7 = vsel %vm2851_vm3, %v8843_v55, %v3356_v44  ;;  %v3040_v43 = vmul.f32 %v5354_v63, %v7212_v30  ;;  %v2726_v54 = vadd.f32 %v2626_v21, %v2482_v27  ;;  %v8848_v25 = vld [vmem:[#allocation17_spill] sm:$0xff]  ;;  %v7303_v20 = vpop.eup %4865  ;;  %v8849_v55 = vld [vmem:[#allocation74_spill] sm:$0xff] }
 0x22c   : > { %8842 = vst [vmem:[#allocation64_spill] sm:$0xff] %v7278_v45  ;;  %v3359_v61 = vsel %vm2851_vm3, %v3356_v44, %v8844_v50  ;;  %v3281_v15 = vmul.f32 %v5361_v2, %v7212_v30  ;;  %v7299_v44 = vadd.f32 %v6940_v29, %v1045_v57  ;;  %v3214_v3 = vadd.f32 %v8848_v25, %v2970_v26  ;;  %v8856_v25 = vld [vmem:[#allocation81_spill] sm:$0xff] }
 0x22d   : > { %v2500_v56 = vadd.f32 %v7104_v49, %v2256_v5  ;;  %v2668_v31 = vrot.slane %v2548_v10, 1  ;;  %v3162_v36 = vrot.slane %v3040_v43, 2  ;;  %v2971_v50 = vadd.f32 %v8849_v55, %v2726_v54  ;;  %v8855_v43 = vld [vmem:[#allocation78_spill] sm:$0xff] }
 0x22e   : > { %8847 = vst [vmem:[#allocation67_spill] sm:$0xff] %v7299_v44  ;;  %v3401_v52 = vrot.slane %v3281_v15, 2  ;;  %v1455_v21 = vmul.f32 %v4852_v34, %v8850_v28  ;;  %v4252_v27 = vmul.f32 -1.442695, %v7215_v41  ;;  %v3458_v38 = vadd.f32 %v3357_v7, %v3214_v3  ;;  %v8859_v3 = vld [vmem:[#allocation68_spill] sm:$0xff]  ;;  %v8880_v41 = vld [vmem:[#allocation69_spill] sm:$0xff] }
 0x22f   : > { %v2669_v57 = vsel %vm2118_vm2, %v8851_v9, %v2668_v31  ;;  %v8852_v26 = vrot.slane %v7017_v46, 1  ;;  %v8853_v5 = vrot.slane %v7134_v11, 2  ;;  %v3215_v54 = vadd.f32 %v8855_v43, %v2971_v50  ;;  %v8861_v11 = vld [vmem:[#allocation82_spill] sm:$0xff] }
 0x230   : > { %v2743_v34 = vadd.f32 %v2669_v57, %v7116_v18  ;;  %v8857_v7 = vrot.slane %v8856_v25, 2  ;;  %v3496_v55 = vmul.f32 %v8859_v3, %v3458_v38  ;;  %v8860_v46 = vrot.slane %v7140_v33, 2  ;;  %v8864_v18 = vld [vmem:[#allocation47_spill] sm:$0xff]  ;;  %v8865_v57 = vld [vmem:[#allocation48_spill] sm:$0xff] }
 0x231   : > { %v2671_v49 = vsel %vm2118_vm2, %v2668_v31, %v8852_v26  ;;  %v7317_v10 = vsel %vm2851_vm3, %v8853_v5, %v3162_v36  ;;  %v8862_v28 = vrot.slane %v8861_v11, 2  ;;  %v8863_v26 = vld [vmem:[#allocation22_spill] sm:$0xff]  ;;  %v3459_v5 = vadd.f32 %v3359_v61, %v3215_v54  ;;  %v8867_v25 = vld [vmem:[#allocation35_spill] sm:$0xff] }
 0x232   : > { %8854 = vst [vmem:[#allocation51_spill] sm:$0xff] %v7317_v10  ;;  %v2744_v15 = vadd.f32 %v2671_v49, %v2500_v56  ;;  %v7324_v12 = vsel %vm2851_vm3, %v3162_v36, %v8857_v7  ;;  %v3402_v31 = vsel %vm2851_vm3, %v8860_v46, %v3401_v52  ;;  %v1482_v50 = vmul.f32 %v4854_v0, %v8863_v26  ;;  %v8869_v61 = vld [vmem:[#allocation75_spill] sm:$0xff]  ;;  %v8870_v54 = vld [vmem:[#allocation50_spill] sm:$0xff]  ;;  %v7358_v46 = vpop.eup %4867 }
 0x233   : > { %8858 = vst [vmem:[#allocation71_spill] sm:$0xff] %v7324_v12  ;;  %v3404_v9 = vsel %vm2851_vm3, %v3401_v52, %v8862_v28  ;;  %v2988_v56 = vadd.f32 %v8864_v18, %v2743_v34  ;;  %v1807_v36 = vsel %vm1624_vm0, %v1455_v21, 0.0  ;;  %v7339_v38 = vadd.f32 %v8867_v25, %v3496_v55 }
 0x234   : > { %v2989_v49 = vadd.f32 %v8865_v57, %v2744_v15  ;;  %v7344_v7 = vmul.f32 0.0, %v5361_v2  ;;  %v3497_v0 = vmul.f32 %v8859_v3, %v3459_v5  ;;  %v7350_v15 = vmul.f32 -1.442695, %v7299_v44 }
 0x235   : > { %v3232_v52 = vadd.f32 %v8869_v61, %v2988_v56  ;;  %v4292_v21 = vmul.f32 -1.442695, %v7339_v38  ;;  %v7354_v55 = vmul.f32 %v8665_v24, %v1807_v36  ;;  %v1834_v51 = vsel %vm1624_vm0, %v1482_v50, 0.0 }
 0x236   : > { %8868 = vst [vmem:[#allocation46_spill] sm:$0xff] %v7344_v7  ;;  %v3233_v34 = vadd.f32 %v8870_v54, %v2989_v49  ;;  %8871 = vst [vmem:[#allocation63_spill] sm:$0xff] %v7350_v15  ;;  %4871 = vpow2.f32 %v4252_v27  ;;  %v7361_v11 = vadd.f32 %v8867_v25, %v3497_v0  ;;  %v7364_v5 = vmul.f32 %v5346_v58, %v1807_v36  ;;  %v8886_v15 = vld [vmem:[#allocation15_spill] sm:$0xff] }
 0x237   : > { %8872 = vst [vmem:[#allocation17_spill] sm:$0xff] %v7354_v55  ;;  %v3476_v28 = vadd.f32 %v3402_v31, %v3232_v52  ;;  %4873 = vpow2.f32 %v4292_v21  ;;  %v7367_v18 = vmul.f32 %v5350_v60, %v1807_v36  ;;  %v7370_v56 = vmul.f32 %v5352_v62, %v1807_v36 }
 0x238   : > { %v3477_v26 = vadd.f32 %v3404_v9, %v3233_v34  ;;  %8873 = vst [vmem:[#allocation74_spill] sm:$0xff] %v7364_v5  ;;  %v7373_v50 = vmul.f32 %v5354_v63, %v1807_v36  ;;  %v4293_v27 = vmul.f32 -1.442695, %v7361_v11  ;;  %v8874_v9 = vld [vmem:[#allocation65_spill] sm:$0xff]  ;;  %v7384_v0 = vmul.f32 %v5358_v1, %v7203_v53  ;;  %v8882_v5 = vld [vmem:[#allocation55_spill] sm:$0xff] }
 0x239   : > { %v3514_v57 = vmul.f32 %v8859_v3, %v3476_v28  ;;  %v7380_v49 = vmul.f32 %v6923_v4, %v8874_v9  ;;  %v7388_v52 = vmul.f32 %v5361_v2, %v1807_v36  ;;  %v7391_v54 = vmul.f32 %v8665_v24, %v1834_v51  ;;  %v8876_v36 = vld [vmem:[#allocation23_spill] sm:$0xff]  ;;  %v7412_v28 = vpop.eup %4869 }
 0x23a   : > { %v3515_v31 = vmul.f32 %v8859_v3, %v3477_v26  ;;  %4875 = vpow2.f32 %v4293_v27  ;;  %v1453_v61 = vmul.f32 %v7244_v35, %v8876_v36  ;;  %v7417_v33 = vmul.f32 %v5350_v60, %v1834_v51 }
 0x23b   : > { %8875 = vst [vmem:[#allocation11_spill] sm:$0xff] %v7391_v54  ;;  %v7394_v34 = vadd.f32 %v8867_v25, %v3514_v57  ;;  %v7408_v57 = vmul.f32 %v5346_v58, %v1834_v51  ;;  %v7422_v13 = vmul.f32 %v5352_v62, %v1834_v51  ;;  %v1480_v9 = vmul.f32 %v7254_v16, %v8880_v41 }
 0x23c   : > { %v7397_v21 = vadd.f32 %v8867_v25, %v3515_v31  ;;  %v2280_v31 = vmul.f32 %v5346_v58, %v7203_v53  ;;  %v1805_v36 = vsel %vm1565_vm1, %v1453_v61, 0.0  ;;  %v2307_v54 = vmul.f32 %v5346_v58, %v7212_v30  ;;  %v8884_v25 = vld [vmem:[#allocation83_spill] sm:$0xff] }
 0x23d   : > { %v4310_v7 = vmul.f32 -1.442695, %v7394_v34  ;;  %8877 = vst [vmem:[#allocation78_spill] sm:$0xff] %v7408_v57  ;;  %8879 = vst [vmem:[#allocation81_spill] sm:$0xff] %v7422_v13  ;;  %v1896_v55 = vmul.f32 %v5368_v8, %v1805_v36  ;;  %v1962_v44 = vmul.f32 %v8529_v6, %v1805_v36  ;;  %v8885_v41 = vrot.slane %v7059_v39, 1 }
 0x23e   : > { %v4311_v27 = vmul.f32 -1.442695, %v7397_v21  ;;  %v2384_v26 = vrot.slane %v2280_v31, 1  ;;  %v7442_v31 = vmul.f32 %v5361_v2, %v1834_v51  ;;  %v8887_v61 = vrot.slane %v8886_v15, 1 }
 0x23f   : > { %4877 = vpow2.f32 %v4310_v7  ;;  %v7434_v7 = vmul.f32 %v5354_v63, %v1834_v51  ;;  %v7437_v12 = vadd.f32 %v1896_v55, %v8882_v5  ;;  %v1994_v10 = vadd.f32 %v1962_v44, %v8884_v25 }
 0x240   : > { %v7426_v23 = vpop.eup %4871  ;;  %4879 = vpow2.f32 %v4311_v27  ;;  %v2385_v16 = vsel %vm2118_vm2, %v8885_v41, %v2384_v26  ;;  %v7450_v57 = vsel %vm2118_vm2, %v2384_v26, %v8887_v61  ;;  %v7454_v44 = vmul.f32 %v8665_v24, %v1805_v36 }
 0x241   : > { %8881 = vst [vmem:[#allocation82_spill] sm:$0xff] %v7434_v7  ;;  %8883 = vst [vmem:[#allocation22_spill] sm:$0xff] %v7437_v12  ;;  %v4874_v3 = vpop.eup %4873  ;;  %v2239_v25 = vadd.f32 %v7149_v48, %v1994_v10  ;;  %v7458_v51 = vmul.f32 %v5346_v58, %v1805_v36  ;;  %v7461_v39 = vmul.f32 %v5350_v60, %v1805_v36  ;;  %v7465_v15 = vsel %vm1565_vm1, %v1480_v9, 0.0 }
 0x242   : > { %v3662_v45 = vadd.f32 1.0, %v4874_v3  ;;  %8888 = vst [vmem:[#allocation47_spill] sm:$0xff] %v7454_v44  ;;  %v2429_v5 = vrot.slane %v2307_v54, 1  ;;  %v7470_v61 = vmul.f32 %v5352_v62, %v1805_v36  ;;  %v1980_v48 = vmul.f32 %v8529_v6, %v7465_v15 }
 0x243   : > { %8889 = vst [vmem:[#allocation48_spill] sm:$0xff] %v7458_v51  ;;  %v7467_v3 = vadd.f32 %v2385_v16, %v2239_v25  ;;  %v7477_v27 = vmul.f32 %v5358_v1, %v1805_v36  ;;  %v8891_v9 = vrot.slane %v7114_v14, 1  ;;  %v8892_v25 = vld [vmem:[#allocation79_spill] sm:$0xff]  ;;  %v7491_v41 = vmul.f32 %v5354_v63, %v1805_v36 }
 0x244   : > { %v4876_v26 = vpop.eup %4875  ;;  %4881 = vrcp.f32 %v3662_v45  ;;  %v2012_v45 = vadd.f32 %v1980_v48, %v7094_v17  ;;  %v8893_v13 = vrot.slane %v8892_v25, 1  ;;  %v7494_v55 = vmul.f32 %v5361_v2, %v1805_v36 }
 0x245   : > { %v3663_v10 = vadd.f32 1.0, %v4876_v26  ;;  %8890 = vst [vmem:[#allocation75_spill] sm:$0xff] %v7477_v27  ;;  %v2430_v16 = vsel %vm2118_vm2, %v8891_v9, %v2429_v5  ;;  %v1292_v9 = vadd.f32 1.0, %v7272_v32  ;;  %v7506_v25 = vmul.f32 %v5350_v60, %v7465_v15  ;;  %v8898_v27 = vld [vmem:[#allocation76_spill] sm:$0xff] }
 0x246   : > { %v7487_v12 = vsel %vm2118_vm2, %v2429_v5, %v8893_v13  ;;  %v2257_v48 = vadd.f32 %v7161_v47, %v2012_v45  ;;  %v1319_v36 = vadd.f32 1.0, %v7286_v42  ;;  %v7513_v47 = vmul.f32 %v5352_v62, %v7465_v15 }
 0x247   : > { %4883 = vrcp.f32 %v3663_v10  ;;  %v7502_v10 = vmul.f32 %v8665_v24, %v7465_v15  ;;  %v2038_v45 = vmul.f32 %v8665_v24, %v7203_v53  ;;  %v7521_v42 = vmul.f32 %v5354_v63, %v7465_v15 }
 0x248   : > { %v7509_v17 = vadd.f32 %v2430_v16, %v2257_v48  ;;  %8894 = vst [vmem:[#allocation50_spill] sm:$0xff] %v7513_v47  ;;  %4885 = vrcp.f32 %v1292_v9  ;;  %v7525_v16 = vmul.f32 %v5361_v2, %v7465_v15  ;;  %v1914_v48 = vmul.f32 %v5368_v8, %v7465_v15 }
 0x249   : > { %v4878_v54 = vpop.eup %4877  ;;  %8895 = vst [vmem:[#allocation65_spill] sm:$0xff] %v7521_v42  ;;  %v1296_v9 = vadd.f32 1.0, %v7294_v40  ;;  %v1323_v40 = vadd.f32 1.0, %v7303_v20  ;;  %v8899_v51 = vrot.slane %v8898_v27, 1  ;;  %v1294_v32 = vadd.f32 1.0, %v7358_v46  ;;  %v8900_v20 = vld [vmem:[#allocation20_spill] sm:$0xff] }
 0x24a   : > { %v4880_v13 = vpop.eup %4879  ;;  %v3680_v5 = vadd.f32 1.0, %v4878_v54  ;;  %v7539_v14 = vadd.f32 %v1914_v48, %v7197_v22  ;;  %v1321_v27 = vadd.f32 1.0, %v7412_v28  ;;  %v1295_v46 = vadd.f32 1.0, %v7426_v23 }
 0x24b   : > { %v3681_v26 = vadd.f32 1.0, %v4880_v13  ;;  %v2145_v13 = vrot.slane %v2038_v45, 1  ;;  %v8896_v45 = vld [vmem:[#allocation45_spill] sm:$0xff] }
 0x24c   : > { %4887 = vrcp.f32 %v3680_v5  ;;  %v2065_v5 = vmul.f32 %v8665_v24, %v7212_v30  ;;  %v8897_v44 = vrot.slane %v8896_v45, 1 }
 0x24d   : > { %4889 = vrcp.f32 %v3681_v26  ;;  %v7534_v26 = vmul.f32 %v5346_v58, %v7465_v15  ;;  %v7551_v35 = vsel %vm2118_vm2, %v2145_v13, %v8899_v51 }
 0x24e   : > { %4891 = vrcp.f32 %v1319_v36  ;;  %v4882_v53 = vpop.eup %4881  ;;  %v7546_v7 = vsel %vm2118_vm2, %v8897_v44, %v2145_v13  ;;  %v2190_v22 = vrot.slane %v2065_v5, 1  ;;  %v8902_v13 = vld [vmem:[#allocation62_spill] sm:$0xff] }
 0x24f   : > { %v3758_v36 = vmul.f32 %v4882_v53, %v7339_v38  ;;  %v2798_v38 = vmul.f32 %v5352_v62, %v7212_v30  ;;  %4893 = vrcp.f32 %v1296_v9  ;;  %v8903_v45 = vrot.slane %v8902_v13, 1  ;;  %v8904_v5 = vld [vmem:[#allocation42_spill] sm:$0xff] }
 0x250   : > { %v8905_v42 = vrot.slane %v8904_v5, 1  ;;  %4895 = vrcp.f32 %v1323_v40  ;;  %v7576_v9 = vmul.f32 %v5358_v1, %v7465_v15  ;;  %v8908_v13 = vld [vmem:[#allocation18_spill] sm:$0xff]  ;;  %v8911_v15 = vld [vmem:[#allocation61_spill] sm:$0xff] }
 0x251   : > { %v4884_v48 = vpop.eup %4883  ;;  %v7558_v53 = vadd.f32 %v8900_v20, %v3758_v36  ;;  %v7566_v54 = vsel %vm2118_vm2, %v8903_v45, %v2190_v22  ;;  %v2923_v28 = vrot.slane %v2798_v38, 2  ;;  %4897 = vrcp.f32 %v1294_v32  ;;  %v8910_v45 = vld [vmem:[#allocation14_spill] sm:$0xff] }
 0x252   : > { %v3759_v51 = vmul.f32 %v4884_v48, %v7361_v11  ;;  %v7572_v47 = vsel %vm2118_vm2, %v2190_v22, %v8905_v42  ;;  %v7580_v11 = vadd.f32 %v6940_v29, %v7380_v49  ;;  %v4886_v48 = vpop.eup %4885  ;;  %4899 = vrcp.f32 %v1321_v27  ;;  %v8914_v49 = vld [vmem:[#allocation80_spill] sm:$0xff] }
 0x253   : > { %8901 = vst [vmem:[#allocation23_spill] sm:$0xff] %v7558_v53  ;;  %8906 = vst [vmem:[#allocation69_spill] sm:$0xff] %v7572_v47  ;;  %v7587_v40 = vmul.f32 %v4886_v48, %v8910_v45  ;;  %v8912_v5 = vrot.slane %v8911_v15, 2  ;;  %v8915_v44 = vrot.slane %v8914_v49, 2  ;;  %4901 = vrcp.f32 %v1295_v46  ;;  %v8918_v48 = vld [vmem:[#allocation41_spill] sm:$0xff]  ;;  %v8921_v47 = vld [vmem:[#allocation44_spill] sm:$0xff] }
 0x254   : > { %8907 = vst [vmem:[#allocation55_spill] sm:$0xff] %v7580_v11  ;;  %v4406_v20 = vpack.c.bf16 %v3759_v51, %v3758_v36  ;;  %v7583_v23 = vadd.f32 %v8908_v13, %v3759_v51  ;;  %v1020_v27 = vmul.f32 %v6923_v4, %v8918_v48 }
 0x255   : > { %v7592_v38 = vsel %vm2851_vm3, %v8912_v5, %v2923_v28  ;;  %v7597_v36 = vsel %vm2851_vm3, %v2923_v28, %v8915_v44  ;;  %v1897_v5 = vmul.f32 %v5368_v8, %v7587_v40  ;;  %v1963_v44 = vmul.f32 %v8529_v6, %v7587_v40 }
 0x256   : > { %8909 = vst [vmem:[#allocation83_spill] sm:$0xff] %v7583_v23  ;;  %v4888_v22 = vpop.eup %4887  ;;  %8913 = vst [vmem:[#allocation15_spill] sm:$0xff] %v7592_v38  ;;  %v2524_v28 = vmul.f32 %v5350_v60, %v7587_v40  ;;  %v2774_v46 = vmul.f32 %v5352_v62, %v7587_v40  ;;  %v3016_v4 = vmul.f32 %v5354_v63, %v7587_v40 }
 0x257   : > { %8916 = vst [vmem:[#allocation79_spill] sm:$0xff] %v7597_v36  ;;  %v4890_v51 = vpop.eup %4889  ;;  %4470 = vst [vmem:[%s5104_s19 + $0x18] sm:$0xff] %v4406_v20   ;;  %v7601_v32 = vmul.f32 %v4888_v22, %v7394_v34  ;;  %v4256_v34 = vmul.f32 -1.442695, %v7580_v11  ;;  %v7625_v22 = vadd.f32 %v1897_v5, %v7384_v0  ;;  %v1995_v49 = vadd.f32 %v1963_v44, %v7236_v59 }
 0x258   : > { %v4892_v45 = vpop.eup %4891  ;;  %v7607_v15 = vmul.f32 %v4890_v51, %v7397_v21  ;;  %v3257_v21 = vmul.f32 %v5361_v2, %v7587_v40  ;;  %v8920_v51 = vld [vmem:[#allocation30_spill] sm:$0xff]  ;;  %v2628_v13 = vrot.slane %v2524_v28, 1  ;;  %v2883_v42 = vrot.slane %v2774_v46, 2 }
 0x259   : > { %8917 = vst [vmem:[#allocation45_spill] sm:$0xff] %v7601_v32  ;;  %v7629_v48 = vmul.f32 %v4892_v45, %v8920_v51  ;;  %v3122_v11 = vrot.slane %v3016_v4, 2  ;;  %v4894_v38 = vpop.eup %4893  ;;  %v2240_v23 = vadd.f32 %v8921_v47, %v1995_v49  ;;  %v8922_v45 = vrot.slane %v7461_v39, 1 }
 0x25a   : > { %8919 = vst [vmem:[#allocation76_spill] sm:$0xff] %v7607_v15  ;;  %v4451_v20 = vpack.c.bf16 %v7607_v15, %v7601_v32  ;;  %v3361_v36 = vrot.slane %v3257_v21, 2  ;;  %v8923_v44 = vrot.slane %v7367_v18, 1  ;;  %v8924_v46 = vrot.slane %v7470_v61, 2 }
 0x25b   : > { %v1981_v53 = vmul.f32 %v8529_v6, %v7629_v48  ;;  %v2551_v0 = vmul.f32 %v5350_v60, %v7629_v48  ;;  %v3284_v59 = vmul.f32 %v5361_v2, %v7629_v48  ;;  %v2629_v5 = vsel %vm2118_vm2, %v8922_v45, %v2628_v13 }
 0x25c   : > { %4479 = vst [vmem:[%s5104_s19 + $0x60] sm:$0xff] %v4451_v20   ;;  %v2631_v28 = vsel %vm2118_vm2, %v2628_v13, %v8923_v44  ;;  %v7648_v47 = vsel %vm2851_vm3, %v8924_v46, %v2883_v42  ;;  %v8926_v4 = vrot.slane %v7370_v56, 2  ;;  %v4896_v20 = vpop.eup %4895  ;;  %v2484_v49 = vadd.f32 %v7450_v57, %v2240_v23  ;;  %v8932_v46 = vld [vmem:[#allocation70_spill] sm:$0xff] }
 0x25d   : > { %8925 = vst [vmem:[#allocation20_spill] sm:$0xff] %v7648_v47  ;;  %v2727_v39 = vadd.f32 %v2629_v5, %v7467_v3  ;;  %v8928_v51 = vrot.slane %v7491_v41, 2  ;;  %v8929_v61 = vrot.slane %v7373_v50, 2  ;;  %v4898_v45 = vpop.eup %4897  ;;  %v8930_v56 = vrot.slane %v7494_v55, 2  ;;  %v8934_v55 = vld [vmem:[#allocation10_spill] sm:$0xff] }
 0x25e   : > { %v7653_v21 = vsel %vm2851_vm3, %v2883_v42, %v8926_v4  ;;  %v8931_v44 = vrot.slane %v7388_v52, 2  ;;  %v2013_v3 = vadd.f32 %v1981_v53, %v7242_v37  ;;  %v2673_v41 = vrot.slane %v2551_v0, 1  ;;  %v7674_v23 = vpop.eup %4899  ;;  %v8938_v0 = vld [vmem:[#allocation72_spill] sm:$0xff] }
 0x25f   : > { %8927 = vst [vmem:[#allocation62_spill] sm:$0xff] %v7653_v21  ;;  %v7660_v18 = vsel %vm2851_vm3, %v8928_v51, %v3122_v11  ;;  %v7665_v13 = vsel %vm2851_vm3, %v3122_v11, %v8929_v61  ;;  %v3362_v42 = vsel %vm2851_vm3, %v8930_v56, %v3361_v36  ;;  %v2728_v5 = vadd.f32 %v2631_v28, %v2484_v49  ;;  %v8933_v11 = vld [vmem:[#allocation19_spill] sm:$0xff]  ;;  %v7678_v61 = vpop.eup %4901 }
 0x260   : > { %v3364_v57 = vsel %vm2851_vm3, %v3361_v36, %v8931_v44  ;;  %v2972_v50 = vadd.f32 %v8932_v46, %v2727_v39  ;;  %v3406_v4 = vrot.slane %v3284_v59, 2  ;;  %v1458_v51 = vmul.f32 %v4894_v38, %v8933_v11  ;;  %v8948_v11 = vld [vmem:[#allocation51_spill] sm:$0xff] }
 0x261   : > { %v2258_v15 = vadd.f32 %v8934_v55, %v2013_v3  ;;  %v8935_v56 = vrot.slane %v7506_v25, 1  ;;  %v8936_v36 = vrot.slane %v7417_v33, 1  ;;  %v7688_v53 = vadd.f32 %v6940_v29, %v1020_v27  ;;  %v8942_v27 = vld [vmem:[#allocation27_spill] sm:$0xff]  ;;  %v8949_v55 = vld [vmem:[#allocation66_spill] sm:$0xff] }
 0x262   : > { %v2973_v28 = vadd.f32 %v8938_v0, %v2728_v5  ;;  %v3216_v59 = vadd.f32 %v7270_v19, %v2972_v50  ;;  %v8939_v49 = vrot.slane %v7525_v16, 2  ;;  %v8940_v44 = vrot.slane %v7442_v31, 2  ;;  %v8945_v16 = vld [vmem:[#allocation63_spill] sm:$0xff] }
 0x263   : > { %v2674_v52 = vsel %vm2118_vm2, %v8935_v56, %v2673_v41  ;;  %v2676_v37 = vsel %vm2118_vm2, %v2673_v41, %v8936_v36  ;;  %8937 = vst [vmem:[#allocation42_spill] sm:$0xff] %v7688_v53  ;;  %v2502_v25 = vadd.f32 %v7487_v12, %v2258_v15  ;;  %v7702_v29 = vsel %vm1624_vm0, %v1458_v51, 0.0  ;;  %v8943_v41 = vld [vmem:[#allocation64_spill] sm:$0xff] }
 0x264   : > { %v2745_v38 = vadd.f32 %v2674_v52, %v7509_v17  ;;  %v3407_v39 = vsel %vm2851_vm3, %v8939_v49, %v3406_v4  ;;  %v3409_v33 = vsel %vm2851_vm3, %v3406_v4, %v8940_v44  ;;  %8941 = vst [vmem:[#allocation18_spill] sm:$0xff] %v7702_v29  ;;  %v1485_v3 = vmul.f32 %v4896_v20, %v8942_v27  ;;  %v8944_v17 = vld [vmem:[#allocation26_spill] sm:$0xff]  ;;  %v8947_v4 = vld [vmem:[#allocation68_spill] sm:$0xff] }
 0x265   : > { %v3217_v19 = vadd.f32 %v8943_v41, %v2973_v28  ;;  %v3460_v5 = vadd.f32 %v3362_v42, %v3216_v59  ;;  %4903 = vpow2.f32 %v8945_v16  ;;  %v2746_v50 = vadd.f32 %v2676_v37, %v2502_v25  ;;  %v8957_v25 = vld [vmem:[#allocation77_spill] sm:$0xff] }
 0x266   : > { %v2990_v46 = vadd.f32 %v8944_v17, %v2745_v38  ;;  %v7710_v12 = vmul.f32 %v8665_v24, %v7702_v29  ;;  %v7714_v31 = vmul.f32 %v5358_v1, %v7212_v30  ;;  %4905 = vpow2.f32 %v4256_v34  ;;  %v8951_v38 = vld [vmem:[#allocation71_spill] sm:$0xff]  ;;  %v8964_v17 = vld [vmem:[#allocation22_spill] sm:$0xff] }
 0x267   : > { %v3461_v15 = vadd.f32 %v3364_v57, %v3217_v19  ;;  %v3498_v20 = vmul.f32 %v8947_v4, %v3460_v5  ;;  %v7719_v42 = vmul.f32 -1.442695, %v7688_v53  ;;  %v2991_v56 = vadd.f32 %v8949_v55, %v2746_v50  ;;  %v8950_v57 = vld [vmem:[#allocation35_spill] sm:$0xff] }
 0x268   : > { %8946 = vst [vmem:[#allocation14_spill] sm:$0xff] %v7710_v12  ;;  %v3234_v51 = vadd.f32 %v8948_v11, %v2990_v46  ;;  %v7724_v52 = vmul.f32 %v5350_v60, %v7702_v29  ;;  %v7728_v36 = vmul.f32 %v5352_v62, %v7702_v29  ;;  %v1837_v30 = vsel %vm1624_vm0, %v1485_v3, 0.0  ;;  %v8962_v11 = vld [vmem:[#allocation75_spill] sm:$0xff] }
 0x269   : > { %v3499_v34 = vmul.f32 %v8947_v4, %v3461_v15  ;;  %v7734_v37 = vadd.f32 %v8950_v57, %v3498_v20  ;;  %v7738_v28 = vmul.f32 %v5354_v63, %v7702_v29  ;;  %v7742_v59 = vmul.f32 %v5358_v1, %v7587_v40 }
 0x26a   : > { %v3478_v0 = vadd.f32 %v3407_v39, %v3234_v51  ;;  %v3235_v49 = vadd.f32 %v8951_v38, %v2991_v56  ;;  %v7748_v44 = vmul.f32 %v5361_v2, %v7702_v29  ;;  %v7756_v41 = vmul.f32 %v5346_v58, %v1837_v30 }
 0x26b   : > { %v7751_v27 = vadd.f32 %v8950_v57, %v3499_v34  ;;  %v4294_v39 = vmul.f32 -1.442695, %v7734_v37  ;;  %v7761_v46 = vmul.f32 %v5350_v60, %v1837_v30  ;;  %v2283_v55 = vmul.f32 %v5346_v58, %v7587_v40 }
 0x26c   : > { %v3516_v3 = vmul.f32 %v8947_v4, %v3478_v0  ;;  %v3479_v19 = vadd.f32 %v3409_v33, %v3235_v49  ;;  %v8952_v33 = vld [vmem:[#allocation9_spill] sm:$0xff]  ;;  %v7778_v38 = vmul.f32 %v5354_v63, %v1837_v30  ;;  %v1483_v0 = vmul.f32 %v7674_v23, %v8957_v25  ;;  %v8965_v23 = vld [vmem:[#allocation74_spill] sm:$0xff] }
 0x26d   : > { %4907 = vpow2.f32 %v4294_v39  ;;  %v4295_v16 = vmul.f32 -1.442695, %v7751_v27  ;;  %v1456_v51 = vmul.f32 %v4898_v45, %v8952_v33  ;;  %v7786_v45 = vmul.f32 %v5361_v2, %v1837_v30 }
 0x26e   : > { %v7765_v50 = vadd.f32 %v8950_v57, %v3516_v3  ;;  %v3517_v20 = vmul.f32 %v8947_v4, %v3479_v19  ;;  %v2389_v19 = vrot.slane %v2283_v55, 1  ;;  %v8966_v25 = vrot.slane %v8965_v23, 1 }
 0x26f   : > { %v7773_v56 = vpop.eup %4903  ;;  %4909 = vpow2.f32 %v4295_v16  ;;  %8954 = vst [vmem:[#allocation80_spill] sm:$0xff] %v7786_v45  ;;  %v7790_v3 = vsel %vm1565_vm1, %v1456_v51, 0.0  ;;  %v8960_v51 = vld [vmem:[#allocation48_spill] sm:$0xff]  ;;  %v2068_v23 = vmul.f32 %v8665_v24, %v7629_v48  ;;  %v8967_v53 = vrot.slane %v7502_v10, 1 }
 0x270   : > { %v4312_v34 = vmul.f32 -1.442695, %v7765_v50  ;;  %v7780_v49 = vpop.eup %4905  ;;  %v7783_v4 = vadd.f32 %v8950_v57, %v3517_v20  ;;  %8956 = vst [vmem:[#allocation41_spill] sm:$0xff] %v7790_v3  ;;  %v1898_v16 = vmul.f32 %v5368_v8, %v7790_v3  ;;  %v1964_v33 = vmul.f32 %v8529_v6, %v7790_v3 }
 0x271   : > { %8953 = vst [vmem:[#allocation61_spill] sm:$0xff] %v7780_v49  ;;  %v7801_v30 = vmul.f32 %v8665_v24, %v7790_v3  ;;  %v7805_v20 = vmul.f32 %v5346_v58, %v7790_v3  ;;  %v8961_v55 = vrot.slane %v8960_v51, 1  ;;  %v7817_v32 = vsel %vm2118_vm2, %v2389_v19, %v8966_v25 }
 0x272   : > { %4911 = vpow2.f32 %v4312_v34  ;;  %v4313_v57 = vmul.f32 -1.442695, %v7783_v4  ;;  %v7811_v15 = vadd.f32 %v1898_v16, %v8962_v11  ;;  %v1996_v5 = vadd.f32 %v1964_v33, %v8964_v17 }
 0x273   : > { %8958 = vst [vmem:[#allocation30_spill] sm:$0xff] %v7801_v30  ;;  %8959 = vst [vmem:[#allocation44_spill] sm:$0xff] %v7805_v20  ;;  %v2390_v34 = vsel %vm2118_vm2, %v8961_v55, %v2389_v19  ;;  %v7821_v21 = vmul.f32 %v5350_v60, %v7790_v3  ;;  %v7831_v19 = vmul.f32 %v5352_v62, %v7790_v3  ;;  %v2195_v47 = vrot.slane %v2068_v23, 1 }
 0x274   : > { %8963 = vst [vmem:[#allocation70_spill] sm:$0xff] %v7811_v15  ;;  %4913 = vpow2.f32 %v4313_v57  ;;  %v2241_v17 = vadd.f32 %v7546_v7, %v1996_v5  ;;  %v1835_v57 = vsel %vm1565_vm1, %v1483_v0, 0.0  ;;  %v2310_v25 = vmul.f32 %v5346_v58, %v7629_v48 }
 0x275   : > { %v7842_v7 = vmul.f32 %v5354_v63, %v7790_v3  ;;  %v7846_v5 = vmul.f32 %v5361_v2, %v7790_v3  ;;  %v1916_v16 = vmul.f32 %v5368_v8, %v1835_v57  ;;  %v1982_v0 = vmul.f32 %v8529_v6, %v1835_v57 }
 0x276   : > { %v2485_v55 = vadd.f32 %v2390_v34, %v2241_v17  ;;  %v7851_v33 = vmul.f32 %v5346_v58, %v1835_v57  ;;  %v2434_v17 = vrot.slane %v2310_v25, 1  ;;  %v7855_v15 = vmul.f32 %v5350_v60, %v1835_v57 }
 0x277   : > { %v4908_v11 = vpop.eup %4907  ;;  %v1948_v34 = vadd.f32 %v1916_v16, %v7576_v9  ;;  %v7858_v39 = vmul.f32 %v5354_v63, %v1835_v57  ;;  %v2196_v23 = vsel %vm2118_vm2, %v8967_v53, %v2195_v47  ;;  %v2887_v29 = vrot.slane %v7831_v19, 2  ;;  %v8968_v16 = vld [vmem:[#allocation36_spill] sm:$0xff]  ;;  %v8972_v53 = vld [vmem:[#allocation11_spill] sm:$0xff] }
 0x278   : > { %v3664_v51 = vadd.f32 1.0, %v4908_v11  ;;  %v2014_v11 = vadd.f32 %v1982_v0, %v7539_v14  ;;  %v3126_v9 = vrot.slane %v7842_v7, 2  ;;  %v8969_v20 = vrot.slane %v7534_v26, 1  ;;  %v8970_v0 = vld [vmem:[#allocation16_spill] sm:$0xff] }
 0x279   : > { %v4910_v43 = vpop.eup %4909  ;;  %v2016_v25 = vadd.f32 %v8968_v16, %v1948_v34  ;;  %v7878_v7 = vmul.f32 %v7678_v61, %v8970_v0  ;;  %v8973_v30 = vrot.slane %v8972_v53, 1 }
 0x27a   : > { %v3665_v3 = vadd.f32 1.0, %v4910_v43  ;;  %4915 = vrcp.f32 %v3664_v51  ;;  %v2435_v12 = vsel %vm2118_vm2, %v8969_v20, %v2434_v17  ;;  %v3365_v51 = vrot.slane %v7846_v5, 2 }
 0x27b   : > { %v2259_v14 = vadd.f32 %v7566_v54, %v2014_v11  ;;  %v7872_v10 = vadd.f32 %v2196_v23, %v2016_v25  ;;  %v7886_v20 = vmul.f32 %v5361_v2, %v1835_v57  ;;  %v1899_v5 = vmul.f32 %v5368_v8, %v7878_v7 }
 0x27c   : > { %v4912_v49 = vpop.eup %4911  ;;  %4917 = vrcp.f32 %v3665_v3  ;;  %v1915_v3 = vmul.f32 %v5368_v8, %v7629_v48  ;;  %v1322_v11 = vadd.f32 1.0, %v7773_v56  ;;  %v1965_v61 = vmul.f32 %v8529_v6, %v7878_v7 }
 0x27d   : > { %v3682_v43 = vadd.f32 1.0, %v4912_v49  ;;  %v7880_v26 = vadd.f32 %v2435_v12, %v2259_v14  ;;  %v2527_v12 = vmul.f32 %v5350_v60, %v7878_v7  ;;  %v2777_v23 = vmul.f32 %v5352_v62, %v7878_v7 }
 0x27e   : > { %v4914_v34 = vpop.eup %4913  ;;  %v3019_v25 = vmul.f32 %v5354_v63, %v7878_v7  ;;  %v7900_v57 = vadd.f32 %v1899_v5, %v7742_v59  ;;  %v7905_v56 = vadd.f32 %v1915_v3, %v7714_v31  ;;  %v1997_v14 = vadd.f32 %v1965_v61, %v7625_v22  ;;  %v8974_v59 = vld [vmem:[#allocation78_spill] sm:$0xff] }
 0x27f   : > { %4919 = vrcp.f32 %v3682_v43  ;;  %v3683_v54 = vadd.f32 1.0, %v4914_v34  ;;  %v3260_v43 = vmul.f32 %v5361_v2, %v7878_v7  ;;  %v2633_v0 = vrot.slane %v2527_v12, 1 }
 0x280   : > { %8971 = vst [vmem:[#allocation19_spill] sm:$0xff] %v7900_v57  ;;  %v2888_v34 = vrot.slane %v2777_v23, 2  ;;  %v3127_v49 = vrot.slane %v3019_v25, 2  ;;  %v8975_v5 = vrot.slane %v8974_v59, 1  ;;  %v2242_v31 = vadd.f32 %v7551_v35, %v1997_v14 }
 0x281   : > { %4921 = vrcp.f32 %v3683_v54  ;;  %v3366_v19 = vrot.slane %v3260_v43, 2  ;;  %v7911_v54 = vsel %vm2118_vm2, %v2195_v47, %v8973_v30  ;;  %v8976_v22 = vrot.slane %v7821_v21, 1 }
 0x282   : > { %4923 = vrcp.f32 %v1322_v11  ;;  %v7916_v57 = vsel %vm2118_vm2, %v2434_v17, %v8975_v5  ;;  %v8977_v61 = vrot.slane %v7724_v52, 1  ;;  %v7926_v53 = vsel %vm2851_vm3, %v2887_v29, %v2888_v34 }
 0x283   : > { %v2634_v3 = vsel %vm2118_vm2, %v8976_v22, %v2633_v0  ;;  %v8978_v17 = vrot.slane %v7728_v36, 2  ;;  %v7935_v35 = vsel %vm2851_vm3, %v3126_v9, %v3127_v49  ;;  %v2486_v23 = vadd.f32 %v7817_v32, %v2242_v31  ;;  %v8982_v9 = vld [vmem:[#allocation57_spill] sm:$0xff] }
 0x284   : > { %v4916_v45 = vpop.eup %4915  ;;  %v2636_v11 = vsel %vm2118_vm2, %v2633_v0, %v8977_v61  ;;  %v2729_v30 = vadd.f32 %v2634_v3, %v2485_v55  ;;  %v8979_v52 = vrot.slane %v7738_v28, 2  ;;  %v3367_v29 = vsel %vm2851_vm3, %v3365_v51, %v3366_v19  ;;  %v8981_v55 = vld [vmem:[#allocation23_spill] sm:$0xff]  ;;  %v8984_v31 = vld [vmem:[#allocation21_spill] sm:$0xff] }
 0x285   : > { %v3760_v47 = vmul.f32 %v4916_v45, %v7734_v37  ;;  %v7932_v12 = vsel %vm2851_vm3, %v2888_v34, %v8978_v17  ;;  %v8980_v37 = vrot.slane %v7748_v44, 2  ;;  %v2801_v32 = vmul.f32 %v5352_v62, %v7629_v48  ;;  %v8985_v17 = vld [vmem:[#allocation50_spill] sm:$0xff] }
 0x286   : > { %v4918_v21 = vpop.eup %4917  ;;  %v7941_v25 = vsel %vm2851_vm3, %v3127_v49, %v8979_v52  ;;  %v2974_v14 = vadd.f32 %v8982_v9, %v2729_v30  ;;  %v2730_v0 = vadd.f32 %v2636_v11, %v2486_v23  ;;  %v1881_v44 = vmul.f32 %v5358_v1, %v7629_v48  ;;  %v8987_v52 = vld [vmem:[#allocation81_spill] sm:$0xff] }
 0x287   : > { %v3369_v36 = vsel %vm2851_vm3, %v3366_v19, %v8980_v37  ;;  %v3761_v45 = vmul.f32 %v4918_v21, %v7751_v27  ;;  %v7949_v43 = vadd.f32 %v8981_v55, %v3760_v47  ;;  %v3043_v51 = vmul.f32 %v5354_v63, %v7629_v48  ;;  %v8983_v19 = vld [vmem:[#allocation83_spill] sm:$0xff]  ;;  %v8989_v55 = vld [vmem:[#allocation65_spill] sm:$0xff] }
 0x288   : > { %v3218_v59 = vadd.f32 %v7660_v18, %v2974_v14  ;;  %4925 = vpow2.f32 %v7719_v42  ;;  %v2975_v22 = vadd.f32 %v8984_v31, %v2730_v0  ;;  %v2928_v3 = vrot.slane %v2801_v32, 2  ;;  %v8991_v14 = vld [vmem:[#allocation82_spill] sm:$0xff] }
 0x289   : > { %v4920_v28 = vpop.eup %4919  ;;  %v4411_v27 = vpack.c.bf16 %v3761_v45, %v3760_v47  ;;  %v7960_v34 = vadd.f32 %v8983_v19, %v3761_v45  ;;  %v3167_v61 = vrot.slane %v3043_v51, 2  ;;  %v2041_v48 = vmul.f32 %v8665_v24, %v7587_v40  ;;  %v7994_v45 = vld [vmem:[%s8332_s5] ss:$0 sm:$0xff] }
 0x28a   : > { %v7965_v5 = vmul.f32 %v4920_v28, %v7765_v50  ;;  %v3462_v30 = vadd.f32 %v3367_v29, %v3218_v59  ;;  %v7973_v47 = vmul.f32 %v8665_v24, %v7878_v7  ;;  %v7977_v18 = vmul.f32 %v5346_v58, %v7878_v7  ;;  %v8993_v19 = vld [vmem:[#allocation67_spill] sm:$0xff] }
 0x28b   : > { %v4922_v11 = vpop.eup %4921  ;;  %4471 = vst [vmem:[%s5104_s19 + $0x20] sm:$0xff] %v4411_v27   ;;  %v3219_v50 = vadd.f32 %v7665_v13, %v2975_v22  ;;  %v8986_v21 = vrot.slane %v8985_v17, 2  ;;  %v8988_v29 = vrot.slane %v8987_v52, 2  ;;  %v8990_v13 = vrot.slane %v8989_v55, 2  ;;  %v8010_v22 = vld [vmem:[%s8333_s6] ss:$0 sm:$0xff] }
 0x28c   : > { %v7980_v42 = vmul.f32 %v4922_v11, %v7783_v4  ;;  %v4924_v37 = vpop.eup %4923  ;;  %v3500_v4 = vmul.f32 %v7994_v45, %v3462_v30  ;;  %v8992_v32 = vrot.slane %v8991_v14, 2  ;;  %v2150_v0 = vrot.slane %v2041_v48, 1  ;;  %v8994_v11 = vld [vmem:[#allocation47_spill] sm:$0xff]  ;;  %v8996_v48 = vld [vmem:[#allocation17_spill] sm:$0xff] }
 0x28d   : > { %v2929_v23 = vsel %vm2851_vm3, %v8986_v21, %v2928_v3  ;;  %v7989_v40 = vsel %vm2851_vm3, %v2928_v3, %v8988_v29  ;;  %v3168_v9 = vsel %vm2851_vm3, %v8990_v13, %v3167_v61  ;;  %v3463_v27 = vadd.f32 %v3369_v36, %v3219_v50 }
 0x28e   : > { %v3170_v28 = vsel %vm2851_vm3, %v3167_v61, %v8992_v32  ;;  %v4456_v51 = vpack.c.bf16 %v7980_v42, %v7965_v5  ;;  %v1484_v59 = vmul.f32 %v4924_v37, %v8993_v19  ;;  %v2155_v31 = vrot.slane %v7973_v47, 1  ;;  %v8998_v47 = vld [vmem:[#allocation69_spill] sm:$0xff] }
 0x28f   : > { %v8013_v3 = vadd.f32 %v8010_v22, %v3500_v4  ;;  %v8995_v30 = vrot.slane %v8994_v11, 1  ;;  %v8997_v17 = vrot.slane %v8996_v48, 1  ;;  %v3501_v50 = vmul.f32 %v7994_v45, %v3463_v27 }
 0x290   : > { %4480 = vst [vmem:[%s5104_s19 + $0x68] sm:$0xff] %v4456_v51   ;;  %v1917_v21 = vmul.f32 %v5368_v8, %v1484_v59  ;;  %v1983_v52 = vmul.f32 %v8529_v6, %v1484_v59  ;;  %v2313_v29 = vmul.f32 %v5346_v58, %v1484_v59  ;;  %v2554_v4 = vmul.f32 %v5350_v60, %v1484_v59 }
 0x291   : > { %v8018_v61 = vsel %vm2118_vm2, %v8995_v30, %v2150_v0  ;;  %v8023_v36 = vsel %vm2118_vm2, %v2150_v0, %v8997_v17  ;;  %v4296_v37 = vmul.f32 -1.442695, %v8013_v3  ;;  %v3046_v55 = vmul.f32 %v5354_v63, %v1484_v59 }
 0x292   : > { %v3287_v13 = vmul.f32 %v5361_v2, %v1484_v59  ;;  %v8036_v14 = vadd.f32 %v8010_v22, %v3501_v50  ;;  %v1949_v32 = vadd.f32 %v1917_v21, %v1881_v44  ;;  %v2015_v0 = vadd.f32 %v1983_v52, %v7905_v56  ;;  %v4926_v27 = vpop.eup %4925 }
 0x293   : > { %v2439_v51 = vrot.slane %v2313_v29, 1  ;;  %4927 = vpow2.f32 %v4296_v37  ;;  %v2678_v19 = vrot.slane %v2554_v4, 1  ;;  %v3172_v11 = vrot.slane %v3046_v55, 2 }
 0x294   : > { %v3411_v30 = vrot.slane %v3287_v13, 2  ;;  %v4297_v48 = vmul.f32 -1.442695, %v8036_v14  ;;  %v2017_v17 = vadd.f32 %v8968_v16, %v1949_v32  ;;  %v2260_v49 = vadd.f32 %v8998_v47, %v2015_v0 }
 0x295   : > { %v8999_v59 = vrot.slane %v7851_v33, 1  ;;  %v9000_v44 = vrot.slane %v7756_v41, 1  ;;  %v9001_v52 = vrot.slane %v7855_v15, 1  ;;  %v9002_v37 = vrot.slane %v7761_v46, 1  ;;  %v9003_v41 = vld [vmem:[#allocation12_spill] sm:$0xff] }
 0x296   : > { %4929 = vpow2.f32 %v4297_v48  ;;  %v2262_v47 = vadd.f32 %v7911_v54, %v2017_v17  ;;  %v2504_v33 = vadd.f32 %v7916_v57, %v2260_v49  ;;  %v9004_v55 = vrot.slane %v9003_v41, 1  ;;  %v9008_v57 = vld [vmem:[#allocation15_spill] sm:$0xff] }
 0x297   : > { %v2440_v50 = vsel %vm2118_vm2, %v8999_v59, %v2439_v51  ;;  %v2442_v56 = vsel %vm2118_vm2, %v2439_v51, %v9000_v44  ;;  %v2679_v29 = vsel %vm2118_vm2, %v9001_v52, %v2678_v19  ;;  %v2681_v16 = vsel %vm2118_vm2, %v2678_v19, %v9002_v37 }
 0x298   : > { %v2505_v21 = vadd.f32 %v2440_v50, %v7872_v10  ;;  %v2747_v4 = vadd.f32 %v2679_v29, %v7880_v26  ;;  %v9005_v10 = vrot.slane %v7858_v39, 2  ;;  %v9006_v32 = vrot.slane %v7778_v38, 2  ;;  %v9009_v26 = vld [vmem:[#allocation80_spill] sm:$0xff]  ;;  %v9011_v39 = vld [vmem:[#allocation46_spill] sm:$0xff] }
 0x299   : > { %v9007_v0 = vrot.slane %v7886_v20, 2  ;;  %v2506_v54 = vadd.f32 %v2442_v56, %v2262_v47  ;;  %v2748_v19 = vadd.f32 %v2681_v16, %v2504_v33  ;;  %v9010_v48 = vrot.slane %v9009_v26, 2  ;;  %v9015_v56 = vld [vmem:[#allocation79_spill] sm:$0xff]  ;;  %v9016_v16 = vld [vmem:[#allocation14_spill] sm:$0xff] }
 0x29a   : > { %v2749_v13 = vadd.f32 %v9004_v55, %v2505_v21  ;;  %v3173_v15 = vsel %vm2851_vm3, %v9005_v10, %v3172_v11  ;;  %v3175_v46 = vsel %vm2851_vm3, %v3172_v11, %v9006_v32  ;;  %v2992_v49 = vadd.f32 %v9008_v57, %v2747_v4  ;;  %v9012_v21 = vld [vmem:[#allocation30_spill] sm:$0xff]  ;;  %v9023_v57 = vld [vmem:[#allocation28_spill] sm:$0xff] }
 0x29b   : > { %v3412_v51 = vsel %vm2851_vm3, %v9007_v0, %v3411_v30  ;;  %v3414_v17 = vsel %vm2851_vm3, %v3411_v30, %v9010_v48  ;;  %v3415_v50 = vrot.slane %v9011_v39, 2  ;;  %v1297_v44 = vadd.f32 1.0, %v4926_v27  ;;  %v9019_v30 = vld [vmem:[#allocation44_spill] sm:$0xff] }
 0x29c   : > { %v2994_v59 = vadd.f32 %v2929_v23, %v2749_v13  ;;  %v9013_v38 = vrot.slane %v9012_v21, 1  ;;  %v9014_v20 = vmov %v9004_v55  ;;  %v2993_v29 = vadd.f32 %v9015_v56, %v2748_v19 }
 0x29d   : > { %v2750_v52 = vadd.f32 %v9014_v20, %v2506_v54  ;;  %v3236_v37 = vadd.f32 %v3168_v9, %v2992_v49  ;;  %v9017_v47 = vrot.slane %v9016_v16, 1  ;;  %4931 = vrcp.f32 %v1297_v44  ;;  %v4928_v32 = vpop.eup %4927  ;;  %v9021_v9 = vld [vmem:[#allocation18_spill] sm:$0xff] }
 0x29e   : > { %v8077_v11 = vsel %vm2118_vm2, %v9013_v38, %v2155_v31  ;;  %v3238_v23 = vadd.f32 %v3173_v15, %v2994_v59  ;;  %v9018_v27 = vrot.slane %v7977_v18, 1  ;;  %v9020_v4 = vrot.slane %v9019_v30, 1  ;;  %v4991_v15 = vld [vmem:[%s8329_s2] ss:$0 sm:$0xff]  ;;  %v9026_v18 = vld [vmem:[#allocation24_spill] sm:$0xff] }
 0x29f   : > { %v8085_v33 = vsel %vm2118_vm2, %v2155_v31, %v9017_v47  ;;  %v2995_v41 = vadd.f32 %v7989_v40, %v2750_v52  ;;  %v3237_v13 = vadd.f32 %v3170_v28, %v2993_v29  ;;  %v3480_v10 = vadd.f32 %v3412_v51, %v3236_v37  ;;  %v9022_v31 = vld [vmem:[#allocation61_spill] sm:$0xff] }
 0x2a0   : > { %v8092_v55 = vsel %vm2118_vm2, %v9020_v4, %v9018_v27  ;;  %v2287_v0 = vmul.f32 %v5346_v58, %v9021_v9  ;;  %v3482_v54 = vadd.f32 %v3415_v50, %v3238_v23  ;;  %v1299_v19 = vadd.f32 1.0, %v9022_v31  ;;  %v4930_v51 = vpop.eup %4929  ;;  %v9031_v9 = vld [vmem:[#allocation55_spill] sm:$0xff] }
 0x2a1   : > { %v1021_v49 = vmul.f32 %v4991_v15, %v9023_v57  ;;  %v3666_v26 = vadd.f32 1.0, %v4928_v32  ;;  %v3239_v48 = vadd.f32 %v3175_v46, %v2995_v41  ;;  %v3481_v59 = vadd.f32 %v3414_v17, %v3237_v13  ;;  %v4992_v46 = vld [vmem:[%s8330_s3] ss:$0 sm:$0xff]  ;;  %v9025_v13 = vld [vmem:[#allocation42_spill] sm:$0xff] }
 0x2a2   : > { %v3518_v40 = vmul.f32 %v7994_v45, %v3480_v10  ;;  %v3520_v28 = vmul.f32 %v7994_v45, %v3482_v54  ;;  %v2396_v38 = vrot.slane %v2287_v0, 1  ;;  %v3667_v20 = vadd.f32 1.0, %v4930_v51  ;;  %v9028_v54 = vld [vmem:[#allocation41_spill] sm:$0xff] }
 0x2a3   : > { %4933 = vrcp.f32 %v3666_v26  ;;  %v3483_v39 = vadd.f32 %v3415_v50, %v3239_v48  ;;  %v3519_v44 = vmul.f32 %v7994_v45, %v3481_v59  ;;  %v8114_v17 = vadd.f32 %v4992_v46, %v1021_v49  ;;  %v9029_v48 = vld [vmem:[#allocation43_spill] sm:$0xff] }
 0x2a4   : > { %v8106_v21 = vadd.f32 %v8010_v22, %v3518_v40  ;;  %v8109_v52 = vadd.f32 %v8010_v22, %v3520_v28  ;;  %4935 = vrcp.f32 %v1299_v19  ;;  %v9024_v16 = vmov %v9018_v27 }
 0x2a5   : > { %v3521_v56 = vmul.f32 %v7994_v45, %v3483_v39  ;;  %v8118_v50 = vadd.f32 %v8010_v22, %v3519_v44  ;;  %4937 = vrcp.f32 %v3667_v20  ;;  %v8125_v47 = vsel %vm2118_vm2, %v9024_v16, %v2396_v38  ;;  %v9030_v39 = vld [vmem:[#allocation70_spill] sm:$0xff] }
 0x2a6   : > { %v4314_v29 = vmul.f32 -1.442695, %v8106_v21  ;;  %v4316_v37 = vmul.f32 -1.442695, %v8109_v52  ;;  %v4255_v4 = vmul.f32 -1.442695, %v8114_v17  ;;  %v1902_v32 = vmul.f32 %v5368_v8, %v9026_v18 }
 0x2a7   : > { %v8128_v23 = vadd.f32 %v8010_v22, %v3521_v56  ;;  %v4315_v27 = vmul.f32 -1.442695, %v8118_v50  ;;  %v4932_v30 = vpop.eup %4931  ;;  %v1864_v31 = vmul.f32 %v5358_v1, %v9028_v54  ;;  %v1968_v26 = vmul.f32 %v8529_v6, %v9026_v18 }
 0x2a8   : > { %4939 = vpow2.f32 %v4314_v29  ;;  %v1459_v10 = vmul.f32 %v4932_v30, %v9025_v13  ;;  %v1970_v59 = vmul.f32 %v8529_v6, %v9029_v48 }
 0x2a9   : > { %4941 = vpow2.f32 %v4316_v37  ;;  %v4317_v41 = vmul.f32 -1.442695, %v8128_v23 }
 0x2aa   : > { %4943 = vpow2.f32 %v4315_v27  ;;  %v1811_v0 = vsel %vm1565_vm1, %v1459_v10, 0.0 }
 0x2ab   : > { %4945 = vpow2.f32 %v4255_v4  ;;  %v1866_v19 = vmul.f32 %v5358_v1, %v1811_v0  ;;  %v1900_v15 = vmul.f32 %v5368_v8, %v1811_v0  ;;  %v1966_v57 = vmul.f32 %v8529_v6, %v1811_v0 }
 0x2ac   : > { %4947 = vpow2.f32 %v4317_v41 }
 0x2ad   : > { %v4934_v49 = vpop.eup %4933  ;;  %v1932_v28 = vadd.f32 %v1900_v15, %v1864_v31  ;;  %v1934_v51 = vadd.f32 %v1902_v32, %v1866_v19  ;;  %v1998_v44 = vadd.f32 %v1966_v57, %v9030_v39  ;;  %v9033_v15 = vld [vmem:[#allocation29_spill] sm:$0xff] }
 0x2ae   : > { %v3762_v40 = vmul.f32 %v4934_v49, %v8013_v3  ;;  %v4936_v38 = vpop.eup %4935 }
 0x2af   : > { %v4938_v20 = vpop.eup %4937  ;;  %v2000_v56 = vadd.f32 %v1968_v26, %v1932_v28  ;;  %v8152_v29 = vadd.f32 %v1970_v59, %v1934_v51  ;;  %v2243_v37 = vadd.f32 %v8018_v61, %v1998_v44  ;;  %v1461_v54 = vmul.f32 %v4936_v38, %v9031_v9  ;;  %v9034_v28 = vld [vmem:[#allocation49_spill] sm:$0xff] }
 0x2b0   : > { %v8150_v46 = vadd.f32 %v7949_v43, %v3762_v40  ;;  %v3763_v27 = vmul.f32 %v4938_v20, %v8036_v14  ;;  %v1971_v51 = vmul.f32 %v8529_v6, %v9034_v28  ;;  %v2046_v44 = vmul.f32 %v8665_v24, %v1811_v0 }
 0x2b1   : > { %v8157_v4 = vadd.f32 %v8077_v11, %v2000_v56  ;;  %v8160_v41 = vadd.f32 %v8092_v55, %v2243_v37  ;;  %v1813_v19 = vsel %vm1624_vm0, %v1461_v54, 0.0  ;;  %v1865_v20 = vmul.f32 %v5358_v1, %v7878_v7 }
 0x2b2   : > { %v4940_v16 = vpop.eup %4939  ;;  %v4416_v43 = vpack.c.bf16 %v3763_v27, %v3762_v40  ;;  %v8163_v10 = vadd.f32 %v7960_v34, %v3763_v27  ;;  %v1903_v34 = vmul.f32 %v5368_v8, %v9033_v15  ;;  %v2048_v57 = vmul.f32 %v8665_v24, %v1813_v19 }
 0x2b3   : > { %v4942_v30 = vpop.eup %4941  ;;  %v3684_v3 = vadd.f32 1.0, %v4940_v16  ;;  %v8173_v49 = vmul.f32 %v5346_v58, %v1813_v19  ;;  %v8176_v26 = vmul.f32 %v5350_v60, %v1813_v19  ;;  %v8179_v48 = vmul.f32 %v5352_v62, %v1813_v19 }
 0x2b4   : > { %v4944_v13 = vpop.eup %4943  ;;  %v3686_v18 = vadd.f32 1.0, %v4942_v30  ;;  %4472 = vst [vmem:[%s5104_s19 + $0x28] sm:$0xff] %v4416_v43   ;;  %v8182_v59 = vmul.f32 %v5354_v63, %v1813_v19  ;;  %v1969_v40 = vmul.f32 %v8529_v6, %v9033_v15  ;;  %v8189_v39 = vmul.f32 %v5361_v2, %v1813_v19 }
 0x2b5   : > { %v4946_v32 = vpop.eup %4945  ;;  %v3685_v61 = vadd.f32 1.0, %v4944_v13  ;;  %4949 = vrcp.f32 %v3684_v3  ;;  %v2288_v56 = vmul.f32 %v5346_v58, %v1811_v0  ;;  %v2529_v37 = vmul.f32 %v5350_v60, %v1811_v0 }
 0x2b6   : > { %v4948_v14 = vpop.eup %4947  ;;  %4951 = vrcp.f32 %v3686_v18  ;;  %v1298_v31 = vadd.f32 1.0, %v4946_v32  ;;  %v8197_v16 = vmul.f32 %v5352_v62, %v1811_v0  ;;  %v2162_v3 = vrot.slane %v2048_v57, 1 }
 0x2b7   : > { %v3687_v11 = vadd.f32 1.0, %v4948_v14  ;;  %4953 = vrcp.f32 %v3685_v61  ;;  %v8203_v13 = vmul.f32 %v5354_v63, %v1811_v0  ;;  %v8206_v43 = vmul.f32 %v5361_v2, %v1811_v0 }
 0x2b8   : > { %4955 = vrcp.f32 %v1298_v31  ;;  %v2401_v7 = vrot.slane %v8173_v49, 1  ;;  %v2640_v32 = vrot.slane %v8176_v26, 1  ;;  %v2895_v61 = vrot.slane %v8179_v48, 2 }
 0x2b9   : > { %4957 = vrcp.f32 %v3687_v11  ;;  %v3134_v9 = vrot.slane %v8182_v59, 2  ;;  %v3373_v0 = vrot.slane %v8189_v39, 2  ;;  %v2159_v31 = vrot.slane %v2046_v44, 1  ;;  %v9047_v59 = vld [vmem:[#allocation58_spill] sm:$0xff] }
 0x2ba   : > { %v2398_v55 = vrot.slane %v2288_v56, 1  ;;  %v2637_v19 = vrot.slane %v2529_v37, 1  ;;  %v2892_v15 = vrot.slane %v8197_v16, 2  ;;  %v3370_v26 = vrot.slane %v8206_v43, 2 }
 0x2bf   : > { %v4950_v38 = vpop.eup %4949 }
 0x2c0   : > { %v4952_v27 = vpop.eup %4951  ;;  %v8200_v30 = vmul.f32 %v4950_v38, %v8106_v21 }
 0x2c1   : > { %v4954_v18 = vpop.eup %4953  ;;  %v8216_v14 = vmul.f32 %v4952_v27, %v8109_v52  ;;  %v3131_v52 = vrot.slane %v8203_v13, 2  ;;  %v9035_v13 = vld [vmem:[#allocation19_spill] sm:$0xff] }
 0x2c2   : > { %v4956_v54 = vpop.eup %4955  ;;  %v8213_v21 = vmul.f32 %v4954_v18, %v8118_v50 }
 0x2c3   : > { %v4958_v11 = vpop.eup %4957  ;;  %v1460_v57 = vmul.f32 %v4956_v54, %v8114_v17 }
 0x2c4   : > { %v8222_v49 = vmul.f32 %v4958_v11, %v8128_v23  ;;  %v4461_v50 = vpack.c.bf16 %v8213_v21, %v8200_v30 }
 0x2c5   : > { %v1867_v48 = vmul.f32 %v5358_v1, %v1460_v57  ;;  %v1901_v28 = vmul.f32 %v5368_v8, %v1460_v57  ;;  %v1967_v44 = vmul.f32 %v8529_v6, %v1460_v57  ;;  %v2047_v38 = vmul.f32 %v8665_v24, %v1460_v57 }
 0x2c6   : > { %4481 = vst [vmem:[%s5104_s19 + $0x70] sm:$0xff] %v4461_v50   ;;  %v4466_v17 = vpack.c.bf16 %v8222_v49, %v8216_v14  ;;  %v2289_v23 = vmul.f32 %v5346_v58, %v1460_v57  ;;  %v2530_v56 = vmul.f32 %v5350_v60, %v1460_v57  ;;  %v2780_v37 = vmul.f32 %v5352_v62, %v1460_v57 }
 0x2c7   : > { %v1933_v16 = vadd.f32 %v1901_v28, %v1865_v20  ;;  %v1935_v27 = vadd.f32 %v1903_v34, %v1867_v48  ;;  %v1999_v1 = vadd.f32 %v1967_v44, %v9035_v13  ;;  %v2160_v43 = vrot.slane %v2047_v38, 1  ;;  %v9037_v38 = vld [vmem:[#allocation32_spill] sm:$0xff]  ;;  %v9042_v13 = vld [vmem:[#allocation53_spill] sm:$0xff] }
 0x2c8   : > { %4482 = vst [vmem:[%s5104_s19 + $0x78] sm:$0xff] %v4466_v17   ;;  %v2399_v8 = vrot.slane %v2289_v23, 1  ;;  %v2638_v6 = vrot.slane %v2530_v56, 1  ;;  %v2893_v18 = vrot.slane %v2780_v37, 2  ;;  %v3022_v24 = vmul.f32 %v5354_v63, %v1460_v57  ;;  %v9038_v17 = vld [vmem:[#allocation33_spill] sm:$0xff]  ;;  %v9039_v56 = vld [vmem:[#allocation52_spill] sm:$0xff] }
 0x2c9   : > { %v2001_v54 = vadd.f32 %v1969_v40, %v1933_v16  ;;  %v2003_v11 = vadd.f32 %v1971_v51, %v1935_v27  ;;  %v2161_v50 = vsel %vm2118_vm2, %v2159_v31, %v2160_v43  ;;  %v2163_v58 = vsel %vm2118_vm2, %v2160_v43, %v2162_v3  ;;  %v9036_v51 = vld [vmem:[#allocation31_spill] sm:$0xff]  ;;  %v9040_v37 = vld [vmem:[#allocation20_spill] sm:$0xff]  ;;  %v9041_v16 = vld [vmem:[#allocation34_spill] sm:$0xff] }
 0x2ca   : > { %v2244_v60 = vadd.f32 %v8023_v36, %v1999_v1  ;;  %v2247_v62 = vadd.f32 %v2161_v50, %v8152_v29  ;;  %v2400_v34 = vsel %vm2118_vm2, %v2398_v55, %v2399_v8  ;;  %v2402_v20 = vsel %vm2118_vm2, %v2399_v8, %v2401_v7  ;;  %v9043_v43 = vld [vmem:[#allocation62_spill] sm:$0xff] }
 0x2cb   : > { %v2246_v48 = vadd.f32 %v8085_v33, %v2001_v54  ;;  %v2248_v28 = vadd.f32 %v2163_v58, %v2003_v11  ;;  %v2489_v44 = vadd.f32 %v2400_v34, %v8157_v4  ;;  %v2639_v63 = vsel %vm2118_vm2, %v2637_v19, %v2638_v6 }
 0x2cc   : > { %v2488_v40 = vadd.f32 %v8125_v47, %v2244_v60  ;;  %v2491_v31 = vadd.f32 %v9036_v51, %v2247_v62  ;;  %v2641_v3 = vsel %vm2118_vm2, %v2638_v6, %v2640_v32  ;;  %v2731_v36 = vadd.f32 %v2639_v63, %v8160_v41  ;;  %v9049_v63 = vld [vmem:[#allocation59_spill] sm:$0xff] }
 0x2cd   : > { %v2490_v29 = vadd.f32 %v2402_v20, %v2246_v48  ;;  %v2492_v55 = vadd.f32 %v9037_v38, %v2248_v28  ;;  %v2733_v7 = vadd.f32 %v9038_v17, %v2489_v44  ;;  %v2894_v33 = vsel %vm2851_vm3, %v2892_v15, %v2893_v18  ;;  %v9045_v20 = vld [vmem:[#allocation38_spill] sm:$0xff] }
 0x2ce   : > { %v2732_v23 = vadd.f32 %v2641_v3, %v2488_v40  ;;  %v2735_v4 = vadd.f32 %v9039_v56, %v2491_v31  ;;  %v2896_v19 = vsel %vm2851_vm3, %v2893_v18, %v2895_v61  ;;  %v2976_v47 = vadd.f32 %v9040_v37, %v2731_v36 }
 0x2cf   : > { %v2734_v27 = vadd.f32 %v9041_v16, %v2490_v29  ;;  %v2736_v32 = vadd.f32 %v9042_v13, %v2492_v55  ;;  %v2978_v41 = vadd.f32 %v7926_v53, %v2733_v7  ;;  %v3132_v1 = vrot.slane %v3022_v24, 2  ;;  %v9044_v24 = vld [vmem:[#allocation37_spill] sm:$0xff] }
 0x2d0   : > { %v2977_v8 = vadd.f32 %v9043_v43, %v2732_v23  ;;  %v2980_v6 = vadd.f32 %v2894_v33, %v2735_v4  ;;  %v3220_v54 = vadd.f32 %v7935_v35, %v2976_v47  ;;  %v3263_v15 = vmul.f32 %v5361_v2, %v1460_v57  ;;  %v9046_v57 = vld [vmem:[#allocation39_spill] sm:$0xff] }
 0x2d1   : > { %v2979_v11 = vadd.f32 %v7932_v12, %v2734_v27  ;;  %v2981_v50 = vadd.f32 %v2896_v19, %v2736_v32  ;;  %v3133_v61 = vsel %vm2851_vm3, %v3131_v52, %v3132_v1  ;;  %v3135_v18 = vsel %vm2851_vm3, %v3132_v1, %v3134_v9 }
 0x2d2   : > { %v3221_v58 = vadd.f32 %v7941_v25, %v2977_v8  ;;  %v3222_v53 = vadd.f32 %v3133_v61, %v2978_v41  ;;  %v3224_v60 = vadd.f32 %v9044_v24, %v2980_v6  ;;  %v3371_v62 = vrot.slane %v3263_v15, 2  ;;  %v9048_v25 = vld [vmem:[#allocation40_spill] sm:$0xff] }
 0x2d3   : > { %v3223_v34 = vadd.f32 %v3135_v18, %v2979_v11  ;;  %v3225_v35 = vadd.f32 %v9045_v20, %v2981_v50 }
 0x2d4   : > { %v3372_v2 = vsel %vm2851_vm3, %v3370_v26, %v3371_v62  ;;  %v3374_v12 = vsel %vm2851_vm3, %v3371_v62, %v3373_v0  ;;  %v3466_v52 = vadd.f32 %v9046_v57, %v3222_v53  ;;  %v3468_v48 = vadd.f32 %v9047_v59, %v3224_v60 }
 0x2d5   : > { %v3464_v9 = vadd.f32 %v3372_v2, %v3220_v54  ;;  %v3465_v28 = vadd.f32 %v3374_v12, %v3221_v58  ;;  %v3467_v44 = vadd.f32 %v9048_v25, %v3223_v34  ;;  %v3469_v40 = vadd.f32 %v9049_v63, %v3225_v35 }
 0x2d6   : > { %v3504_v51 = vmul.f32 %v7994_v45, %v3466_v52  ;;  %v3506_v31 = vmul.f32 %v7994_v45, %v3468_v48 }
 0x2d7   : > { %v3502_v26 = vmul.f32 %v7994_v45, %v3464_v9  ;;  %v3503_v39 = vmul.f32 %v7994_v45, %v3465_v28  ;;  %v3505_v0 = vmul.f32 %v7994_v45, %v3467_v44  ;;  %v3507_v3 = vmul.f32 %v7994_v45, %v3469_v40  ;;  %v9050_v28 = vld [vmem:[#allocation25_spill] sm:$0xff] }
 0x2d8   : > { %v3542_v36 = vadd.f32 %v8010_v22, %v3504_v51  ;;  %v3544_v29 = vadd.f32 %v8010_v22, %v3506_v31  ;;  %v9051_v44 = vld [vmem:[#allocation73_spill] sm:$0xff]  ;;  %v9053_v51 = vld [vmem:[#allocation60_spill] sm:$0xff] }
 0x2d9   : > { %v3540_v38 = vadd.f32 %v8010_v22, %v3502_v26  ;;  %v3541_v55 = vadd.f32 %v8010_v22, %v3503_v39  ;;  %v3543_v17 = vadd.f32 %v8010_v22, %v3505_v0  ;;  %v3545_v7 = vadd.f32 %v8010_v22, %v3507_v3  ;;  %v9054_v26 = vld [vmem:[#allocation56_spill] sm:$0xff]  ;;  %v9055_v39 = vld [vmem:[#allocation54_spill] sm:$0xff]  ;;  %v9056_v3 = vld [vmem:[#allocation45_spill] sm:$0xff] }
 0x2da   : > { %v4300_v33 = vmul.f32 -1.442695, %v3542_v36  ;;  %v4302_v19 = vmul.f32 -1.442695, %v3544_v29 }
 0x2db   : > { %v4298_v23 = vmul.f32 -1.442695, %v3540_v38  ;;  %v4299_v56 = vmul.f32 -1.442695, %v3541_v55  ;;  %v4301_v4 = vmul.f32 -1.442695, %v3543_v17 }
 0x2dc   : > { %4959 = vpow2.f32 %v4300_v33  ;;  %v4303_v45 = vmul.f32 -1.442695, %v3545_v7 }
 0x2dd   : > { %4961 = vpow2.f32 %v4298_v23 }
 0x2de   : > { %4963 = vpow2.f32 %v4299_v56 }
 0x2df   : > { %4965 = vpow2.f32 %v4301_v4 }
 0x2e0   : > { %4967 = vpow2.f32 %v4302_v19 }
 0x2e1   : > { %4969 = vpow2.f32 %v4303_v45 }
 0x2e6   : > { %v4960_v37 = vpop.eup %4959 }
 0x2e7   : > { %v4962_v47 = vpop.eup %4961  ;;  %v3670_v16 = vadd.f32 1.0, %v4960_v37 }
 0x2e8   : > { %v4964_v27 = vpop.eup %4963  ;;  %v3668_v13 = vadd.f32 1.0, %v4962_v47 }
 0x2e9   : > { %v4966_v32 = vpop.eup %4965  ;;  %v3669_v41 = vadd.f32 1.0, %v4964_v27  ;;  %4971 = vrcp.f32 %v3670_v16 }
 0x2ea   : > { %v4968_v22 = vpop.eup %4967  ;;  %v3671_v1 = vadd.f32 1.0, %v4966_v32  ;;  %4973 = vrcp.f32 %v3668_v13 }
 0x2eb   : > { %v4970_v43 = vpop.eup %4969  ;;  %v3672_v8 = vadd.f32 1.0, %v4968_v22  ;;  %4975 = vrcp.f32 %v3669_v41 }
 0x2ec   : > { %v3673_v6 = vadd.f32 1.0, %v4970_v43  ;;  %4977 = vrcp.f32 %v3671_v1 }
 0x2ed   : > { %4979 = vrcp.f32 %v3672_v8 }
 0x2ee   : > { %4981 = vrcp.f32 %v3673_v6 }
 0x2f3   : > { %v4972_v54 = vpop.eup %4971 }
 0x2f4   : > { %v4974_v15 = vpop.eup %4973  ;;  %v3766_v61 = vmul.f32 %v4972_v54, %v3542_v36 }
 0x2f5   : > { %v4976_v11 = vpop.eup %4975  ;;  %v3764_v50 = vmul.f32 %v4974_v15, %v3540_v38 }
 0x2f6   : > { %v4978_v18 = vpop.eup %4977  ;;  %v3765_v58 = vmul.f32 %v4976_v11, %v3541_v55 }
 0x2f7   : > { %v4980_v53 = vpop.eup %4979  ;;  %v3767_v24 = vmul.f32 %v4978_v18, %v3543_v17  ;;  %v3949_v60 = vadd.f32 %v8150_v46, %v3764_v50  ;;  %v9052_v46 = vld [vmem:[#allocation13_spill] sm:$0xff] }
 0x2f8   : > { %v4982_v62 = vpop.eup %4981  ;;  %v3768_v34 = vmul.f32 %v4980_v53, %v3544_v29  ;;  %v4421_v20 = vpack.c.bf16 %v3765_v58, %v3764_v50  ;;  %v3964_v35 = vadd.f32 %v8163_v10, %v3765_v58  ;;  %v9057_v29 = vld [vmem:[#allocation76_spill] sm:$0xff] }
 0x2f9   : > { %v3769_v2 = vmul.f32 %v4982_v62, %v3545_v7  ;;  %v4426_v12 = vpack.c.bf16 %v3767_v24, %v3766_v61  ;;  %v3950_v57 = vadd.f32 %v3949_v60, %v3766_v61 }
 0x2fa   : > { %4473 = vst [vmem:[%s5104_s19 + $0x30] sm:$0xff] %v4421_v20   ;;  %v3965_v52 = vadd.f32 %v3964_v35, %v3767_v24 }
 0x2fb   : > { %4474 = vst [vmem:[%s5104_s19 + $0x38] sm:$0xff] %v4426_v12   ;;  %v4431_v59 = vpack.c.bf16 %v3769_v2, %v3768_v34  ;;  %v3951_v48 = vadd.f32 %v3950_v57, %v3768_v34 }
 0x2fc   : > { %v3966_v9 = vadd.f32 %v3965_v52, %v3769_v2 }
 0x2fd   : > { %4475 = vst [vmem:[%s5104_s19 + $0x40] sm:$0xff] %v4431_v59   ;;  %v3952_v25 = vadd.f32 %v3951_v48, %v9050_v28 }
 0x2fe   : > { %v3967_v63 = vadd.f32 %v3966_v9, %v9051_v44 }
 0x2ff   : > { %v3953_v40 = vadd.f32 %v3952_v25, %v9052_v46 }
 0x300   : > { %v3968_v31 = vadd.f32 %v3967_v63, %v9053_v51 }
 0x301   : > { %v3954_v10 = vadd.f32 %v3953_v40, %v9054_v26 }
 0x302   : > { %v3969_v0 = vadd.f32 %v3968_v31, %v9055_v39 }
 0x303   : > { %v3955_v36 = vadd.f32 %v3954_v10, %v9056_v3 }
 0x304   : > { %v3970_v38 = vadd.f32 %v3969_v0, %v9057_v29 }
 0x305   : > { %v3956_v55 = vadd.f32 %v3955_v36, %v7965_v5 }
 0x306   : > { %v3971_v17 = vadd.f32 %v3970_v38, %v7980_v42 }
 0x307   : > { %v3957_v7 = vadd.f32 %v3956_v55, %v8200_v30 }
 0x308   : > { %v3972_v33 = vadd.f32 %v3971_v17, %v8213_v21 }
 0x309   : > { %v3958_v23 = vadd.f32 %v3957_v7, %v8216_v14 }
 0x30a   : > { %v3973_v56 = vadd.f32 %v3972_v33, %v8222_v49 }
 0x30c   : > { %v3974_v4 = vadd.f32 %v3973_v56, %v3958_v23 }
 0x30e   : > { %v3975_v19 = vrot.slane %v3974_v4, 4 }
 0x310   : > { %v3976_v45 = vadd.f32 %v3975_v19, %v3974_v4 }
 0x312   : > { %v3977_v37 = vrot.slane %v3976_v45, 2 }
 0x314   : > { %v3978_v47 = vadd.f32 %v3977_v37, %v3976_v45 }
 0x316   : > { %v3979_v16 = vrot.slane %v3978_v47, 1 }
 0x318   : > { %v3980_v27 = vadd.f32 %v3979_v16, %v3978_v47 }
 0x31a   : > { %3981 = vst [vmem:[%s301_s16] sm:$0x1] %v3980_v27 }
 0x31b PF: > { %s19_s29 = sadd.s32 1, %s5017_s29   ;;  %s9058_s27 = smov %s5013_s28 }
 0x31c   : > { %p16_p5 = scmp.ge.s32.totalorder %s19_s29, 4   ;;  %s9059_s28 = smov %s9061_s30 }
 0x31e   :  { %18 = sbr.rel (!%p16_p5) target bundleno = 2 (0x2), region = 182 }
 0x325   :  { %4032 = vsyncmov [#allocation3] }
 0x328   :  { %s4033_s23 = vpop.sfrf %4032 }
 0x329   :  { %p4352_p6 = scmp.ne.s32.totalorder %s4033_s23, 0 }
 0x32b   :  { %4037 = shalt.err (%p4352_p6)  }
 0x32c   :  { %4039 = vsyncmov [#allocation3 + $0x1] }
 0x32f   :  { %s4040_s24 = vpop.sfrf %4039 }
 0x330   :  { %p4353_p7 = scmp.ne.s32.totalorder %s4040_s24, 0 }
 0x332   :  { %4044 = shalt.err (%p4353_p7)  }

</bundles_post_ra>
